<compile_context>
chip_gen: v5e
topology: v5e:2x2
jax: 0.10.0
libtpu: 0.0.40
codegen_flags: <defaults>
</compile_context>

<pallas_src>
import functools

import jax
import jax.numpy as jnp
from jax.experimental import pallas as pl
from jax.experimental.pallas import tpu as pltpu


def _round_up(x, m):
    return (x + m - 1) // m * m


def _pick_block_steps(tdec, cap=8):
    """Largest divisor of tdec that is <= cap (timesteps per grid iteration)."""
    for k in range(min(cap, tdec), 0, -1):
        if tdec % k == 0:
            return k
    return 1


def _decoder_block_kernel(enc_ref, enc_att_ref, embp_ref, h0_ref, c0_ref,
                          w_hcat_ref, w_attf_ref, b_beta_ref, w_ihc_ref,
                          h_seq_ref, alpha_ref,
                          h_sc, c_sc,
                          *, k_steps, n_valid, gp, ap, cp, hidden_dim):
    # ---- (re)initialize the recurrent state at the first time-block of each
    # ---- batch shard (h0/c0 init Linears are hoisted to the wrapper) --------
    @pl.when(pl.program_id(1) == 0)
    def _():
        h_sc[...] = h0_ref[...]
        c_sc[...] = c0_ref[...]

    hd = hidden_dim

    def step(k, carry):
        h, c = carry                                              # (Bs, H) f32

        # ---- one fused, lane-aligned MXU matmul for all h-projections ------
        #   w_hcat = [W_hh|0 | W_att_d|0 | W_beta|0]   -> (Bs, Gp + Ap + Cp)
        h_all = jnp.dot(h.astype(jnp.bfloat16), w_hcat_ref[...],
                        preferred_element_type=jnp.float32)
        hh_pre = h_all[:, :gp]                      # h @ W_hh      (Bs, Gp)
        att_d = h_all[:, gp:gp + ap]                # h @ W_att_d   (Bs, Ap)
        beta_pre = h_all[:, gp + ap:]               # h @ W_beta    (Bs, Cp)

        # ---- additive attention over the (padded) encoder pixels -----------
        # enc_att stored bf16; math promoted to f32 (safe on all generations).
        # TODO(synk): at production Np/A chunk this (Bs,Np,Ap) temporary over
        #             Np with an online softmax to bound the VMEM spike.
        att = jax.nn.relu(enc_att_ref[...] + att_d[:, None, :])  # (Bs, Np, Ap)
        scores = jnp.sum(att * w_attf_ref[...][None, :, :], axis=-1)  # (Bs, Np)

        if n_valid < scores.shape[-1]:              # mask lane padding
            col = jax.lax.broadcasted_iota(jnp.int32, scores.shape, 1)
            scores = jnp.where(col < n_valid, scores, -1e30)

        scores = scores - jnp.max(scores, axis=-1, keepdims=True)
        ex = jnp.exp(scores)
        # approx reciprocal (EUP slot): alpha rows sum to ~1, not exactly 1.
        alpha = ex * pl.reciprocal(jnp.sum(ex, axis=-1, keepdims=True),
                                   approx=True)                    # (Bs, Np)

        # ---- attention-weighted context on the MXU --------------------------
        context = jnp.einsum(
            'bqn,bnc->bqc',
            alpha[:, None, :].astype(jnp.bfloat16), enc_ref[...],
            preferred_element_type=jnp.float32)[:, 0, :]           # (Bs, Cp)

        # ---- sigmoid gate on the context vector -----------------------------
        gate = jax.nn.sigmoid(beta_pre + b_beta_ref[...])          # (Bs, Cp)
        context = gate * context

        # ---- LSTMCell; emb @ W_ih_e + b_lstm precomputed (embp_ref) ---------
        gates = (embp_ref[k] + hh_pre
                 + jnp.dot(context.astype(jnp.bfloat16), w_ihc_ref[...],
                           preferred_element_type=jnp.float32))    # (Bs, Gp)
        i_g = jax.nn.sigmoid(gates[:, 0 * hd:1 * hd])
        f_g = jax.nn.sigmoid(gates[:, 1 * hd:2 * hd])
        g_g = jnp.tanh(gates[:, 2 * hd:3 * hd])
        o_g = jax.nn.sigmoid(gates[:, 3 * hd:4 * hd])
        c_new = f_g * c + i_g * g_g
        h_new = o_g * jnp.tanh(c_new)

        # vocab projection is hoisted to the wrapper: only store h per step.
        h_seq_ref[k] = h_new                                       # (Bs, H)
        alpha_ref[k] = alpha                                       # (Bs, Np)
        return (h_new, c_new)

    h_fin, c_fin = jax.lax.fori_loop(0, k_steps, step,
                                     (h_sc[...], c_sc[...]), unroll=True)
    h_sc[...] = h_fin
    c_sc[...] = c_fin


def caption_head_forward(x, caps, params):
    """x: (B, C, H, W) float32 encoder features; caps: (B, T) int32 token ids.

    Returns (logits (B, T-1, V), alphas (B, T-1, N)) — teacher-forced decode.
    """
    B, C, Hs, Ws = x.shape
    N = Hs * Ws
    T = caps.shape[1]
    Tdec = T - 1

    A = params["w_att_e"].shape[1]
    Hdim = params["w_hh"].shape[0]
    V = params["w_fc"].shape[1]
    G = 4 * Hdim

    # lane-aligned padded dims (free when already multiples of 128 at prod).
    Np = _round_up(N, 128)
    Ap = _round_up(A, 128)
    Cp = _round_up(C, 128)
    Gp = _round_up(G, 128)

    # batch shard axis (megacore split on v7x; serial and harmless elsewhere).
    nshards = 2 if (B % 2 == 0 and B >= 2) else 1
    Bs = B // nshards
    K = _pick_block_steps(Tdec)          # timesteps per grid iteration

    # ---- hoisted, time-invariant work (single large XLA matmuls) ----
    enc = jnp.transpose(x, (0, 2, 3, 1)).reshape(B, N, C).astype(jnp.float32)

    mean_enc = jnp.mean(enc, axis=1)                                        # (B, C)
    h0 = (mean_enc @ params["w_init_h"] + params["b_init_h"]).astype(jnp.float32)
    c0 = (mean_enc @ params["w_init_c"] + params["b_init_c"]).astype(jnp.float32)
    h0_r = h0.reshape(nshards, Bs, Hdim)
    c0_r = c0.reshape(nshards, Bs, Hdim)

    enc_att = jnp.einsum('bnc,ca->bna', enc, params["w_att_e"])             # (B, N, A)

    # NOTE: b_lstm must be the sum of PyTorch LSTMCell's b_ih + b_hh.
    emb = jnp.take(params["embedding"], caps[:, :Tdec], axis=0)             # (B, Tdec, E)
    emb_proj = jnp.einsum('bte,eg->btg', emb, params["w_ih_e"]) + params["b_lstm"]
    emb_proj_p = jnp.zeros((B, Tdec, Gp), jnp.float32).at[:, :, :G].set(emb_proj)
    emb_proj_p = jnp.transpose(emb_proj_p, (1, 0, 2)).reshape(
        Tdec, nshards, Bs, Gp)                                              # time-major

    # ---- lane-dense / lane-aligned padding, bf16 storage for big buffers ----
    enc_p = jnp.zeros((B, Np, Cp), jnp.bfloat16).at[:, :N, :C].set(
        enc.astype(jnp.bfloat16)).reshape(nshards, Bs, Np, Cp)
    enc_att_p = jnp.zeros((B, Np, Ap), jnp.bfloat16).at[:, :N, :A].set(
        enc_att.astype(jnp.bfloat16)).reshape(nshards, Bs, Np, Ap)

    # fused per-step h-projection weight, segments lane-aligned to 128:
    #   cols [0:4H] = W_hh, [Gp:Gp+A] = W_att_d, [Gp+Ap:Gp+Ap+C] = W_beta
    w_hcat = jnp.zeros((Hdim, Gp + Ap + Cp), jnp.float32)
    w_hcat = w_hcat.at[:, :G].set(params["w_hh"])
    w_hcat = w_hcat.at[:, Gp:Gp + A].set(params["w_att_d"])
    w_hcat = w_hcat.at[:, Gp + Ap:Gp + Ap + C].set(params["w_beta"])
    w_hcat = w_hcat.astype(jnp.bfloat16)

    w_ihc_p = jnp.zeros((Cp, Gp), jnp.float32).at[:C, :G].set(
        params["w_ih_c"]).astype(jnp.bfloat16)
    w_attf_p = jnp.zeros((1, Ap), jnp.float32).at[:, :A].set(params["w_att_f"])
    b_beta_p = jnp.zeros((1, Cp), jnp.float32).at[:, :C].set(params["b_beta"])

    def const_spec(shape):
        # grid-invariant weight: constant index_map, single-buffered (resident).
        return pl.BlockSpec(shape, lambda s, t: (0, 0),
                            pipeline_mode=pl.Buffered(1))

    grid_spec = pltpu.PrefetchScalarGridSpec(
        num_scalar_prefetch=0,
        grid=(nshards, Tdec // K),
        in_specs=[
            pl.BlockSpec((None, Bs, Np, Cp), lambda s, t: (s, 0, 0, 0)),   # enc (bf16)
            pl.BlockSpec((None, Bs, Np, Ap), lambda s, t: (s, 0, 0, 0)),   # enc @ W_att_e (bf16)
            pl.BlockSpec((K, None, Bs, Gp), lambda s, t: (t, s, 0, 0)),    # emb @ W_ih_e + b
            pl.BlockSpec((None, Bs, Hdim), lambda s, t: (s, 0, 0)),        # h0
            pl.BlockSpec((None, Bs, Hdim), lambda s, t: (s, 0, 0)),        # c0
            const_spec((Hdim, Gp + Ap + Cp)),                              # [W_hh|W_att_d|W_beta]
            const_spec((1, Ap)),                                           # W_att_f
            const_spec((1, Cp)),                                           # b_beta
            const_spec((Cp, Gp)),                                          # W_ih_c
        ],
        out_specs=[
            pl.BlockSpec((K, None, Bs, Hdim), lambda s, t: (t, s, 0, 0)),  # h sequence
            pl.BlockSpec((K, None, Bs, Np), lambda s, t: (t, s, 0, 0)),    # alphas
        ],
        scratch_shapes=[pltpu.VMEM((Bs, Hdim), jnp.float32),
                        pltpu.VMEM((Bs, Hdim), jnp.float32)],
    )

    # ---- VMEM budget from the actual buffer set, clamped to this chip ----
    resident_bytes = (
        2 * Bs * Np * Cp * 2 +                  # enc block, 2 buffers, bf16
        2 * Bs * Np * Ap * 2 +                  # enc_att block, 2 buffers, bf16
        2 * K * Bs * Gp * 4 +                   # emb projection block, 2 buffers
        2 * 2 * Bs * Hdim * 4 +                 # h0 / c0 blocks
        Hdim * (Gp + Ap + Cp) * 2 +             # w_hcat (single buffered)
        Ap * 4 + Cp * 4 + Cp * Gp * 2 +         # w_attf, b_beta, w_ihc
        2 * K * Bs * (Hdim + Np) * 4 +          # outputs, 2 buffers each
        2 * Bs * Hdim * 4 +                     # h/c scratch
        Bs * Np * Ap * 4 +                      # attention temporary
        4 * Bs * (Gp + Ap + Cp) * 4             # misc per-step temporaries
    )
    try:
        vmem_cap = int(pltpu.get_tpu_info().vmem_capacity_bytes)
    except Exception:
        vmem_cap = 64 * 1024 * 1024             # conservative (v7x per-core)
    vmem_limit = int(min(max(resident_bytes + (8 << 20), 32 << 20),
                         vmem_cap - (8 << 20)))

    kernel = functools.partial(_decoder_block_kernel, k_steps=K, n_valid=N,
                               gp=Gp, ap=Ap, cp=Cp, hidden_dim=Hdim)

    h_seq_tm, alphas_tm = pl.pallas_call(
        kernel,
        out_shape=(jax.ShapeDtypeStruct((Tdec, nshards, Bs, Hdim), jnp.float32),
                   jax.ShapeDtypeStruct((Tdec, nshards, Bs, Np), jnp.float32)),
        grid_spec=grid_spec,
        compiler_params=pltpu.CompilerParams(
            dimension_semantics=("parallel", "arbitrary"),  # shard ∥, time serial
            vmem_limit_bytes=vmem_limit),
    )(enc_p, enc_att_p, emb_proj_p, h0_r, c0_r,
      w_hcat, w_attf_p, b_beta_p, w_ihc_p)

    # ---- hoisted vocab projection: one big XLA matmul over all timesteps ----
    h_seq = jnp.transpose(h_seq_tm, (1, 2, 0, 3)).reshape(B, Tdec, Hdim)
    logits = jnp.einsum('bth,hv->btv', h_seq, params["w_fc"]) + params["b_fc"]
    alphas = jnp.transpose(alphas_tm, (1, 2, 0, 3)).reshape(B, Tdec, Np)[:, :, :N]
    return logits, alphas


def make_params(key, *, vocab_size, emb_dim, enc_dim, hidden_dim, att_dim,
                pad_idx=0, scale=0.02):
    ks = jax.random.split(key, 16)
    n = lambda k, s: (scale * jax.random.normal(k, s, jnp.float32))
    embedding = n(ks[0], (vocab_size, emb_dim)).at[pad_idx].set(0.0)  # padding_idx
    return dict(
        embedding=embedding,
        w_init_h=n(ks[1], (enc_dim, hidden_dim)), b_init_h=n(ks[2], (1, hidden_dim)),
        w_init_c=n(ks[3], (enc_dim, hidden_dim)), b_init_c=n(ks[4], (1, hidden_dim)),
        w_att_e=n(ks[5], (enc_dim, att_dim)),
        w_att_d=n(ks[6], (hidden_dim, att_dim)),
        w_att_f=n(ks[7], (1, att_dim)),
        w_beta=n(ks[8], (hidden_dim, enc_dim)), b_beta=n(ks[9], (1, enc_dim)),
        w_ih_e=n(ks[10], (emb_dim, 4 * hidden_dim)),
        w_ih_c=n(ks[11], (enc_dim, 4 * hidden_dim)),
        w_hh=n(ks[12], (hidden_dim, 4 * hidden_dim)),
        # b_lstm stands for PyTorch LSTMCell's (b_ih + b_hh).
        b_lstm=n(ks[13], (1, 4 * hidden_dim)),
        w_fc=n(ks[14], (hidden_dim, vocab_size)), b_fc=n(ks[15], (1, vocab_size)),
    )


if __name__ == "__main__":
    # Small, module-consistent shapes (encoder_out_dim scaled down from 512).
    B, C, Hs, Ws = 2, 32, 4, 4        # encoder feature map (NCHW)
    V, E, H, A = 32, 16, 32, 16       # vocab, word-emb dim, rnn hidden, attention dim
    T = 8                             # caption length (incl. <start>)

    key = jax.random.PRNGKey(0)
    kx, kc, kp = jax.random.split(key, 3)
    x = jax.random.normal(kx, (B, C, Hs, Ws), jnp.float32)
    caps = jax.random.randint(kc, (B, T), 0, V, dtype=jnp.int32)
    params = make_params(kp, vocab_size=V, emb_dim=E, enc_dim=C,
                         hidden_dim=H, att_dim=A)

    fwd = jax.jit(functools.partial(caption_head_forward, params=params))
    logits, alphas = fwd(x, caps)
    jax.block_until_ready(logits)
    jax.block_until_ready(alphas)

    assert logits.shape == (B, T - 1, V) and alphas.shape == (B, T - 1, Hs * Ws)
    assert bool(jnp.all(jnp.isfinite(logits))) and bool(jnp.all(jnp.isfinite(alphas)))
    print("KERNEL_OK")
</pallas_src>

<mosaic_0001>
module attributes {stable_mosaic.version = 11 : i64} {
  func.func @_decoder_block_kernel(%arg0: i32, %arg1: i32, %arg2: memref<1x1x128x128xbf16, #tpu.memory_space<vmem>>, %arg3: memref<1x1x128x128xbf16, #tpu.memory_space<vmem>>, %arg4: memref<7x1x1x128xf32, #tpu.memory_space<vmem>>, %arg5: memref<1x1x32xf32, #tpu.memory_space<vmem>>, %arg6: memref<1x1x32xf32, #tpu.memory_space<vmem>>, %arg7: memref<32x384xbf16, #tpu.memory_space<vmem>>, %arg8: memref<1x128xf32, #tpu.memory_space<vmem>>, %arg9: memref<1x128xf32, #tpu.memory_space<vmem>>, %arg10: memref<128x128xbf16, #tpu.memory_space<vmem>>, %arg11: memref<7x1x1x32xf32, #tpu.memory_space<vmem>>, %arg12: memref<7x1x1x128xf32, #tpu.memory_space<vmem>>, %arg13: memref<1x32xf32, #tpu.memory_space<vmem>>, %arg14: memref<1x32xf32, #tpu.memory_space<vmem>>) attributes {dimension_semantics = [#tpu.dimension_semantics<parallel>, #tpu.dimension_semantics<arbitrary>], iteration_bounds = array<i64: 2, 1>, scalar_prefetch = 0 : i64, scratch_operands = 2 : i64, tpu.core_type = #tpu.core_type<tc>, window_params = [{transform_indices = @transform_0, window_bounds = array<i64: 1, 1, 128, 128>}, {transform_indices = @transform_1, window_bounds = array<i64: 1, 1, 128, 128>}, {transform_indices = @transform_2, window_bounds = array<i64: 7, 1, 1, 128>}, {transform_indices = @transform_3, window_bounds = array<i64: 1, 1, 32>}, {transform_indices = @transform_4, window_bounds = array<i64: 1, 1, 32>}, {pipeline_mode = #tpu.pipeline_mode<synchronous>, transform_indices = @transform_5, window_bounds = array<i64: 32, 384>}, {pipeline_mode = #tpu.pipeline_mode<synchronous>, transform_indices = @transform_6, window_bounds = array<i64: 1, 128>}, {pipeline_mode = #tpu.pipeline_mode<synchronous>, transform_indices = @transform_7, window_bounds = array<i64: 1, 128>}, {pipeline_mode = #tpu.pipeline_mode<synchronous>, transform_indices = @transform_8, window_bounds = array<i64: 128, 128>}, {transform_indices = @transform_9, window_bounds = array<i64: 7, 1, 1, 32>}, {transform_indices = @transform_10, window_bounds = array<i64: 7, 1, 1, 128>}]} {
    %c0_i32 = arith.constant 0 : i32
    %0 = arith.cmpi eq, %arg1, %c0_i32 : i32
    %1 = arith.extui %0 : i1 to i32
    %c0_i32_0 = arith.constant 0 : i32
    %2 = arith.cmpi ne, %1, %c0_i32_0 : i32
    scf.if %2 {
      %c0_273 = arith.constant 0 : index
      %c0_274 = arith.constant 0 : index
      %c0_275 = arith.constant 0 : index
      %630 = vector.load %arg5[%c0_273, %c0_274, %c0_275] : memref<1x1x32xf32, #tpu.memory_space<vmem>>, vector<1x1x32xf32>
      %631 = vector.shape_cast %630 : vector<1x1x32xf32> to vector<1x32xf32>
      %c0_276 = arith.constant 0 : index
      %c0_277 = arith.constant 0 : index
      %632 = vector.load %arg13[%c0_276, %c0_277] : memref<1x32xf32, #tpu.memory_space<vmem>>, vector<1x32xf32>
      tpu.vector_store %arg13[%c0_276, %c0_277], %631 {strides = array<i32>} : memref<1x32xf32, #tpu.memory_space<vmem>>, vector<1x32xf32>,
      %c0_278 = arith.constant 0 : index
      %c0_279 = arith.constant 0 : index
      %c0_280 = arith.constant 0 : index
      %633 = vector.load %arg6[%c0_278, %c0_279, %c0_280] : memref<1x1x32xf32, #tpu.memory_space<vmem>>, vector<1x1x32xf32>
      %634 = vector.shape_cast %633 : vector<1x1x32xf32> to vector<1x32xf32>
      %c0_281 = arith.constant 0 : index
      %c0_282 = arith.constant 0 : index
      %635 = vector.load %arg14[%c0_281, %c0_282] : memref<1x32xf32, #tpu.memory_space<vmem>>, vector<1x32xf32>
      tpu.vector_store %arg14[%c0_281, %c0_282], %634 {strides = array<i32>} : memref<1x32xf32, #tpu.memory_space<vmem>>, vector<1x32xf32>,
    } else {
    }
    %c0 = arith.constant 0 : index
    %c0_1 = arith.constant 0 : index
    %3 = vector.load %arg13[%c0, %c0_1] : memref<1x32xf32, #tpu.memory_space<vmem>>, vector<1x32xf32>
    %c0_2 = arith.constant 0 : index
    %c0_3 = arith.constant 0 : index
    %4 = vector.load %arg14[%c0_2, %c0_3] : memref<1x32xf32, #tpu.memory_space<vmem>>, vector<1x32xf32>
    %c0_i32_4 = arith.constant 0 : i32
    %5 = arith.truncf %3 : vector<1x32xf32> to vector<1x32xbf16>
    %c0_5 = arith.constant 0 : index
    %c0_6 = arith.constant 0 : index
    %6 = vector.load %arg7[%c0_5, %c0_6] : memref<32x384xbf16, #tpu.memory_space<vmem>>, vector<32x384xbf16>
    %cst = arith.constant dense<0.000000e+00> : vector<1x384xf32>
    %7 = tpu.matmul %5, %6, %cst {dimension_numbers = #tpu.dot_dimension_numbers<[1], [0], [0], [1], [0, 0, 1, 1], [], []>} : vector<1x32xbf16>, vector<32x384xbf16>, vector<1x384xf32> -> vector<1x384xf32>
    %8 = vector.extract_strided_slice %7 {offsets = [0, 0], sizes = [1, 128], strides = [1, 1]} : vector<1x384xf32> to vector<1x128xf32>
    %9 = vector.extract_strided_slice %7 {offsets = [0, 128], sizes = [1, 128], strides = [1, 1]} : vector<1x384xf32> to vector<1x128xf32>
    %10 = vector.extract_strided_slice %7 {offsets = [0, 256], sizes = [1, 128], strides = [1, 1]} : vector<1x384xf32> to vector<1x128xf32>
    %c0_7 = arith.constant 0 : index
    %c0_8 = arith.constant 0 : index
    %c0_9 = arith.constant 0 : index
    %c0_10 = arith.constant 0 : index
    %11 = vector.load %arg3[%c0_7, %c0_8, %c0_9, %c0_10] : memref<1x1x128x128xbf16, #tpu.memory_space<vmem>>, vector<1x1x128x128xbf16>
    %12 = vector.shape_cast %11 : vector<1x1x128x128xbf16> to vector<1x128x128xbf16>
    %13 = vector.shape_cast %9 : vector<1x128xf32> to vector<1x1x128xf32>
    %14 = arith.extf %12 : vector<1x128x128xbf16> to vector<1x128x128xf32>
    %15 = vector.broadcast %13 : vector<1x1x128xf32> to vector<1x128x128xf32>
    %16 = arith.addf %14, %15 : vector<1x128x128xf32>
    %cst_11 = arith.constant 0.000000e+00 : f32
    %17 = vector.broadcast %cst_11 : f32 to vector<1x128x128xf32>
    %18 = arith.maximumf %16, %17 : vector<1x128x128xf32>
    %c0_12 = arith.constant 0 : index
    %c0_13 = arith.constant 0 : index
    %19 = vector.load %arg8[%c0_12, %c0_13] : memref<1x128xf32, #tpu.memory_space<vmem>>, vector<1x128xf32>
    %20 = vector.shape_cast %19 : vector<1x128xf32> to vector<1x1x128xf32>
    %21 = vector.broadcast %20 : vector<1x1x128xf32> to vector<1x128x128xf32>
    %22 = arith.mulf %18, %21 : vector<1x128x128xf32>
    %cst_14 = arith.constant dense<0.000000e+00> : vector<1x128xf32>
    %23 = vector.multi_reduction <add>, %22, %cst_14 [2] : vector<1x128x128xf32> to vector<1x128xf32>
    %24 = tpu.iota {dimensions = array<i32: 1>} : vector<1x128xi32>
    %c16_i32 = arith.constant 16 : i32
    %25 = vector.broadcast %c16_i32 : i32 to vector<1x128xi32>
    %26 = arith.cmpi slt, %24, %25 : vector<1x128xi32>
    %cst_15 = arith.constant -1.000000e+30 : f32
    %27 = vector.broadcast %cst_15 : f32 to vector<1x128xf32>
    %28 = arith.select %26, %23, %27 : vector<1x128xi1>, vector<1x128xf32>
    %cst_16 = arith.constant dense<0xFF800000> : vector<1xf32>
    %29 = vector.multi_reduction <maximumf>, %28, %cst_16 [1] : vector<1x128xf32> to vector<1xf32>
    %30 = vector.shape_cast %29 : vector<1xf32> to vector<1x1xf32>
    %31 = vector.broadcast %30 : vector<1x1xf32> to vector<1x128xf32>
    %32 = arith.subf %28, %31 : vector<1x128xf32>
    %33 = math.exp %32 : vector<1x128xf32>
    %cst_17 = arith.constant dense<0.000000e+00> : vector<1xf32>
    %34 = vector.multi_reduction <add>, %33, %cst_17 [1] : vector<1x128xf32> to vector<1xf32>
    %35 = vector.shape_cast %34 : vector<1xf32> to vector<1x1xf32>
    %36 = tpu.reciprocal %35 {approx = true} : vector<1x1xf32> -> vector<1x1xf32>
    %37 = vector.broadcast %36 : vector<1x1xf32> to vector<1x128xf32>
    %38 = arith.mulf %33, %37 : vector<1x128xf32>
    %39 = vector.shape_cast %38 : vector<1x128xf32> to vector<1x1x128xf32>
    %40 = arith.truncf %39 : vector<1x1x128xf32> to vector<1x1x128xbf16>
    %c0_18 = arith.constant 0 : index
    %c0_19 = arith.constant 0 : index
    %c0_20 = arith.constant 0 : index
    %c0_21 = arith.constant 0 : index
    %41 = vector.load %arg2[%c0_18, %c0_19, %c0_20, %c0_21] : memref<1x1x128x128xbf16, #tpu.memory_space<vmem>>, vector<1x1x128x128xbf16>
    %42 = vector.shape_cast %41 : vector<1x1x128x128xbf16> to vector<1x128x128xbf16>
    "tpu.trace_start"() <{level = 10 : i32, message = "bqn,bnc->bqc"}> : () -> ()
    %cst_22 = arith.constant dense<0.000000e+00> : vector<1x1x128xf32>
    %43 = tpu.matmul %40, %42, %cst_22 {dimension_numbers = #tpu.dot_dimension_numbers<[2], [1], [1], [2], [0, 0, 0, 1, 1, 2], [0], [0]>} : vector<1x1x128xbf16>, vector<1x128x128xbf16>, vector<1x1x128xf32> -> vector<1x1x128xf32>
    "tpu.trace_stop"() : () -> ()
    %44 = vector.shape_cast %43 : vector<1x1x128xf32> to vector<1x128xf32>
    %c0_23 = arith.constant 0 : index
    %c0_24 = arith.constant 0 : index
    %45 = vector.load %arg9[%c0_23, %c0_24] : memref<1x128xf32, #tpu.memory_space<vmem>>, vector<1x128xf32>
    %46 = arith.addf %10, %45 : vector<1x128xf32>
    %47 = arith.negf %46 : vector<1x128xf32>
    %48 = math.exp %47 : vector<1x128xf32>
    %cst_25 = arith.constant 1.000000e+00 : f32
    %49 = vector.broadcast %cst_25 : f32 to vector<1x128xf32>
    %50 = arith.addf %49, %48 : vector<1x128xf32>
    %51 = arith.divf %49, %50 : vector<1x128xf32>
    %52 = arith.mulf %51, %44 : vector<1x128xf32>
    %53 = arith.index_cast %c0_i32_4 : i32 to index
    %c0_26 = arith.constant 0 : index
    %c0_27 = arith.constant 0 : index
    %c0_28 = arith.constant 0 : index
    %54 = vector.load %arg4[%53, %c0_26, %c0_27, %c0_28] : memref<7x1x1x128xf32, #tpu.memory_space<vmem>>, vector<1x1x1x128xf32>
    %55 = vector.shape_cast %54 : vector<1x1x1x128xf32> to vector<1x128xf32>
    %56 = arith.addf %55, %8 : vector<1x128xf32>
    %57 = arith.truncf %52 : vector<1x128xf32> to vector<1x128xbf16>
    %c0_29 = arith.constant 0 : index
    %c0_30 = arith.constant 0 : index
    %58 = vector.load %arg10[%c0_29, %c0_30] : memref<128x128xbf16, #tpu.memory_space<vmem>>, vector<128x128xbf16>
    %cst_31 = arith.constant dense<0.000000e+00> : vector<1x128xf32>
    %59 = tpu.matmul %57, %58, %cst_31 {dimension_numbers = #tpu.dot_dimension_numbers<[1], [0], [0], [1], [0, 0, 1, 1], [], []>} : vector<1x128xbf16>, vector<128x128xbf16>, vector<1x128xf32> -> vector<1x128xf32>
    %60 = arith.addf %56, %59 : vector<1x128xf32>
    %61 = vector.extract_strided_slice %60 {offsets = [0, 0], sizes = [1, 32], strides = [1, 1]} : vector<1x128xf32> to vector<1x32xf32>
    %62 = arith.negf %61 : vector<1x32xf32>
    %63 = math.exp %62 : vector<1x32xf32>
    %cst_32 = arith.constant 1.000000e+00 : f32
    %64 = vector.broadcast %cst_32 : f32 to vector<1x32xf32>
    %65 = arith.addf %64, %63 : vector<1x32xf32>
    %66 = arith.divf %64, %65 : vector<1x32xf32>
    %67 = vector.extract_strided_slice %60 {offsets = [0, 32], sizes = [1, 32], strides = [1, 1]} : vector<1x128xf32> to vector<1x32xf32>
    %68 = arith.negf %67 : vector<1x32xf32>
    %69 = math.exp %68 : vector<1x32xf32>
    %cst_33 = arith.constant 1.000000e+00 : f32
    %70 = vector.broadcast %cst_33 : f32 to vector<1x32xf32>
    %71 = arith.addf %70, %69 : vector<1x32xf32>
    %72 = arith.divf %70, %71 : vector<1x32xf32>
    %73 = vector.extract_strided_slice %60 {offsets = [0, 64], sizes = [1, 32], strides = [1, 1]} : vector<1x128xf32> to vector<1x32xf32>
    %74 = math.tanh %73 : vector<1x32xf32>
    %75 = vector.extract_strided_slice %60 {offsets = [0, 96], sizes = [1, 32], strides = [1, 1]} : vector<1x128xf32> to vector<1x32xf32>
    %76 = arith.negf %75 : vector<1x32xf32>
    %77 = math.exp %76 : vector<1x32xf32>
    %cst_34 = arith.constant 1.000000e+00 : f32
    %78 = vector.broadcast %cst_34 : f32 to vector<1x32xf32>
    %79 = arith.addf %78, %77 : vector<1x32xf32>
    %80 = arith.divf %78, %79 : vector<1x32xf32>
    %81 = arith.mulf %72, %4 : vector<1x32xf32>
    %82 = arith.mulf %66, %74 : vector<1x32xf32>
    %83 = arith.addf %81, %82 : vector<1x32xf32>
    %84 = math.tanh %83 : vector<1x32xf32>
    %85 = arith.mulf %80, %84 : vector<1x32xf32>
    %86 = arith.index_cast %c0_i32_4 : i32 to index
    %c0_35 = arith.constant 0 : index
    %c0_36 = arith.constant 0 : index
    %c0_37 = arith.constant 0 : index
    %87 = vector.load %arg11[%86, %c0_35, %c0_36, %c0_37] : memref<7x1x1x32xf32, #tpu.memory_space<vmem>>, vector<1x1x1x32xf32>
    %88 = vector.shape_cast %87 : vector<1x1x1x32xf32> to vector<1x32xf32>
    %89 = vector.shape_cast %85 : vector<1x32xf32> to vector<1x1x1x32xf32>
    tpu.vector_store %arg11[%86, %c0_35, %c0_36, %c0_37], %89 {strides = array<i32>} : memref<7x1x1x32xf32, #tpu.memory_space<vmem>>, vector<1x1x1x32xf32>,
    %90 = arith.index_cast %c0_i32_4 : i32 to index
    %c0_38 = arith.constant 0 : index
    %c0_39 = arith.constant 0 : index
    %c0_40 = arith.constant 0 : index
    %91 = vector.load %arg12[%90, %c0_38, %c0_39, %c0_40] : memref<7x1x1x128xf32, #tpu.memory_space<vmem>>, vector<1x1x1x128xf32>
    %92 = vector.shape_cast %91 : vector<1x1x1x128xf32> to vector<1x128xf32>
    %93 = vector.shape_cast %38 : vector<1x128xf32> to vector<1x1x1x128xf32>
    tpu.vector_store %arg12[%90, %c0_38, %c0_39, %c0_40], %93 {strides = array<i32>} : memref<7x1x1x128xf32, #tpu.memory_space<vmem>>, vector<1x1x1x128xf32>,
    %c1_i32 = arith.constant 1 : i32
    %94 = arith.truncf %85 : vector<1x32xf32> to vector<1x32xbf16>
    %c0_41 = arith.constant 0 : index
    %c0_42 = arith.constant 0 : index
    %95 = vector.load %arg7[%c0_41, %c0_42] : memref<32x384xbf16, #tpu.memory_space<vmem>>, vector<32x384xbf16>
    %cst_43 = arith.constant dense<0.000000e+00> : vector<1x384xf32>
    %96 = tpu.matmul %94, %95, %cst_43 {dimension_numbers = #tpu.dot_dimension_numbers<[1], [0], [0], [1], [0, 0, 1, 1], [], []>} : vector<1x32xbf16>, vector<32x384xbf16>, vector<1x384xf32> -> vector<1x384xf32>
    %97 = vector.extract_strided_slice %96 {offsets = [0, 0], sizes = [1, 128], strides = [1, 1]} : vector<1x384xf32> to vector<1x128xf32>
    %98 = vector.extract_strided_slice %96 {offsets = [0, 128], sizes = [1, 128], strides = [1, 1]} : vector<1x384xf32> to vector<1x128xf32>
    %99 = vector.extract_strided_slice %96 {offsets = [0, 256], sizes = [1, 128], strides = [1, 1]} : vector<1x384xf32> to vector<1x128xf32>
    %c0_44 = arith.constant 0 : index
    %c0_45 = arith.constant 0 : index
    %c0_46 = arith.constant 0 : index
    %c0_47 = arith.constant 0 : index
    %100 = vector.load %arg3[%c0_44, %c0_45, %c0_46, %c0_47] : memref<1x1x128x128xbf16, #tpu.memory_space<vmem>>, vector<1x1x128x128xbf16>
    %101 = vector.shape_cast %100 : vector<1x1x128x128xbf16> to vector<1x128x128xbf16>
    %102 = vector.shape_cast %98 : vector<1x128xf32> to vector<1x1x128xf32>
    %103 = arith.extf %101 : vector<1x128x128xbf16> to vector<1x128x128xf32>
    %104 = vector.broadcast %102 : vector<1x1x128xf32> to vector<1x128x128xf32>
    %105 = arith.addf %103, %104 : vector<1x128x128xf32>
    %cst_48 = arith.constant 0.000000e+00 : f32
    %106 = vector.broadcast %cst_48 : f32 to vector<1x128x128xf32>
    %107 = arith.maximumf %105, %106 : vector<1x128x128xf32>
    %c0_49 = arith.constant 0 : index
    %c0_50 = arith.constant 0 : index
    %108 = vector.load %arg8[%c0_49, %c0_50] : memref<1x128xf32, #tpu.memory_space<vmem>>, vector<1x128xf32>
    %109 = vector.shape_cast %108 : vector<1x128xf32> to vector<1x1x128xf32>
    %110 = vector.broadcast %109 : vector<1x1x128xf32> to vector<1x128x128xf32>
    %111 = arith.mulf %107, %110 : vector<1x128x128xf32>
    %cst_51 = arith.constant dense<0.000000e+00> : vector<1x128xf32>
    %112 = vector.multi_reduction <add>, %111, %cst_51 [2] : vector<1x128x128xf32> to vector<1x128xf32>
    %113 = tpu.iota {dimensions = array<i32: 1>} : vector<1x128xi32>
    %c16_i32_52 = arith.constant 16 : i32
    %114 = vector.broadcast %c16_i32_52 : i32 to vector<1x128xi32>
    %115 = arith.cmpi slt, %113, %114 : vector<1x128xi32>
    %cst_53 = arith.constant -1.000000e+30 : f32
    %116 = vector.broadcast %cst_53 : f32 to vector<1x128xf32>
    %117 = arith.select %115, %112, %116 : vector<1x128xi1>, vector<1x128xf32>
    %cst_54 = arith.constant dense<0xFF800000> : vector<1xf32>
    %118 = vector.multi_reduction <maximumf>, %117, %cst_54 [1] : vector<1x128xf32> to vector<1xf32>
    %119 = vector.shape_cast %118 : vector<1xf32> to vector<1x1xf32>
    %120 = vector.broadcast %119 : vector<1x1xf32> to vector<1x128xf32>
    %121 = arith.subf %117, %120 : vector<1x128xf32>
    %122 = math.exp %121 : vector<1x128xf32>
    %cst_55 = arith.constant dense<0.000000e+00> : vector<1xf32>
    %123 = vector.multi_reduction <add>, %122, %cst_55 [1] : vector<1x128xf32> to vector<1xf32>
    %124 = vector.shape_cast %123 : vector<1xf32> to vector<1x1xf32>
    %125 = tpu.reciprocal %124 {approx = true} : vector<1x1xf32> -> vector<1x1xf32>
    %126 = vector.broadcast %125 : vector<1x1xf32> to vector<1x128xf32>
    %127 = arith.mulf %122, %126 : vector<1x128xf32>
    %128 = vector.shape_cast %127 : vector<1x128xf32> to vector<1x1x128xf32>
    %129 = arith.truncf %128 : vector<1x1x128xf32> to vector<1x1x128xbf16>
    %c0_56 = arith.constant 0 : index
    %c0_57 = arith.constant 0 : index
    %c0_58 = arith.constant 0 : index
    %c0_59 = arith.constant 0 : index
    %130 = vector.load %arg2[%c0_56, %c0_57, %c0_58, %c0_59] : memref<1x1x128x128xbf16, #tpu.memory_space<vmem>>, vector<1x1x128x128xbf16>
    %131 = vector.shape_cast %130 : vector<1x1x128x128xbf16> to vector<1x128x128xbf16>
    "tpu.trace_start"() <{level = 10 : i32, message = "bqn,bnc->bqc"}> : () -> ()
    %cst_60 = arith.constant dense<0.000000e+00> : vector<1x1x128xf32>
    %132 = tpu.matmul %129, %131, %cst_60 {dimension_numbers = #tpu.dot_dimension_numbers<[2], [1], [1], [2], [0, 0, 0, 1, 1, 2], [0], [0]>} : vector<1x1x128xbf16>, vector<1x128x128xbf16>, vector<1x1x128xf32> -> vector<1x1x128xf32>
    "tpu.trace_stop"() : () -> ()
    %133 = vector.shape_cast %132 : vector<1x1x128xf32> to vector<1x128xf32>
    %c0_61 = arith.constant 0 : index
    %c0_62 = arith.constant 0 : index
    %134 = vector.load %arg9[%c0_61, %c0_62] : memref<1x128xf32, #tpu.memory_space<vmem>>, vector<1x128xf32>
    %135 = arith.addf %99, %134 : vector<1x128xf32>
    %136 = arith.negf %135 : vector<1x128xf32>
    %137 = math.exp %136 : vector<1x128xf32>
    %cst_63 = arith.constant 1.000000e+00 : f32
    %138 = vector.broadcast %cst_63 : f32 to vector<1x128xf32>
    %139 = arith.addf %138, %137 : vector<1x128xf32>
    %140 = arith.divf %138, %139 : vector<1x128xf32>
    %141 = arith.mulf %140, %133 : vector<1x128xf32>
    %142 = arith.index_cast %c1_i32 : i32 to index
    %c0_64 = arith.constant 0 : index
    %c0_65 = arith.constant 0 : index
    %c0_66 = arith.constant 0 : index
    %143 = vector.load %arg4[%142, %c0_64, %c0_65, %c0_66] : memref<7x1x1x128xf32, #tpu.memory_space<vmem>>, vector<1x1x1x128xf32>
    %144 = vector.shape_cast %143 : vector<1x1x1x128xf32> to vector<1x128xf32>
    %145 = arith.addf %144, %97 : vector<1x128xf32>
    %146 = arith.truncf %141 : vector<1x128xf32> to vector<1x128xbf16>
    %c0_67 = arith.constant 0 : index
    %c0_68 = arith.constant 0 : index
    %147 = vector.load %arg10[%c0_67, %c0_68] : memref<128x128xbf16, #tpu.memory_space<vmem>>, vector<128x128xbf16>
    %cst_69 = arith.constant dense<0.000000e+00> : vector<1x128xf32>
    %148 = tpu.matmul %146, %147, %cst_69 {dimension_numbers = #tpu.dot_dimension_numbers<[1], [0], [0], [1], [0, 0, 1, 1], [], []>} : vector<1x128xbf16>, vector<128x128xbf16>, vector<1x128xf32> -> vector<1x128xf32>
    %149 = arith.addf %145, %148 : vector<1x128xf32>
    %150 = vector.extract_strided_slice %149 {offsets = [0, 0], sizes = [1, 32], strides = [1, 1]} : vector<1x128xf32> to vector<1x32xf32>
    %151 = arith.negf %150 : vector<1x32xf32>
    %152 = math.exp %151 : vector<1x32xf32>
    %cst_70 = arith.constant 1.000000e+00 : f32
    %153 = vector.broadcast %cst_70 : f32 to vector<1x32xf32>
    %154 = arith.addf %153, %152 : vector<1x32xf32>
    %155 = arith.divf %153, %154 : vector<1x32xf32>
    %156 = vector.extract_strided_slice %149 {offsets = [0, 32], sizes = [1, 32], strides = [1, 1]} : vector<1x128xf32> to vector<1x32xf32>
    %157 = arith.negf %156 : vector<1x32xf32>
    %158 = math.exp %157 : vector<1x32xf32>
    %cst_71 = arith.constant 1.000000e+00 : f32
    %159 = vector.broadcast %cst_71 : f32 to vector<1x32xf32>
    %160 = arith.addf %159, %158 : vector<1x32xf32>
    %161 = arith.divf %159, %160 : vector<1x32xf32>
    %162 = vector.extract_strided_slice %149 {offsets = [0, 64], sizes = [1, 32], strides = [1, 1]} : vector<1x128xf32> to vector<1x32xf32>
    %163 = math.tanh %162 : vector<1x32xf32>
    %164 = vector.extract_strided_slice %149 {offsets = [0, 96], sizes = [1, 32], strides = [1, 1]} : vector<1x128xf32> to vector<1x32xf32>
    %165 = arith.negf %164 : vector<1x32xf32>
    %166 = math.exp %165 : vector<1x32xf32>
    %cst_72 = arith.constant 1.000000e+00 : f32
    %167 = vector.broadcast %cst_72 : f32 to vector<1x32xf32>
    %168 = arith.addf %167, %166 : vector<1x32xf32>
    %169 = arith.divf %167, %168 : vector<1x32xf32>
    %170 = arith.mulf %161, %83 : vector<1x32xf32>
    %171 = arith.mulf %155, %163 : vector<1x32xf32>
    %172 = arith.addf %170, %171 : vector<1x32xf32>
    %173 = math.tanh %172 : vector<1x32xf32>
    %174 = arith.mulf %169, %173 : vector<1x32xf32>
    %175 = arith.index_cast %c1_i32 : i32 to index
    %c0_73 = arith.constant 0 : index
    %c0_74 = arith.constant 0 : index
    %c0_75 = arith.constant 0 : index
    %176 = vector.load %arg11[%175, %c0_73, %c0_74, %c0_75] : memref<7x1x1x32xf32, #tpu.memory_space<vmem>>, vector<1x1x1x32xf32>
    %177 = vector.shape_cast %176 : vector<1x1x1x32xf32> to vector<1x32xf32>
    %178 = vector.shape_cast %174 : vector<1x32xf32> to vector<1x1x1x32xf32>
    tpu.vector_store %arg11[%175, %c0_73, %c0_74, %c0_75], %178 {strides = array<i32>} : memref<7x1x1x32xf32, #tpu.memory_space<vmem>>, vector<1x1x1x32xf32>,
    %179 = arith.index_cast %c1_i32 : i32 to index
    %c0_76 = arith.constant 0 : index
    %c0_77 = arith.constant 0 : index
    %c0_78 = arith.constant 0 : index
    %180 = vector.load %arg12[%179, %c0_76, %c0_77, %c0_78] : memref<7x1x1x128xf32, #tpu.memory_space<vmem>>, vector<1x1x1x128xf32>
    %181 = vector.shape_cast %180 : vector<1x1x1x128xf32> to vector<1x128xf32>
    %182 = vector.shape_cast %127 : vector<1x128xf32> to vector<1x1x1x128xf32>
    tpu.vector_store %arg12[%179, %c0_76, %c0_77, %c0_78], %182 {strides = array<i32>} : memref<7x1x1x128xf32, #tpu.memory_space<vmem>>, vector<1x1x1x128xf32>,
    %c2_i32 = arith.constant 2 : i32
    %183 = arith.truncf %174 : vector<1x32xf32> to vector<1x32xbf16>
    %c0_79 = arith.constant 0 : index
    %c0_80 = arith.constant 0 : index
    %184 = vector.load %arg7[%c0_79, %c0_80] : memref<32x384xbf16, #tpu.memory_space<vmem>>, vector<32x384xbf16>
    %cst_81 = arith.constant dense<0.000000e+00> : vector<1x384xf32>
    %185 = tpu.matmul %183, %184, %cst_81 {dimension_numbers = #tpu.dot_dimension_numbers<[1], [0], [0], [1], [0, 0, 1, 1], [], []>} : vector<1x32xbf16>, vector<32x384xbf16>, vector<1x384xf32> -> vector<1x384xf32>
    %186 = vector.extract_strided_slice %185 {offsets = [0, 0], sizes = [1, 128], strides = [1, 1]} : vector<1x384xf32> to vector<1x128xf32>
    %187 = vector.extract_strided_slice %185 {offsets = [0, 128], sizes = [1, 128], strides = [1, 1]} : vector<1x384xf32> to vector<1x128xf32>
    %188 = vector.extract_strided_slice %185 {offsets = [0, 256], sizes = [1, 128], strides = [1, 1]} : vector<1x384xf32> to vector<1x128xf32>
    %c0_82 = arith.constant 0 : index
    %c0_83 = arith.constant 0 : index
    %c0_84 = arith.constant 0 : index
    %c0_85 = arith.constant 0 : index
    %189 = vector.load %arg3[%c0_82, %c0_83, %c0_84, %c0_85] : memref<1x1x128x128xbf16, #tpu.memory_space<vmem>>, vector<1x1x128x128xbf16>
    %190 = vector.shape_cast %189 : vector<1x1x128x128xbf16> to vector<1x128x128xbf16>
    %191 = vector.shape_cast %187 : vector<1x128xf32> to vector<1x1x128xf32>
    %192 = arith.extf %190 : vector<1x128x128xbf16> to vector<1x128x128xf32>
    %193 = vector.broadcast %191 : vector<1x1x128xf32> to vector<1x128x128xf32>
    %194 = arith.addf %192, %193 : vector<1x128x128xf32>
    %cst_86 = arith.constant 0.000000e+00 : f32
    %195 = vector.broadcast %cst_86 : f32 to vector<1x128x128xf32>
    %196 = arith.maximumf %194, %195 : vector<1x128x128xf32>
    %c0_87 = arith.constant 0 : index
    %c0_88 = arith.constant 0 : index
    %197 = vector.load %arg8[%c0_87, %c0_88] : memref<1x128xf32, #tpu.memory_space<vmem>>, vector<1x128xf32>
    %198 = vector.shape_cast %197 : vector<1x128xf32> to vector<1x1x128xf32>
    %199 = vector.broadcast %198 : vector<1x1x128xf32> to vector<1x128x128xf32>
    %200 = arith.mulf %196, %199 : vector<1x128x128xf32>
    %cst_89 = arith.constant dense<0.000000e+00> : vector<1x128xf32>
    %201 = vector.multi_reduction <add>, %200, %cst_89 [2] : vector<1x128x128xf32> to vector<1x128xf32>
    %202 = tpu.iota {dimensions = array<i32: 1>} : vector<1x128xi32>
    %c16_i32_90 = arith.constant 16 : i32
    %203 = vector.broadcast %c16_i32_90 : i32 to vector<1x128xi32>
    %204 = arith.cmpi slt, %202, %203 : vector<1x128xi32>
    %cst_91 = arith.constant -1.000000e+30 : f32
    %205 = vector.broadcast %cst_91 : f32 to vector<1x128xf32>
    %206 = arith.select %204, %201, %205 : vector<1x128xi1>, vector<1x128xf32>
    %cst_92 = arith.constant dense<0xFF800000> : vector<1xf32>
    %207 = vector.multi_reduction <maximumf>, %206, %cst_92 [1] : vector<1x128xf32> to vector<1xf32>
    %208 = vector.shape_cast %207 : vector<1xf32> to vector<1x1xf32>
    %209 = vector.broadcast %208 : vector<1x1xf32> to vector<1x128xf32>
    %210 = arith.subf %206, %209 : vector<1x128xf32>
    %211 = math.exp %210 : vector<1x128xf32>
    %cst_93 = arith.constant dense<0.000000e+00> : vector<1xf32>
    %212 = vector.multi_reduction <add>, %211, %cst_93 [1] : vector<1x128xf32> to vector<1xf32>
    %213 = vector.shape_cast %212 : vector<1xf32> to vector<1x1xf32>
    %214 = tpu.reciprocal %213 {approx = true} : vector<1x1xf32> -> vector<1x1xf32>
    %215 = vector.broadcast %214 : vector<1x1xf32> to vector<1x128xf32>
    %216 = arith.mulf %211, %215 : vector<1x128xf32>
    %217 = vector.shape_cast %216 : vector<1x128xf32> to vector<1x1x128xf32>
    %218 = arith.truncf %217 : vector<1x1x128xf32> to vector<1x1x128xbf16>
    %c0_94 = arith.constant 0 : index
    %c0_95 = arith.constant 0 : index
    %c0_96 = arith.constant 0 : index
    %c0_97 = arith.constant 0 : index
    %219 = vector.load %arg2[%c0_94, %c0_95, %c0_96, %c0_97] : memref<1x1x128x128xbf16, #tpu.memory_space<vmem>>, vector<1x1x128x128xbf16>
    %220 = vector.shape_cast %219 : vector<1x1x128x128xbf16> to vector<1x128x128xbf16>
    "tpu.trace_start"() <{level = 10 : i32, message = "bqn,bnc->bqc"}> : () -> ()
    %cst_98 = arith.constant dense<0.000000e+00> : vector<1x1x128xf32>
    %221 = tpu.matmul %218, %220, %cst_98 {dimension_numbers = #tpu.dot_dimension_numbers<[2], [1], [1], [2], [0, 0, 0, 1, 1, 2], [0], [0]>} : vector<1x1x128xbf16>, vector<1x128x128xbf16>, vector<1x1x128xf32> -> vector<1x1x128xf32>
    "tpu.trace_stop"() : () -> ()
    %222 = vector.shape_cast %221 : vector<1x1x128xf32> to vector<1x128xf32>
    %c0_99 = arith.constant 0 : index
    %c0_100 = arith.constant 0 : index
    %223 = vector.load %arg9[%c0_99, %c0_100] : memref<1x128xf32, #tpu.memory_space<vmem>>, vector<1x128xf32>
    %224 = arith.addf %188, %223 : vector<1x128xf32>
    %225 = arith.negf %224 : vector<1x128xf32>
    %226 = math.exp %225 : vector<1x128xf32>
    %cst_101 = arith.constant 1.000000e+00 : f32
    %227 = vector.broadcast %cst_101 : f32 to vector<1x128xf32>
    %228 = arith.addf %227, %226 : vector<1x128xf32>
    %229 = arith.divf %227, %228 : vector<1x128xf32>
    %230 = arith.mulf %229, %222 : vector<1x128xf32>
    %231 = arith.index_cast %c2_i32 : i32 to index
    %c0_102 = arith.constant 0 : index
    %c0_103 = arith.constant 0 : index
    %c0_104 = arith.constant 0 : index
    %232 = vector.load %arg4[%231, %c0_102, %c0_103, %c0_104] : memref<7x1x1x128xf32, #tpu.memory_space<vmem>>, vector<1x1x1x128xf32>
    %233 = vector.shape_cast %232 : vector<1x1x1x128xf32> to vector<1x128xf32>
    %234 = arith.addf %233, %186 : vector<1x128xf32>
    %235 = arith.truncf %230 : vector<1x128xf32> to vector<1x128xbf16>
    %c0_105 = arith.constant 0 : index
    %c0_106 = arith.constant 0 : index
    %236 = vector.load %arg10[%c0_105, %c0_106] : memref<128x128xbf16, #tpu.memory_space<vmem>>, vector<128x128xbf16>
    %cst_107 = arith.constant dense<0.000000e+00> : vector<1x128xf32>
    %237 = tpu.matmul %235, %236, %cst_107 {dimension_numbers = #tpu.dot_dimension_numbers<[1], [0], [0], [1], [0, 0, 1, 1], [], []>} : vector<1x128xbf16>, vector<128x128xbf16>, vector<1x128xf32> -> vector<1x128xf32>
    %238 = arith.addf %234, %237 : vector<1x128xf32>
    %239 = vector.extract_strided_slice %238 {offsets = [0, 0], sizes = [1, 32], strides = [1, 1]} : vector<1x128xf32> to vector<1x32xf32>
    %240 = arith.negf %239 : vector<1x32xf32>
    %241 = math.exp %240 : vector<1x32xf32>
    %cst_108 = arith.constant 1.000000e+00 : f32
    %242 = vector.broadcast %cst_108 : f32 to vector<1x32xf32>
    %243 = arith.addf %242, %241 : vector<1x32xf32>
    %244 = arith.divf %242, %243 : vector<1x32xf32>
    %245 = vector.extract_strided_slice %238 {offsets = [0, 32], sizes = [1, 32], strides = [1, 1]} : vector<1x128xf32> to vector<1x32xf32>
    %246 = arith.negf %245 : vector<1x32xf32>
    %247 = math.exp %246 : vector<1x32xf32>
    %cst_109 = arith.constant 1.000000e+00 : f32
    %248 = vector.broadcast %cst_109 : f32 to vector<1x32xf32>
    %249 = arith.addf %248, %247 : vector<1x32xf32>
    %250 = arith.divf %248, %249 : vector<1x32xf32>
    %251 = vector.extract_strided_slice %238 {offsets = [0, 64], sizes = [1, 32], strides = [1, 1]} : vector<1x128xf32> to vector<1x32xf32>
    %252 = math.tanh %251 : vector<1x32xf32>
    %253 = vector.extract_strided_slice %238 {offsets = [0, 96], sizes = [1, 32], strides = [1, 1]} : vector<1x128xf32> to vector<1x32xf32>
    %254 = arith.negf %253 : vector<1x32xf32>
    %255 = math.exp %254 : vector<1x32xf32>
    %cst_110 = arith.constant 1.000000e+00 : f32
    %256 = vector.broadcast %cst_110 : f32 to vector<1x32xf32>
    %257 = arith.addf %256, %255 : vector<1x32xf32>
    %258 = arith.divf %256, %257 : vector<1x32xf32>
    %259 = arith.mulf %250, %172 : vector<1x32xf32>
    %260 = arith.mulf %244, %252 : vector<1x32xf32>
    %261 = arith.addf %259, %260 : vector<1x32xf32>
    %262 = math.tanh %261 : vector<1x32xf32>
    %263 = arith.mulf %258, %262 : vector<1x32xf32>
    %264 = arith.index_cast %c2_i32 : i32 to index
    %c0_111 = arith.constant 0 : index
    %c0_112 = arith.constant 0 : index
    %c0_113 = arith.constant 0 : index
    %265 = vector.load %arg11[%264, %c0_111, %c0_112, %c0_113] : memref<7x1x1x32xf32, #tpu.memory_space<vmem>>, vector<1x1x1x32xf32>
    %266 = vector.shape_cast %265 : vector<1x1x1x32xf32> to vector<1x32xf32>
    %267 = vector.shape_cast %263 : vector<1x32xf32> to vector<1x1x1x32xf32>
    tpu.vector_store %arg11[%264, %c0_111, %c0_112, %c0_113], %267 {strides = array<i32>} : memref<7x1x1x32xf32, #tpu.memory_space<vmem>>, vector<1x1x1x32xf32>,
    %268 = arith.index_cast %c2_i32 : i32 to index
    %c0_114 = arith.constant 0 : index
    %c0_115 = arith.constant 0 : index
    %c0_116 = arith.constant 0 : index
    %269 = vector.load %arg12[%268, %c0_114, %c0_115, %c0_116] : memref<7x1x1x128xf32, #tpu.memory_space<vmem>>, vector<1x1x1x128xf32>
    %270 = vector.shape_cast %269 : vector<1x1x1x128xf32> to vector<1x128xf32>
    %271 = vector.shape_cast %216 : vector<1x128xf32> to vector<1x1x1x128xf32>
    tpu.vector_store %arg12[%268, %c0_114, %c0_115, %c0_116], %271 {strides = array<i32>} : memref<7x1x1x128xf32, #tpu.memory_space<vmem>>, vector<1x1x1x128xf32>,
    %c3_i32 = arith.constant 3 : i32
    %272 = arith.truncf %263 : vector<1x32xf32> to vector<1x32xbf16>
    %c0_117 = arith.constant 0 : index
    %c0_118 = arith.constant 0 : index
    %273 = vector.load %arg7[%c0_117, %c0_118] : memref<32x384xbf16, #tpu.memory_space<vmem>>, vector<32x384xbf16>
    %cst_119 = arith.constant dense<0.000000e+00> : vector<1x384xf32>
    %274 = tpu.matmul %272, %273, %cst_119 {dimension_numbers = #tpu.dot_dimension_numbers<[1], [0], [0], [1], [0, 0, 1, 1], [], []>} : vector<1x32xbf16>, vector<32x384xbf16>, vector<1x384xf32> -> vector<1x384xf32>
    %275 = vector.extract_strided_slice %274 {offsets = [0, 0], sizes = [1, 128], strides = [1, 1]} : vector<1x384xf32> to vector<1x128xf32>
    %276 = vector.extract_strided_slice %274 {offsets = [0, 128], sizes = [1, 128], strides = [1, 1]} : vector<1x384xf32> to vector<1x128xf32>
    %277 = vector.extract_strided_slice %274 {offsets = [0, 256], sizes = [1, 128], strides = [1, 1]} : vector<1x384xf32> to vector<1x128xf32>
    %c0_120 = arith.constant 0 : index
    %c0_121 = arith.constant 0 : index
    %c0_122 = arith.constant 0 : index
    %c0_123 = arith.constant 0 : index
    %278 = vector.load %arg3[%c0_120, %c0_121, %c0_122, %c0_123] : memref<1x1x128x128xbf16, #tpu.memory_space<vmem>>, vector<1x1x128x128xbf16>
    %279 = vector.shape_cast %278 : vector<1x1x128x128xbf16> to vector<1x128x128xbf16>
    %280 = vector.shape_cast %276 : vector<1x128xf32> to vector<1x1x128xf32>
    %281 = arith.extf %279 : vector<1x128x128xbf16> to vector<1x128x128xf32>
    %282 = vector.broadcast %280 : vector<1x1x128xf32> to vector<1x128x128xf32>
    %283 = arith.addf %281, %282 : vector<1x128x128xf32>
    %cst_124 = arith.constant 0.000000e+00 : f32
    %284 = vector.broadcast %cst_124 : f32 to vector<1x128x128xf32>
    %285 = arith.maximumf %283, %284 : vector<1x128x128xf32>
    %c0_125 = arith.constant 0 : index
    %c0_126 = arith.constant 0 : index
    %286 = vector.load %arg8[%c0_125, %c0_126] : memref<1x128xf32, #tpu.memory_space<vmem>>, vector<1x128xf32>
    %287 = vector.shape_cast %286 : vector<1x128xf32> to vector<1x1x128xf32>
    %288 = vector.broadcast %287 : vector<1x1x128xf32> to vector<1x128x128xf32>
    %289 = arith.mulf %285, %288 : vector<1x128x128xf32>
    %cst_127 = arith.constant dense<0.000000e+00> : vector<1x128xf32>
    %290 = vector.multi_reduction <add>, %289, %cst_127 [2] : vector<1x128x128xf32> to vector<1x128xf32>
    %291 = tpu.iota {dimensions = array<i32: 1>} : vector<1x128xi32>
    %c16_i32_128 = arith.constant 16 : i32
    %292 = vector.broadcast %c16_i32_128 : i32 to vector<1x128xi32>
    %293 = arith.cmpi slt, %291, %292 : vector<1x128xi32>
    %cst_129 = arith.constant -1.000000e+30 : f32
    %294 = vector.broadcast %cst_129 : f32 to vector<1x128xf32>
    %295 = arith.select %293, %290, %294 : vector<1x128xi1>, vector<1x128xf32>
    %cst_130 = arith.constant dense<0xFF800000> : vector<1xf32>
    %296 = vector.multi_reduction <maximumf>, %295, %cst_130 [1] : vector<1x128xf32> to vector<1xf32>
    %297 = vector.shape_cast %296 : vector<1xf32> to vector<1x1xf32>
    %298 = vector.broadcast %297 : vector<1x1xf32> to vector<1x128xf32>
    %299 = arith.subf %295, %298 : vector<1x128xf32>
    %300 = math.exp %299 : vector<1x128xf32>
    %cst_131 = arith.constant dense<0.000000e+00> : vector<1xf32>
    %301 = vector.multi_reduction <add>, %300, %cst_131 [1] : vector<1x128xf32> to vector<1xf32>
    %302 = vector.shape_cast %301 : vector<1xf32> to vector<1x1xf32>
    %303 = tpu.reciprocal %302 {approx = true} : vector<1x1xf32> -> vector<1x1xf32>
    %304 = vector.broadcast %303 : vector<1x1xf32> to vector<1x128xf32>
    %305 = arith.mulf %300, %304 : vector<1x128xf32>
    %306 = vector.shape_cast %305 : vector<1x128xf32> to vector<1x1x128xf32>
    %307 = arith.truncf %306 : vector<1x1x128xf32> to vector<1x1x128xbf16>
    %c0_132 = arith.constant 0 : index
    %c0_133 = arith.constant 0 : index
    %c0_134 = arith.constant 0 : index
    %c0_135 = arith.constant 0 : index
    %308 = vector.load %arg2[%c0_132, %c0_133, %c0_134, %c0_135] : memref<1x1x128x128xbf16, #tpu.memory_space<vmem>>, vector<1x1x128x128xbf16>
    %309 = vector.shape_cast %308 : vector<1x1x128x128xbf16> to vector<1x128x128xbf16>
    "tpu.trace_start"() <{level = 10 : i32, message = "bqn,bnc->bqc"}> : () -> ()
    %cst_136 = arith.constant dense<0.000000e+00> : vector<1x1x128xf32>
    %310 = tpu.matmul %307, %309, %cst_136 {dimension_numbers = #tpu.dot_dimension_numbers<[2], [1], [1], [2], [0, 0, 0, 1, 1, 2], [0], [0]>} : vector<1x1x128xbf16>, vector<1x128x128xbf16>, vector<1x1x128xf32> -> vector<1x1x128xf32>
    "tpu.trace_stop"() : () -> ()
    %311 = vector.shape_cast %310 : vector<1x1x128xf32> to vector<1x128xf32>
    %c0_137 = arith.constant 0 : index
    %c0_138 = arith.constant 0 : index
    %312 = vector.load %arg9[%c0_137, %c0_138] : memref<1x128xf32, #tpu.memory_space<vmem>>, vector<1x128xf32>
    %313 = arith.addf %277, %312 : vector<1x128xf32>
    %314 = arith.negf %313 : vector<1x128xf32>
    %315 = math.exp %314 : vector<1x128xf32>
    %cst_139 = arith.constant 1.000000e+00 : f32
    %316 = vector.broadcast %cst_139 : f32 to vector<1x128xf32>
    %317 = arith.addf %316, %315 : vector<1x128xf32>
    %318 = arith.divf %316, %317 : vector<1x128xf32>
    %319 = arith.mulf %318, %311 : vector<1x128xf32>
    %320 = arith.index_cast %c3_i32 : i32 to index
    %c0_140 = arith.constant 0 : index
    %c0_141 = arith.constant 0 : index
    %c0_142 = arith.constant 0 : index
    %321 = vector.load %arg4[%320, %c0_140, %c0_141, %c0_142] : memref<7x1x1x128xf32, #tpu.memory_space<vmem>>, vector<1x1x1x128xf32>
    %322 = vector.shape_cast %321 : vector<1x1x1x128xf32> to vector<1x128xf32>
    %323 = arith.addf %322, %275 : vector<1x128xf32>
    %324 = arith.truncf %319 : vector<1x128xf32> to vector<1x128xbf16>
    %c0_143 = arith.constant 0 : index
    %c0_144 = arith.constant 0 : index
    %325 = vector.load %arg10[%c0_143, %c0_144] : memref<128x128xbf16, #tpu.memory_space<vmem>>, vector<128x128xbf16>
    %cst_145 = arith.constant dense<0.000000e+00> : vector<1x128xf32>
    %326 = tpu.matmul %324, %325, %cst_145 {dimension_numbers = #tpu.dot_dimension_numbers<[1], [0], [0], [1], [0, 0, 1, 1], [], []>} : vector<1x128xbf16>, vector<128x128xbf16>, vector<1x128xf32> -> vector<1x128xf32>
    %327 = arith.addf %323, %326 : vector<1x128xf32>
    %328 = vector.extract_strided_slice %327 {offsets = [0, 0], sizes = [1, 32], strides = [1, 1]} : vector<1x128xf32> to vector<1x32xf32>
    %329 = arith.negf %328 : vector<1x32xf32>
    %330 = math.exp %329 : vector<1x32xf32>
    %cst_146 = arith.constant 1.000000e+00 : f32
    %331 = vector.broadcast %cst_146 : f32 to vector<1x32xf32>
    %332 = arith.addf %331, %330 : vector<1x32xf32>
    %333 = arith.divf %331, %332 : vector<1x32xf32>
    %334 = vector.extract_strided_slice %327 {offsets = [0, 32], sizes = [1, 32], strides = [1, 1]} : vector<1x128xf32> to vector<1x32xf32>
    %335 = arith.negf %334 : vector<1x32xf32>
    %336 = math.exp %335 : vector<1x32xf32>
    %cst_147 = arith.constant 1.000000e+00 : f32
    %337 = vector.broadcast %cst_147 : f32 to vector<1x32xf32>
    %338 = arith.addf %337, %336 : vector<1x32xf32>
    %339 = arith.divf %337, %338 : vector<1x32xf32>
    %340 = vector.extract_strided_slice %327 {offsets = [0, 64], sizes = [1, 32], strides = [1, 1]} : vector<1x128xf32> to vector<1x32xf32>
    %341 = math.tanh %340 : vector<1x32xf32>
    %342 = vector.extract_strided_slice %327 {offsets = [0, 96], sizes = [1, 32], strides = [1, 1]} : vector<1x128xf32> to vector<1x32xf32>
    %343 = arith.negf %342 : vector<1x32xf32>
    %344 = math.exp %343 : vector<1x32xf32>
    %cst_148 = arith.constant 1.000000e+00 : f32
    %345 = vector.broadcast %cst_148 : f32 to vector<1x32xf32>
    %346 = arith.addf %345, %344 : vector<1x32xf32>
    %347 = arith.divf %345, %346 : vector<1x32xf32>
    %348 = arith.mulf %339, %261 : vector<1x32xf32>
    %349 = arith.mulf %333, %341 : vector<1x32xf32>
    %350 = arith.addf %348, %349 : vector<1x32xf32>
    %351 = math.tanh %350 : vector<1x32xf32>
    %352 = arith.mulf %347, %351 : vector<1x32xf32>
    %353 = arith.index_cast %c3_i32 : i32 to index
    %c0_149 = arith.constant 0 : index
    %c0_150 = arith.constant 0 : index
    %c0_151 = arith.constant 0 : index
    %354 = vector.load %arg11[%353, %c0_149, %c0_150, %c0_151] : memref<7x1x1x32xf32, #tpu.memory_space<vmem>>, vector<1x1x1x32xf32>
    %355 = vector.shape_cast %354 : vector<1x1x1x32xf32> to vector<1x32xf32>
    %356 = vector.shape_cast %352 : vector<1x32xf32> to vector<1x1x1x32xf32>
    tpu.vector_store %arg11[%353, %c0_149, %c0_150, %c0_151], %356 {strides = array<i32>} : memref<7x1x1x32xf32, #tpu.memory_space<vmem>>, vector<1x1x1x32xf32>,
    %357 = arith.index_cast %c3_i32 : i32 to index
    %c0_152 = arith.constant 0 : index
    %c0_153 = arith.constant 0 : index
    %c0_154 = arith.constant 0 : index
    %358 = vector.load %arg12[%357, %c0_152, %c0_153, %c0_154] : memref<7x1x1x128xf32, #tpu.memory_space<vmem>>, vector<1x1x1x128xf32>
    %359 = vector.shape_cast %358 : vector<1x1x1x128xf32> to vector<1x128xf32>
    %360 = vector.shape_cast %305 : vector<1x128xf32> to vector<1x1x1x128xf32>
    tpu.vector_store %arg12[%357, %c0_152, %c0_153, %c0_154], %360 {strides = array<i32>} : memref<7x1x1x128xf32, #tpu.memory_space<vmem>>, vector<1x1x1x128xf32>,
    %c4_i32 = arith.constant 4 : i32
    %361 = arith.truncf %352 : vector<1x32xf32> to vector<1x32xbf16>
    %c0_155 = arith.constant 0 : index
    %c0_156 = arith.constant 0 : index
    %362 = vector.load %arg7[%c0_155, %c0_156] : memref<32x384xbf16, #tpu.memory_space<vmem>>, vector<32x384xbf16>
    %cst_157 = arith.constant dense<0.000000e+00> : vector<1x384xf32>
    %363 = tpu.matmul %361, %362, %cst_157 {dimension_numbers = #tpu.dot_dimension_numbers<[1], [0], [0], [1], [0, 0, 1, 1], [], []>} : vector<1x32xbf16>, vector<32x384xbf16>, vector<1x384xf32> -> vector<1x384xf32>
    %364 = vector.extract_strided_slice %363 {offsets = [0, 0], sizes = [1, 128], strides = [1, 1]} : vector<1x384xf32> to vector<1x128xf32>
    %365 = vector.extract_strided_slice %363 {offsets = [0, 128], sizes = [1, 128], strides = [1, 1]} : vector<1x384xf32> to vector<1x128xf32>
    %366 = vector.extract_strided_slice %363 {offsets = [0, 256], sizes = [1, 128], strides = [1, 1]} : vector<1x384xf32> to vector<1x128xf32>
    %c0_158 = arith.constant 0 : index
    %c0_159 = arith.constant 0 : index
    %c0_160 = arith.constant 0 : index
    %c0_161 = arith.constant 0 : index
    %367 = vector.load %arg3[%c0_158, %c0_159, %c0_160, %c0_161] : memref<1x1x128x128xbf16, #tpu.memory_space<vmem>>, vector<1x1x128x128xbf16>
    %368 = vector.shape_cast %367 : vector<1x1x128x128xbf16> to vector<1x128x128xbf16>
    %369 = vector.shape_cast %365 : vector<1x128xf32> to vector<1x1x128xf32>
    %370 = arith.extf %368 : vector<1x128x128xbf16> to vector<1x128x128xf32>
    %371 = vector.broadcast %369 : vector<1x1x128xf32> to vector<1x128x128xf32>
    %372 = arith.addf %370, %371 : vector<1x128x128xf32>
    %cst_162 = arith.constant 0.000000e+00 : f32
    %373 = vector.broadcast %cst_162 : f32 to vector<1x128x128xf32>
    %374 = arith.maximumf %372, %373 : vector<1x128x128xf32>
    %c0_163 = arith.constant 0 : index
    %c0_164 = arith.constant 0 : index
    %375 = vector.load %arg8[%c0_163, %c0_164] : memref<1x128xf32, #tpu.memory_space<vmem>>, vector<1x128xf32>
    %376 = vector.shape_cast %375 : vector<1x128xf32> to vector<1x1x128xf32>
    %377 = vector.broadcast %376 : vector<1x1x128xf32> to vector<1x128x128xf32>
    %378 = arith.mulf %374, %377 : vector<1x128x128xf32>
    %cst_165 = arith.constant dense<0.000000e+00> : vector<1x128xf32>
    %379 = vector.multi_reduction <add>, %378, %cst_165 [2] : vector<1x128x128xf32> to vector<1x128xf32>
    %380 = tpu.iota {dimensions = array<i32: 1>} : vector<1x128xi32>
    %c16_i32_166 = arith.constant 16 : i32
    %381 = vector.broadcast %c16_i32_166 : i32 to vector<1x128xi32>
    %382 = arith.cmpi slt, %380, %381 : vector<1x128xi32>
    %cst_167 = arith.constant -1.000000e+30 : f32
    %383 = vector.broadcast %cst_167 : f32 to vector<1x128xf32>
    %384 = arith.select %382, %379, %383 : vector<1x128xi1>, vector<1x128xf32>
    %cst_168 = arith.constant dense<0xFF800000> : vector<1xf32>
    %385 = vector.multi_reduction <maximumf>, %384, %cst_168 [1] : vector<1x128xf32> to vector<1xf32>
    %386 = vector.shape_cast %385 : vector<1xf32> to vector<1x1xf32>
    %387 = vector.broadcast %386 : vector<1x1xf32> to vector<1x128xf32>
    %388 = arith.subf %384, %387 : vector<1x128xf32>
    %389 = math.exp %388 : vector<1x128xf32>
    %cst_169 = arith.constant dense<0.000000e+00> : vector<1xf32>
    %390 = vector.multi_reduction <add>, %389, %cst_169 [1] : vector<1x128xf32> to vector<1xf32>
    %391 = vector.shape_cast %390 : vector<1xf32> to vector<1x1xf32>
    %392 = tpu.reciprocal %391 {approx = true} : vector<1x1xf32> -> vector<1x1xf32>
    %393 = vector.broadcast %392 : vector<1x1xf32> to vector<1x128xf32>
    %394 = arith.mulf %389, %393 : vector<1x128xf32>
    %395 = vector.shape_cast %394 : vector<1x128xf32> to vector<1x1x128xf32>
    %396 = arith.truncf %395 : vector<1x1x128xf32> to vector<1x1x128xbf16>
    %c0_170 = arith.constant 0 : index
    %c0_171 = arith.constant 0 : index
    %c0_172 = arith.constant 0 : index
    %c0_173 = arith.constant 0 : index
    %397 = vector.load %arg2[%c0_170, %c0_171, %c0_172, %c0_173] : memref<1x1x128x128xbf16, #tpu.memory_space<vmem>>, vector<1x1x128x128xbf16>
    %398 = vector.shape_cast %397 : vector<1x1x128x128xbf16> to vector<1x128x128xbf16>
    "tpu.trace_start"() <{level = 10 : i32, message = "bqn,bnc->bqc"}> : () -> ()
    %cst_174 = arith.constant dense<0.000000e+00> : vector<1x1x128xf32>
    %399 = tpu.matmul %396, %398, %cst_174 {dimension_numbers = #tpu.dot_dimension_numbers<[2], [1], [1], [2], [0, 0, 0, 1, 1, 2], [0], [0]>} : vector<1x1x128xbf16>, vector<1x128x128xbf16>, vector<1x1x128xf32> -> vector<1x1x128xf32>
    "tpu.trace_stop"() : () -> ()
    %400 = vector.shape_cast %399 : vector<1x1x128xf32> to vector<1x128xf32>
    %c0_175 = arith.constant 0 : index
    %c0_176 = arith.constant 0 : index
    %401 = vector.load %arg9[%c0_175, %c0_176] : memref<1x128xf32, #tpu.memory_space<vmem>>, vector<1x128xf32>
    %402 = arith.addf %366, %401 : vector<1x128xf32>
    %403 = arith.negf %402 : vector<1x128xf32>
    %404 = math.exp %403 : vector<1x128xf32>
    %cst_177 = arith.constant 1.000000e+00 : f32
    %405 = vector.broadcast %cst_177 : f32 to vector<1x128xf32>
    %406 = arith.addf %405, %404 : vector<1x128xf32>
    %407 = arith.divf %405, %406 : vector<1x128xf32>
    %408 = arith.mulf %407, %400 : vector<1x128xf32>
    %409 = arith.index_cast %c4_i32 : i32 to index
    %c0_178 = arith.constant 0 : index
    %c0_179 = arith.constant 0 : index
    %c0_180 = arith.constant 0 : index
    %410 = vector.load %arg4[%409, %c0_178, %c0_179, %c0_180] : memref<7x1x1x128xf32, #tpu.memory_space<vmem>>, vector<1x1x1x128xf32>
    %411 = vector.shape_cast %410 : vector<1x1x1x128xf32> to vector<1x128xf32>
    %412 = arith.addf %411, %364 : vector<1x128xf32>
    %413 = arith.truncf %408 : vector<1x128xf32> to vector<1x128xbf16>
    %c0_181 = arith.constant 0 : index
    %c0_182 = arith.constant 0 : index
    %414 = vector.load %arg10[%c0_181, %c0_182] : memref<128x128xbf16, #tpu.memory_space<vmem>>, vector<128x128xbf16>
    %cst_183 = arith.constant dense<0.000000e+00> : vector<1x128xf32>
    %415 = tpu.matmul %413, %414, %cst_183 {dimension_numbers = #tpu.dot_dimension_numbers<[1], [0], [0], [1], [0, 0, 1, 1], [], []>} : vector<1x128xbf16>, vector<128x128xbf16>, vector<1x128xf32> -> vector<1x128xf32>
    %416 = arith.addf %412, %415 : vector<1x128xf32>
    %417 = vector.extract_strided_slice %416 {offsets = [0, 0], sizes = [1, 32], strides = [1, 1]} : vector<1x128xf32> to vector<1x32xf32>
    %418 = arith.negf %417 : vector<1x32xf32>
    %419 = math.exp %418 : vector<1x32xf32>
    %cst_184 = arith.constant 1.000000e+00 : f32
    %420 = vector.broadcast %cst_184 : f32 to vector<1x32xf32>
    %421 = arith.addf %420, %419 : vector<1x32xf32>
    %422 = arith.divf %420, %421 : vector<1x32xf32>
    %423 = vector.extract_strided_slice %416 {offsets = [0, 32], sizes = [1, 32], strides = [1, 1]} : vector<1x128xf32> to vector<1x32xf32>
    %424 = arith.negf %423 : vector<1x32xf32>
    %425 = math.exp %424 : vector<1x32xf32>
    %cst_185 = arith.constant 1.000000e+00 : f32
    %426 = vector.broadcast %cst_185 : f32 to vector<1x32xf32>
    %427 = arith.addf %426, %425 : vector<1x32xf32>
    %428 = arith.divf %426, %427 : vector<1x32xf32>
    %429 = vector.extract_strided_slice %416 {offsets = [0, 64], sizes = [1, 32], strides = [1, 1]} : vector<1x128xf32> to vector<1x32xf32>
    %430 = math.tanh %429 : vector<1x32xf32>
    %431 = vector.extract_strided_slice %416 {offsets = [0, 96], sizes = [1, 32], strides = [1, 1]} : vector<1x128xf32> to vector<1x32xf32>
    %432 = arith.negf %431 : vector<1x32xf32>
    %433 = math.exp %432 : vector<1x32xf32>
    %cst_186 = arith.constant 1.000000e+00 : f32
    %434 = vector.broadcast %cst_186 : f32 to vector<1x32xf32>
    %435 = arith.addf %434, %433 : vector<1x32xf32>
    %436 = arith.divf %434, %435 : vector<1x32xf32>
    %437 = arith.mulf %428, %350 : vector<1x32xf32>
    %438 = arith.mulf %422, %430 : vector<1x32xf32>
    %439 = arith.addf %437, %438 : vector<1x32xf32>
    %440 = math.tanh %439 : vector<1x32xf32>
    %441 = arith.mulf %436, %440 : vector<1x32xf32>
    %442 = arith.index_cast %c4_i32 : i32 to index
    %c0_187 = arith.constant 0 : index
    %c0_188 = arith.constant 0 : index
    %c0_189 = arith.constant 0 : index
    %443 = vector.load %arg11[%442, %c0_187, %c0_188, %c0_189] : memref<7x1x1x32xf32, #tpu.memory_space<vmem>>, vector<1x1x1x32xf32>
    %444 = vector.shape_cast %443 : vector<1x1x1x32xf32> to vector<1x32xf32>
    %445 = vector.shape_cast %441 : vector<1x32xf32> to vector<1x1x1x32xf32>
    tpu.vector_store %arg11[%442, %c0_187, %c0_188, %c0_189], %445 {strides = array<i32>} : memref<7x1x1x32xf32, #tpu.memory_space<vmem>>, vector<1x1x1x32xf32>,
    %446 = arith.index_cast %c4_i32 : i32 to index
    %c0_190 = arith.constant 0 : index
    %c0_191 = arith.constant 0 : index
    %c0_192 = arith.constant 0 : index
    %447 = vector.load %arg12[%446, %c0_190, %c0_191, %c0_192] : memref<7x1x1x128xf32, #tpu.memory_space<vmem>>, vector<1x1x1x128xf32>
    %448 = vector.shape_cast %447 : vector<1x1x1x128xf32> to vector<1x128xf32>
    %449 = vector.shape_cast %394 : vector<1x128xf32> to vector<1x1x1x128xf32>
    tpu.vector_store %arg12[%446, %c0_190, %c0_191, %c0_192], %449 {strides = array<i32>} : memref<7x1x1x128xf32, #tpu.memory_space<vmem>>, vector<1x1x1x128xf32>,
    %c5_i32 = arith.constant 5 : i32
    %450 = arith.truncf %441 : vector<1x32xf32> to vector<1x32xbf16>
    %c0_193 = arith.constant 0 : index
    %c0_194 = arith.constant 0 : index
    %451 = vector.load %arg7[%c0_193, %c0_194] : memref<32x384xbf16, #tpu.memory_space<vmem>>, vector<32x384xbf16>
    %cst_195 = arith.constant dense<0.000000e+00> : vector<1x384xf32>
    %452 = tpu.matmul %450, %451, %cst_195 {dimension_numbers = #tpu.dot_dimension_numbers<[1], [0], [0], [1], [0, 0, 1, 1], [], []>} : vector<1x32xbf16>, vector<32x384xbf16>, vector<1x384xf32> -> vector<1x384xf32>
    %453 = vector.extract_strided_slice %452 {offsets = [0, 0], sizes = [1, 128], strides = [1, 1]} : vector<1x384xf32> to vector<1x128xf32>
    %454 = vector.extract_strided_slice %452 {offsets = [0, 128], sizes = [1, 128], strides = [1, 1]} : vector<1x384xf32> to vector<1x128xf32>
    %455 = vector.extract_strided_slice %452 {offsets = [0, 256], sizes = [1, 128], strides = [1, 1]} : vector<1x384xf32> to vector<1x128xf32>
    %c0_196 = arith.constant 0 : index
    %c0_197 = arith.constant 0 : index
    %c0_198 = arith.constant 0 : index
    %c0_199 = arith.constant 0 : index
    %456 = vector.load %arg3[%c0_196, %c0_197, %c0_198, %c0_199] : memref<1x1x128x128xbf16, #tpu.memory_space<vmem>>, vector<1x1x128x128xbf16>
    %457 = vector.shape_cast %456 : vector<1x1x128x128xbf16> to vector<1x128x128xbf16>
    %458 = vector.shape_cast %454 : vector<1x128xf32> to vector<1x1x128xf32>
    %459 = arith.extf %457 : vector<1x128x128xbf16> to vector<1x128x128xf32>
    %460 = vector.broadcast %458 : vector<1x1x128xf32> to vector<1x128x128xf32>
    %461 = arith.addf %459, %460 : vector<1x128x128xf32>
    %cst_200 = arith.constant 0.000000e+00 : f32
    %462 = vector.broadcast %cst_200 : f32 to vector<1x128x128xf32>
    %463 = arith.maximumf %461, %462 : vector<1x128x128xf32>
    %c0_201 = arith.constant 0 : index
    %c0_202 = arith.constant 0 : index
    %464 = vector.load %arg8[%c0_201, %c0_202] : memref<1x128xf32, #tpu.memory_space<vmem>>, vector<1x128xf32>
    %465 = vector.shape_cast %464 : vector<1x128xf32> to vector<1x1x128xf32>
    %466 = vector.broadcast %465 : vector<1x1x128xf32> to vector<1x128x128xf32>
    %467 = arith.mulf %463, %466 : vector<1x128x128xf32>
    %cst_203 = arith.constant dense<0.000000e+00> : vector<1x128xf32>
    %468 = vector.multi_reduction <add>, %467, %cst_203 [2] : vector<1x128x128xf32> to vector<1x128xf32>
    %469 = tpu.iota {dimensions = array<i32: 1>} : vector<1x128xi32>
    %c16_i32_204 = arith.constant 16 : i32
    %470 = vector.broadcast %c16_i32_204 : i32 to vector<1x128xi32>
    %471 = arith.cmpi slt, %469, %470 : vector<1x128xi32>
    %cst_205 = arith.constant -1.000000e+30 : f32
    %472 = vector.broadcast %cst_205 : f32 to vector<1x128xf32>
    %473 = arith.select %471, %468, %472 : vector<1x128xi1>, vector<1x128xf32>
    %cst_206 = arith.constant dense<0xFF800000> : vector<1xf32>
    %474 = vector.multi_reduction <maximumf>, %473, %cst_206 [1] : vector<1x128xf32> to vector<1xf32>
    %475 = vector.shape_cast %474 : vector<1xf32> to vector<1x1xf32>
    %476 = vector.broadcast %475 : vector<1x1xf32> to vector<1x128xf32>
    %477 = arith.subf %473, %476 : vector<1x128xf32>
    %478 = math.exp %477 : vector<1x128xf32>
    %cst_207 = arith.constant dense<0.000000e+00> : vector<1xf32>
    %479 = vector.multi_reduction <add>, %478, %cst_207 [1] : vector<1x128xf32> to vector<1xf32>
    %480 = vector.shape_cast %479 : vector<1xf32> to vector<1x1xf32>
    %481 = tpu.reciprocal %480 {approx = true} : vector<1x1xf32> -> vector<1x1xf32>
    %482 = vector.broadcast %481 : vector<1x1xf32> to vector<1x128xf32>
    %483 = arith.mulf %478, %482 : vector<1x128xf32>
    %484 = vector.shape_cast %483 : vector<1x128xf32> to vector<1x1x128xf32>
    %485 = arith.truncf %484 : vector<1x1x128xf32> to vector<1x1x128xbf16>
    %c0_208 = arith.constant 0 : index
    %c0_209 = arith.constant 0 : index
    %c0_210 = arith.constant 0 : index
    %c0_211 = arith.constant 0 : index
    %486 = vector.load %arg2[%c0_208, %c0_209, %c0_210, %c0_211] : memref<1x1x128x128xbf16, #tpu.memory_space<vmem>>, vector<1x1x128x128xbf16>
    %487 = vector.shape_cast %486 : vector<1x1x128x128xbf16> to vector<1x128x128xbf16>
    "tpu.trace_start"() <{level = 10 : i32, message = "bqn,bnc->bqc"}> : () -> ()
    %cst_212 = arith.constant dense<0.000000e+00> : vector<1x1x128xf32>
    %488 = tpu.matmul %485, %487, %cst_212 {dimension_numbers = #tpu.dot_dimension_numbers<[2], [1], [1], [2], [0, 0, 0, 1, 1, 2], [0], [0]>} : vector<1x1x128xbf16>, vector<1x128x128xbf16>, vector<1x1x128xf32> -> vector<1x1x128xf32>
    "tpu.trace_stop"() : () -> ()
    %489 = vector.shape_cast %488 : vector<1x1x128xf32> to vector<1x128xf32>
    %c0_213 = arith.constant 0 : index
    %c0_214 = arith.constant 0 : index
    %490 = vector.load %arg9[%c0_213, %c0_214] : memref<1x128xf32, #tpu.memory_space<vmem>>, vector<1x128xf32>
    %491 = arith.addf %455, %490 : vector<1x128xf32>
    %492 = arith.negf %491 : vector<1x128xf32>
    %493 = math.exp %492 : vector<1x128xf32>
    %cst_215 = arith.constant 1.000000e+00 : f32
    %494 = vector.broadcast %cst_215 : f32 to vector<1x128xf32>
    %495 = arith.addf %494, %493 : vector<1x128xf32>
    %496 = arith.divf %494, %495 : vector<1x128xf32>
    %497 = arith.mulf %496, %489 : vector<1x128xf32>
    %498 = arith.index_cast %c5_i32 : i32 to index
    %c0_216 = arith.constant 0 : index
    %c0_217 = arith.constant 0 : index
    %c0_218 = arith.constant 0 : index
    %499 = vector.load %arg4[%498, %c0_216, %c0_217, %c0_218] : memref<7x1x1x128xf32, #tpu.memory_space<vmem>>, vector<1x1x1x128xf32>
    %500 = vector.shape_cast %499 : vector<1x1x1x128xf32> to vector<1x128xf32>
    %501 = arith.addf %500, %453 : vector<1x128xf32>
    %502 = arith.truncf %497 : vector<1x128xf32> to vector<1x128xbf16>
    %c0_219 = arith.constant 0 : index
    %c0_220 = arith.constant 0 : index
    %503 = vector.load %arg10[%c0_219, %c0_220] : memref<128x128xbf16, #tpu.memory_space<vmem>>, vector<128x128xbf16>
    %cst_221 = arith.constant dense<0.000000e+00> : vector<1x128xf32>
    %504 = tpu.matmul %502, %503, %cst_221 {dimension_numbers = #tpu.dot_dimension_numbers<[1], [0], [0], [1], [0, 0, 1, 1], [], []>} : vector<1x128xbf16>, vector<128x128xbf16>, vector<1x128xf32> -> vector<1x128xf32>
    %505 = arith.addf %501, %504 : vector<1x128xf32>
    %506 = vector.extract_strided_slice %505 {offsets = [0, 0], sizes = [1, 32], strides = [1, 1]} : vector<1x128xf32> to vector<1x32xf32>
    %507 = arith.negf %506 : vector<1x32xf32>
    %508 = math.exp %507 : vector<1x32xf32>
    %cst_222 = arith.constant 1.000000e+00 : f32
    %509 = vector.broadcast %cst_222 : f32 to vector<1x32xf32>
    %510 = arith.addf %509, %508 : vector<1x32xf32>
    %511 = arith.divf %509, %510 : vector<1x32xf32>
    %512 = vector.extract_strided_slice %505 {offsets = [0, 32], sizes = [1, 32], strides = [1, 1]} : vector<1x128xf32> to vector<1x32xf32>
    %513 = arith.negf %512 : vector<1x32xf32>
    %514 = math.exp %513 : vector<1x32xf32>
    %cst_223 = arith.constant 1.000000e+00 : f32
    %515 = vector.broadcast %cst_223 : f32 to vector<1x32xf32>
    %516 = arith.addf %515, %514 : vector<1x32xf32>
    %517 = arith.divf %515, %516 : vector<1x32xf32>
    %518 = vector.extract_strided_slice %505 {offsets = [0, 64], sizes = [1, 32], strides = [1, 1]} : vector<1x128xf32> to vector<1x32xf32>
    %519 = math.tanh %518 : vector<1x32xf32>
    %520 = vector.extract_strided_slice %505 {offsets = [0, 96], sizes = [1, 32], strides = [1, 1]} : vector<1x128xf32> to vector<1x32xf32>
    %521 = arith.negf %520 : vector<1x32xf32>
    %522 = math.exp %521 : vector<1x32xf32>
    %cst_224 = arith.constant 1.000000e+00 : f32
    %523 = vector.broadcast %cst_224 : f32 to vector<1x32xf32>
    %524 = arith.addf %523, %522 : vector<1x32xf32>
    %525 = arith.divf %523, %524 : vector<1x32xf32>
    %526 = arith.mulf %517, %439 : vector<1x32xf32>
    %527 = arith.mulf %511, %519 : vector<1x32xf32>
    %528 = arith.addf %526, %527 : vector<1x32xf32>
    %529 = math.tanh %528 : vector<1x32xf32>
    %530 = arith.mulf %525, %529 : vector<1x32xf32>
    %531 = arith.index_cast %c5_i32 : i32 to index
    %c0_225 = arith.constant 0 : index
    %c0_226 = arith.constant 0 : index
    %c0_227 = arith.constant 0 : index
    %532 = vector.load %arg11[%531, %c0_225, %c0_226, %c0_227] : memref<7x1x1x32xf32, #tpu.memory_space<vmem>>, vector<1x1x1x32xf32>
    %533 = vector.shape_cast %532 : vector<1x1x1x32xf32> to vector<1x32xf32>
    %534 = vector.shape_cast %530 : vector<1x32xf32> to vector<1x1x1x32xf32>
    tpu.vector_store %arg11[%531, %c0_225, %c0_226, %c0_227], %534 {strides = array<i32>} : memref<7x1x1x32xf32, #tpu.memory_space<vmem>>, vector<1x1x1x32xf32>,
    %535 = arith.index_cast %c5_i32 : i32 to index
    %c0_228 = arith.constant 0 : index
    %c0_229 = arith.constant 0 : index
    %c0_230 = arith.constant 0 : index
    %536 = vector.load %arg12[%535, %c0_228, %c0_229, %c0_230] : memref<7x1x1x128xf32, #tpu.memory_space<vmem>>, vector<1x1x1x128xf32>
    %537 = vector.shape_cast %536 : vector<1x1x1x128xf32> to vector<1x128xf32>
    %538 = vector.shape_cast %483 : vector<1x128xf32> to vector<1x1x1x128xf32>
    tpu.vector_store %arg12[%535, %c0_228, %c0_229, %c0_230], %538 {strides = array<i32>} : memref<7x1x1x128xf32, #tpu.memory_space<vmem>>, vector<1x1x1x128xf32>,
    %c6_i32 = arith.constant 6 : i32
    %539 = arith.truncf %530 : vector<1x32xf32> to vector<1x32xbf16>
    %c0_231 = arith.constant 0 : index
    %c0_232 = arith.constant 0 : index
    %540 = vector.load %arg7[%c0_231, %c0_232] : memref<32x384xbf16, #tpu.memory_space<vmem>>, vector<32x384xbf16>
    %cst_233 = arith.constant dense<0.000000e+00> : vector<1x384xf32>
    %541 = tpu.matmul %539, %540, %cst_233 {dimension_numbers = #tpu.dot_dimension_numbers<[1], [0], [0], [1], [0, 0, 1, 1], [], []>} : vector<1x32xbf16>, vector<32x384xbf16>, vector<1x384xf32> -> vector<1x384xf32>
    %542 = vector.extract_strided_slice %541 {offsets = [0, 0], sizes = [1, 128], strides = [1, 1]} : vector<1x384xf32> to vector<1x128xf32>
    %543 = vector.extract_strided_slice %541 {offsets = [0, 128], sizes = [1, 128], strides = [1, 1]} : vector<1x384xf32> to vector<1x128xf32>
    %544 = vector.extract_strided_slice %541 {offsets = [0, 256], sizes = [1, 128], strides = [1, 1]} : vector<1x384xf32> to vector<1x128xf32>
    %c0_234 = arith.constant 0 : index
    %c0_235 = arith.constant 0 : index
    %c0_236 = arith.constant 0 : index
    %c0_237 = arith.constant 0 : index
    %545 = vector.load %arg3[%c0_234, %c0_235, %c0_236, %c0_237] : memref<1x1x128x128xbf16, #tpu.memory_space<vmem>>, vector<1x1x128x128xbf16>
    %546 = vector.shape_cast %545 : vector<1x1x128x128xbf16> to vector<1x128x128xbf16>
    %547 = vector.shape_cast %543 : vector<1x128xf32> to vector<1x1x128xf32>
    %548 = arith.extf %546 : vector<1x128x128xbf16> to vector<1x128x128xf32>
    %549 = vector.broadcast %547 : vector<1x1x128xf32> to vector<1x128x128xf32>
    %550 = arith.addf %548, %549 : vector<1x128x128xf32>
    %cst_238 = arith.constant 0.000000e+00 : f32
    %551 = vector.broadcast %cst_238 : f32 to vector<1x128x128xf32>
    %552 = arith.maximumf %550, %551 : vector<1x128x128xf32>
    %c0_239 = arith.constant 0 : index
    %c0_240 = arith.constant 0 : index
    %553 = vector.load %arg8[%c0_239, %c0_240] : memref<1x128xf32, #tpu.memory_space<vmem>>, vector<1x128xf32>
    %554 = vector.shape_cast %553 : vector<1x128xf32> to vector<1x1x128xf32>
    %555 = vector.broadcast %554 : vector<1x1x128xf32> to vector<1x128x128xf32>
    %556 = arith.mulf %552, %555 : vector<1x128x128xf32>
    %cst_241 = arith.constant dense<0.000000e+00> : vector<1x128xf32>
    %557 = vector.multi_reduction <add>, %556, %cst_241 [2] : vector<1x128x128xf32> to vector<1x128xf32>
    %558 = tpu.iota {dimensions = array<i32: 1>} : vector<1x128xi32>
    %c16_i32_242 = arith.constant 16 : i32
    %559 = vector.broadcast %c16_i32_242 : i32 to vector<1x128xi32>
    %560 = arith.cmpi slt, %558, %559 : vector<1x128xi32>
    %cst_243 = arith.constant -1.000000e+30 : f32
    %561 = vector.broadcast %cst_243 : f32 to vector<1x128xf32>
    %562 = arith.select %560, %557, %561 : vector<1x128xi1>, vector<1x128xf32>
    %cst_244 = arith.constant dense<0xFF800000> : vector<1xf32>
    %563 = vector.multi_reduction <maximumf>, %562, %cst_244 [1] : vector<1x128xf32> to vector<1xf32>
    %564 = vector.shape_cast %563 : vector<1xf32> to vector<1x1xf32>
    %565 = vector.broadcast %564 : vector<1x1xf32> to vector<1x128xf32>
    %566 = arith.subf %562, %565 : vector<1x128xf32>
    %567 = math.exp %566 : vector<1x128xf32>
    %cst_245 = arith.constant dense<0.000000e+00> : vector<1xf32>
    %568 = vector.multi_reduction <add>, %567, %cst_245 [1] : vector<1x128xf32> to vector<1xf32>
    %569 = vector.shape_cast %568 : vector<1xf32> to vector<1x1xf32>
    %570 = tpu.reciprocal %569 {approx = true} : vector<1x1xf32> -> vector<1x1xf32>
    %571 = vector.broadcast %570 : vector<1x1xf32> to vector<1x128xf32>
    %572 = arith.mulf %567, %571 : vector<1x128xf32>
    %573 = vector.shape_cast %572 : vector<1x128xf32> to vector<1x1x128xf32>
    %574 = arith.truncf %573 : vector<1x1x128xf32> to vector<1x1x128xbf16>
    %c0_246 = arith.constant 0 : index
    %c0_247 = arith.constant 0 : index
    %c0_248 = arith.constant 0 : index
    %c0_249 = arith.constant 0 : index
    %575 = vector.load %arg2[%c0_246, %c0_247, %c0_248, %c0_249] : memref<1x1x128x128xbf16, #tpu.memory_space<vmem>>, vector<1x1x128x128xbf16>
    %576 = vector.shape_cast %575 : vector<1x1x128x128xbf16> to vector<1x128x128xbf16>
    "tpu.trace_start"() <{level = 10 : i32, message = "bqn,bnc->bqc"}> : () -> ()
    %cst_250 = arith.constant dense<0.000000e+00> : vector<1x1x128xf32>
    %577 = tpu.matmul %574, %576, %cst_250 {dimension_numbers = #tpu.dot_dimension_numbers<[2], [1], [1], [2], [0, 0, 0, 1, 1, 2], [0], [0]>} : vector<1x1x128xbf16>, vector<1x128x128xbf16>, vector<1x1x128xf32> -> vector<1x1x128xf32>
    "tpu.trace_stop"() : () -> ()
    %578 = vector.shape_cast %577 : vector<1x1x128xf32> to vector<1x128xf32>
    %c0_251 = arith.constant 0 : index
    %c0_252 = arith.constant 0 : index
    %579 = vector.load %arg9[%c0_251, %c0_252] : memref<1x128xf32, #tpu.memory_space<vmem>>, vector<1x128xf32>
    %580 = arith.addf %544, %579 : vector<1x128xf32>
    %581 = arith.negf %580 : vector<1x128xf32>
    %582 = math.exp %581 : vector<1x128xf32>
    %cst_253 = arith.constant 1.000000e+00 : f32
    %583 = vector.broadcast %cst_253 : f32 to vector<1x128xf32>
    %584 = arith.addf %583, %582 : vector<1x128xf32>
    %585 = arith.divf %583, %584 : vector<1x128xf32>
    %586 = arith.mulf %585, %578 : vector<1x128xf32>
    %587 = arith.index_cast %c6_i32 : i32 to index
    %c0_254 = arith.constant 0 : index
    %c0_255 = arith.constant 0 : index
    %c0_256 = arith.constant 0 : index
    %588 = vector.load %arg4[%587, %c0_254, %c0_255, %c0_256] : memref<7x1x1x128xf32, #tpu.memory_space<vmem>>, vector<1x1x1x128xf32>
    %589 = vector.shape_cast %588 : vector<1x1x1x128xf32> to vector<1x128xf32>
    %590 = arith.addf %589, %542 : vector<1x128xf32>
    %591 = arith.truncf %586 : vector<1x128xf32> to vector<1x128xbf16>
    %c0_257 = arith.constant 0 : index
    %c0_258 = arith.constant 0 : index
    %592 = vector.load %arg10[%c0_257, %c0_258] : memref<128x128xbf16, #tpu.memory_space<vmem>>, vector<128x128xbf16>
    %cst_259 = arith.constant dense<0.000000e+00> : vector<1x128xf32>
    %593 = tpu.matmul %591, %592, %cst_259 {dimension_numbers = #tpu.dot_dimension_numbers<[1], [0], [0], [1], [0, 0, 1, 1], [], []>} : vector<1x128xbf16>, vector<128x128xbf16>, vector<1x128xf32> -> vector<1x128xf32>
    %594 = arith.addf %590, %593 : vector<1x128xf32>
    %595 = vector.extract_strided_slice %594 {offsets = [0, 0], sizes = [1, 32], strides = [1, 1]} : vector<1x128xf32> to vector<1x32xf32>
    %596 = arith.negf %595 : vector<1x32xf32>
    %597 = math.exp %596 : vector<1x32xf32>
    %cst_260 = arith.constant 1.000000e+00 : f32
    %598 = vector.broadcast %cst_260 : f32 to vector<1x32xf32>
    %599 = arith.addf %598, %597 : vector<1x32xf32>
    %600 = arith.divf %598, %599 : vector<1x32xf32>
    %601 = vector.extract_strided_slice %594 {offsets = [0, 32], sizes = [1, 32], strides = [1, 1]} : vector<1x128xf32> to vector<1x32xf32>
    %602 = arith.negf %601 : vector<1x32xf32>
    %603 = math.exp %602 : vector<1x32xf32>
    %cst_261 = arith.constant 1.000000e+00 : f32
    %604 = vector.broadcast %cst_261 : f32 to vector<1x32xf32>
    %605 = arith.addf %604, %603 : vector<1x32xf32>
    %606 = arith.divf %604, %605 : vector<1x32xf32>
    %607 = vector.extract_strided_slice %594 {offsets = [0, 64], sizes = [1, 32], strides = [1, 1]} : vector<1x128xf32> to vector<1x32xf32>
    %608 = math.tanh %607 : vector<1x32xf32>
    %609 = vector.extract_strided_slice %594 {offsets = [0, 96], sizes = [1, 32], strides = [1, 1]} : vector<1x128xf32> to vector<1x32xf32>
    %610 = arith.negf %609 : vector<1x32xf32>
    %611 = math.exp %610 : vector<1x32xf32>
    %cst_262 = arith.constant 1.000000e+00 : f32
    %612 = vector.broadcast %cst_262 : f32 to vector<1x32xf32>
    %613 = arith.addf %612, %611 : vector<1x32xf32>
    %614 = arith.divf %612, %613 : vector<1x32xf32>
    %615 = arith.mulf %606, %528 : vector<1x32xf32>
    %616 = arith.mulf %600, %608 : vector<1x32xf32>
    %617 = arith.addf %615, %616 : vector<1x32xf32>
    %618 = math.tanh %617 : vector<1x32xf32>
    %619 = arith.mulf %614, %618 : vector<1x32xf32>
    %620 = arith.index_cast %c6_i32 : i32 to index
    %c0_263 = arith.constant 0 : index
    %c0_264 = arith.constant 0 : index
    %c0_265 = arith.constant 0 : index
    %621 = vector.load %arg11[%620, %c0_263, %c0_264, %c0_265] : memref<7x1x1x32xf32, #tpu.memory_space<vmem>>, vector<1x1x1x32xf32>
    %622 = vector.shape_cast %621 : vector<1x1x1x32xf32> to vector<1x32xf32>
    %623 = vector.shape_cast %619 : vector<1x32xf32> to vector<1x1x1x32xf32>
    tpu.vector_store %arg11[%620, %c0_263, %c0_264, %c0_265], %623 {strides = array<i32>} : memref<7x1x1x32xf32, #tpu.memory_space<vmem>>, vector<1x1x1x32xf32>,
    %624 = arith.index_cast %c6_i32 : i32 to index
    %c0_266 = arith.constant 0 : index
    %c0_267 = arith.constant 0 : index
    %c0_268 = arith.constant 0 : index
    %625 = vector.load %arg12[%624, %c0_266, %c0_267, %c0_268] : memref<7x1x1x128xf32, #tpu.memory_space<vmem>>, vector<1x1x1x128xf32>
    %626 = vector.shape_cast %625 : vector<1x1x1x128xf32> to vector<1x128xf32>
    %627 = vector.shape_cast %572 : vector<1x128xf32> to vector<1x1x1x128xf32>
    tpu.vector_store %arg12[%624, %c0_266, %c0_267, %c0_268], %627 {strides = array<i32>} : memref<7x1x1x128xf32, #tpu.memory_space<vmem>>, vector<1x1x1x128xf32>,
    %c7_i32 = arith.constant 7 : i32
    %c0_269 = arith.constant 0 : index
    %c0_270 = arith.constant 0 : index
    %628 = vector.load %arg13[%c0_269, %c0_270] : memref<1x32xf32, #tpu.memory_space<vmem>>, vector<1x32xf32>
    tpu.vector_store %arg13[%c0_269, %c0_270], %619 {strides = array<i32>} : memref<1x32xf32, #tpu.memory_space<vmem>>, vector<1x32xf32>,
    %c0_271 = arith.constant 0 : index
    %c0_272 = arith.constant 0 : index
    %629 = vector.load %arg14[%c0_271, %c0_272] : memref<1x32xf32, #tpu.memory_space<vmem>>, vector<1x32xf32>
    tpu.vector_store %arg14[%c0_271, %c0_272], %617 {strides = array<i32>} : memref<1x32xf32, #tpu.memory_space<vmem>>, vector<1x32xf32>,
    return
  }
  func.func @transform_0(%arg0: i32, %arg1: i32) -> (i32, i32, i32, i32) {
    %c0_i32 = arith.constant 0 : i32
    %c0_i32_0 = arith.constant 0 : i32
    %c0_i32_1 = arith.constant 0 : i32
    %c0_i32_2 = arith.constant 0 : i32
    return %arg0, %c0_i32, %c0_i32_0, %c0_i32_1 : i32, i32, i32, i32
  }
  func.func @transform_1(%arg0: i32, %arg1: i32) -> (i32, i32, i32, i32) {
    %c0_i32 = arith.constant 0 : i32
    %c0_i32_0 = arith.constant 0 : i32
    %c0_i32_1 = arith.constant 0 : i32
    %c0_i32_2 = arith.constant 0 : i32
    return %arg0, %c0_i32, %c0_i32_0, %c0_i32_1 : i32, i32, i32, i32
  }
  func.func @transform_2(%arg0: i32, %arg1: i32) -> (i32, i32, i32, i32) {
    %c0_i32 = arith.constant 0 : i32
    %c0_i32_0 = arith.constant 0 : i32
    %c0_i32_1 = arith.constant 0 : i32
    return %arg1, %arg0, %c0_i32, %c0_i32_0 : i32, i32, i32, i32
  }
  func.func @transform_3(%arg0: i32, %arg1: i32) -> (i32, i32, i32) {
    %c0_i32 = arith.constant 0 : i32
    %c0_i32_0 = arith.constant 0 : i32
    %c0_i32_1 = arith.constant 0 : i32
    return %arg0, %c0_i32, %c0_i32_0 : i32, i32, i32
  }
  func.func @transform_4(%arg0: i32, %arg1: i32) -> (i32, i32, i32) {
    %c0_i32 = arith.constant 0 : i32
    %c0_i32_0 = arith.constant 0 : i32
    %c0_i32_1 = arith.constant 0 : i32
    return %arg0, %c0_i32, %c0_i32_0 : i32, i32, i32
  }
  func.func @transform_5(%arg0: i32, %arg1: i32) -> (i32, i32) {
    %c0_i32 = arith.constant 0 : i32
    %c0_i32_0 = arith.constant 0 : i32
    %c0_i32_1 = arith.constant 0 : i32
    return %c0_i32, %c0_i32_0 : i32, i32
  }
  func.func @transform_6(%arg0: i32, %arg1: i32) -> (i32, i32) {
    %c0_i32 = arith.constant 0 : i32
    %c0_i32_0 = arith.constant 0 : i32
    %c0_i32_1 = arith.constant 0 : i32
    return %c0_i32, %c0_i32_0 : i32, i32
  }
  func.func @transform_7(%arg0: i32, %arg1: i32) -> (i32, i32) {
    %c0_i32 = arith.constant 0 : i32
    %c0_i32_0 = arith.constant 0 : i32
    %c0_i32_1 = arith.constant 0 : i32
    return %c0_i32, %c0_i32_0 : i32, i32
  }
  func.func @transform_8(%arg0: i32, %arg1: i32) -> (i32, i32) {
    %c0_i32 = arith.constant 0 : i32
    %c0_i32_0 = arith.constant 0 : i32
    %c0_i32_1 = arith.constant 0 : i32
    return %c0_i32, %c0_i32_0 : i32, i32
  }
  func.func @transform_9(%arg0: i32, %arg1: i32) -> (i32, i32, i32, i32) {
    %c0_i32 = arith.constant 0 : i32
    %c0_i32_0 = arith.constant 0 : i32
    %c0_i32_1 = arith.constant 0 : i32
    return %arg1, %arg0, %c0_i32, %c0_i32_0 : i32, i32, i32, i32
  }
  func.func @transform_10(%arg0: i32, %arg1: i32) -> (i32, i32, i32, i32) {
    %c0_i32 = arith.constant 0 : i32
    %c0_i32_0 = arith.constant 0 : i32
    %c0_i32_1 = arith.constant 0 : i32
    return %arg1, %arg0, %c0_i32, %c0_i32_0 : i32, i32, i32, i32
  }
}

</mosaic_0001>

<bundles_post_ra>
// kernel: caption_head_forward.1
= control target key start
LH: loop header
LB: loop body
LE: loop exit
PB: predicated region body
PF: predicated region fallthrough
CT: control target
= control target key end

     0   :  { %s7397_s0 = inlined_call_operand.vmem [shape: bf16[2,1,128,128], index: 0, kind: input, shape index: {}]   ;;  %s7398_s1 = inlined_call_operand.vmem [shape: bf16[2,1,128,128], index: 1, kind: input, shape index: {}]   ;;  %s7399_s2 = inlined_call_operand.vmem [shape: f32[7,2,1,128], index: 2, kind: input, shape index: {}]   ;;  %s7400_s3 = inlined_call_operand.vmem [shape: f32[2,1,32], index: 3, kind: input, shape index: {}]   ;;  %s7401_s4 = inlined_call_operand.vmem [shape: f32[2,1,32], index: 4, kind: input, shape index: {}]   ;;  %s7402_s5 = inlined_call_operand.vmem [shape: bf16[32,384], index: 5, kind: input, shape index: {}]   ;;  %s7403_s6 = inlined_call_operand.vmem [shape: f32[1,128], index: 6, kind: input, shape index: {}]   ;;  %s7404_s7 = inlined_call_operand.vmem [shape: f32[1,128], index: 7, kind: input, shape index: {}]   ;;  %s7405_s8 = inlined_call_operand.vmem [shape: bf16[128,128], index: 8, kind: input, shape index: {}]   ;;  %s7406_s9 = inlined_call_operand.vmem [shape: f32[7,2,1,32], index: 9, kind: output, shape index: {0}]   ;;  %s7407_s10 = inlined_call_operand.hbm [shape: f32[7,2,1,128], index: 10, kind: output, shape index: {1}]  }
   0x1   :  { %7423 = sst [smem:[#allocation12_spill]] %s7397_s0 }
   0x2   :  { %7424 = sst [smem:[#allocation13_spill]] %s7398_s1 }
   0x3   :  { %7425 = sst [smem:[#allocation14_spill]] %s7399_s2 }
   0x4   :  { %7426 = sst [smem:[#allocation15_spill]] %s7400_s3 }
   0x5   :  { %7427 = sst [smem:[#allocation16_spill]] %s7401_s4 }
   0x6   :  { %16 = vsyncpa [#allocation7], 0 }
   0x7   :  { %18 = vsyncpa [#allocation7 + $0x1], 0  ;;  %s5669_s13 = smov 0   ;;  %s5671_s14 = smov 0  }
   0x8   :  { %s5673_s15 = smov 0   ;;  %s5675_s16 = smov 0  }
   0x9   :  { %s5677_s17 = smov 0   ;;  %s5679_s18 = smov 0  }
   0xa LB: > { %7428 = sst [smem:[#allocation9_spill]] %s5603_s17  ;;  %s4239_s19 = sadd.s32 4294967295, %s5607_s18   ;;  %s5607_s18 = sphi %s5679_s18, %s24_s18   ;;  %s5603_s17 = sphi %s5677_s17, %s7503_s17   ;;  %s5599_s16 = sphi %s5675_s16, %s7502_s16   ;;  %s5595_s15 = sphi %s5673_s15, %s7506_s15   ;;  %s5591_s14 = sphi %s5671_s14, %s7505_s14   ;;  %s5587_s13 = sphi %s5669_s13, %s7504_s13  }
   0xb   : > { %s4240_s20 = sadd.s32 4294967294, %s5607_s18   ;;  %s36_s21 = sadd.s32 1, %s5603_s17 }
   0xc   : > { %s97_s22 = sadd.s32 1, %s5595_s15  ;;  %p38_p0 = scmp.ge.s32.totalorder %s36_s21, 2 }
   0xd   : > { %p104_p1 = scmp.ne.s32.totalorder %s5595_s15, %s5591_s14  ;;  %p105_p2 = scmp.eq.s32.totalorder %s5607_s18, 0 }
   0xe   : > { %p272_p3 = scmp.eq.s32.totalorder %s4239_s19, 1  ;;  %s7508_s21 = smov (%p38_p0, %s36_s21), 0 }
   0xf   : > { %7429 = sst [smem:[#allocation10_spill]] %s7508_s21  ;;  %p106_p4 = por %p105_p2, %p104_p1 }
  0x10   : > { %p5708_p5 = por %p272_p3, %p104_p1  ;;  %s93_s24 = ssub.s32 %s5603_s17, %s7508_s21 }
  0x11   : > { %p305_p6 = scmp.ne.s32.totalorder %s5591_s14, %s5587_s13  ;;  %p95_p7 = scmp.eq.s32.totalorder %s93_s24, 0 }
  0x12   : > { %p306_p8 = scmp.eq.s32.totalorder %s4240_s20, 1  ;;  %p4242_p10 = scmp.ge.s32.totalorder %s5607_s18, 2 }
  0x13   : > { %s5717_s25 = scalar_select %p95_p7, %s5595_s15, %s97_s22  }
  0x14   : > { %p5719_p9 = por %p306_p8, %p305_p6  ;;  %334 = sbr.rel (%p4242_p10) target bundleno = 41 (0x29), region = 32 }
  0x15   : > { %7431 = sst [smem:[#allocation11_spill]] %s5717_s25 }
  0x19   : > { %353 = sbr.rel (!%p106_p4) target bundleno = 41 (0x29), region = 44  ;;  %s355_s27 = sand.u32 (%p106_p4), 1, %s5595_s15  }
  0x1a   : > { %s7433_s2 = sld [smem:[#allocation14_spill]] (%p106_p4)  ;;  %s5348_s11 = smul.u32 (%p106_p4), 7, %s355_s27 }
  0x1c   : > { %s357_s12 = scalar_lea.vmem (%p106_p4), [#allocation4], %s5348_s11 }
  0x20   : > { %s361_s30 = scalar_lea.vmem %s7433_s2, %s5603_s17 }
  0x21   : > { %v378_v0 = vld [vmem:[%s361_s30] sm:$0x1]  ;;  %v380_v1 = vld [vmem:[%s361_s30 + $0x2] sm:$0x1]  ;;  %v382_v2 = vld [vmem:[%s361_s30 + $0x4] sm:$0x1] }
  0x22   : > { %379 = vst [vmem:[%s357_s12] sm:$0x1] %v378_v0  ;;  %v384_v3 = vld [vmem:[%s361_s30 + $0x6] sm:$0x1]  ;;  %v386_v4 = vld [vmem:[%s361_s30 + $0x8] sm:$0x1] }
  0x23   : > { %381 = vst [vmem:[%s357_s12 + $0x1] sm:$0x1] %v380_v1  ;;  %v388_v5 = vld [vmem:[%s361_s30 + $0xa] sm:$0x1]  ;;  %v390_v6 = vld [vmem:[%s361_s30 + $0xc] sm:$0x1] }
  0x24   : > { %383 = vst [vmem:[%s357_s12 + $0x2] sm:$0x1] %v382_v2 }
  0x25   : > { %385 = vst [vmem:[%s357_s12 + $0x3] sm:$0x1] %v384_v3 }
  0x26   : > { %387 = vst [vmem:[%s357_s12 + $0x4] sm:$0x1] %v386_v4 }
  0x27   : > { %389 = vst [vmem:[%s357_s12 + $0x5] sm:$0x1] %v388_v5 }
  0x28   : > { %391 = vst [vmem:[%s357_s12 + $0x6] sm:$0x1] %v390_v6 }
  0x29 PF: > { %p4243_p11 = scmp.ge.s32.totalorder %s5607_s18, 1  ;;  %p432_p12 = scmp.lt.s32.totalorder %s5607_s18, 3 }
  0x2b   : > { %p433_p13 = pnand %p4243_p11, %p432_p12 }
  0x2c   : > { %p496_p0 = scmp.lt.s32.totalorder (!%p433_p13), %s5599_s16, 1  ;;  %s7434_s3 = sld [smem:[#allocation15_spill]] (!%p433_p13) }
  0x2d   : > { %436 = sbr.rel (%p433_p13) target bundleno = 9009 (0x2331), region = 86  ;;  %s7435_s1 = sld [smem:[#allocation13_spill]] (!%p433_p13) }
  0x2e   : > { %s7436_s0 = sld [smem:[#allocation12_spill]] (!%p433_p13)  ;;  %s7415_s27 = smov (!%p433_p13), 32  }
  0x2f   : > { %s7438_s4 = sld [smem:[#allocation16_spill]] (!%p433_p13)  ;;  %s7448_s2 = smov (!%p433_p13), 64  }
  0x32   : > { %v4924_v7 = vld [vmem:[%s7402_s5 + $0x1c] sm:$0xf]  ;;  %v4264_v8 = vld [vmem:[%s7402_s5 + $0x24] sm:$0xf0]  ;;  %v4921_v9 = vld [vmem:[%s7402_s5 + $0x4] sm:$0xf] }
  0x33   : > { %v4267_v10 = vor.u32 %v4924_v7, %v4264_v8  ;;  %v4252_v11 = vld [vmem:[%s7402_s5 + $0xc] sm:$0xf0]  ;;  %s5747_s11 = scalar_select %p496_p0, %s5599_s16, 1  ;;  %vm7420_vm0 = vcmask 253952   ;;  %vm568_vm1 = vcmask 261120   ;;  %vm750_vm2 = vcmask 130112  }
  0x34   : > { %v4255_v12 = vor.u32 %v4921_v9, %v4252_v11  ;;  %v5787_v26 = vld [vmem:[%s7403_s6] ss:$0 sm:$0xff]  ;;  %vm754_vm3 = vcmask 195712   ;;  %vm758_vm4 = vcmask 261312   ;;  %vm762_vm5 = vcmask 326912  }
  0x35   : > { %591 = vmatpush.bf16.msra.mxu3 %v4267_v10  ;;  %s509_s20 = scalar_lea.vmem %s7434_s3, %s5747_s11  ;;  %s4919_s22 = sshll.u32 %s5747_s11, 6  ;;  %vm766_vm6 = vcmask 392512   ;;  %vm770_vm7 = vcmask 458112   ;;  %vm774_vm8 = vcmask 523712   ;;  %vm778_vm9 = vcmask 589312  }
  0x36   : > { %v520_v13 = vld [vmem:[%s509_s20] sm:$0x1]  ;;  %s5764_s28 = scalar_lea.vmem %s7435_s1, %s4919_s22  ;;  %vm782_vm10 = vcmask 654912   ;;  %vm7408_vm11 = vcmask 720512   ;;  %vm7409_vm12 = vcmask 786112   ;;  %vm7410_vm13 = vcmask 851712   ;;  %s5964_s20 = scalar_lea.vmem %s7436_s0, %s4919_s22 }
  0x37   : > { %522 = vst.msk [vmem:[#allocation2] sm:$0x1] %vm7420_vm0, %v520_v13  ;;  %v5767_v16 = vld [vmem:[%s5764_s28 + $0x10] sm:$0xff]   ;;  %v5770_v17 = vld [vmem:[%s5764_s28 + $0x8] sm:$0xff]   ;;  %v5773_v18 = vld [vmem:[%s5764_s28] sm:$0xff]   ;;  %vm798_vm14 = vcmask 917312   ;;  %s512_s24 = scalar_lea.vmem %s7438_s4, %s5747_s11 }
  0x38   : > { %v5085_v19 = vunpack.c.l.bf16 %v5767_v16  ;;  %v5081_v20 = vunpack.c.l.bf16 %v5770_v17  ;;  %v5077_v21 = vunpack.c.l.bf16 %v5773_v18  ;;  %v5086_v24 = vunpack.c.h.bf16 %v5767_v16  ;;  %v5810_v41 = vld [vmem:[%s5764_s28 + $0x20] sm:$0xff]   ;;  %v5813_v42 = vld [vmem:[%s5764_s28 + $0x18] sm:$0xff]   ;;  %v5831_v55 = vld [vmem:[%s5764_s28 + $0x28] sm:$0xff]   ;;  %s7437_s22 = sand.u32 1, %s5591_s14   ;;  %s7418_s0 = smov 64  }
  0x39   : > { %592 = vmatpush.bf16.msra.mxu3 %v4255_v12  ;;  %v5082_v29 = vunpack.c.h.bf16 %v5770_v17  ;;  %v5078_v30 = vunpack.c.h.bf16 %v5773_v18  ;;  %v5093_v45 = vunpack.c.l.bf16 %v5810_v41  ;;  %v5090_v46 = vunpack.c.h.bf16 %v5813_v42  ;;  %v5849_v4 = vld [vmem:[%s5764_s28 + $0x38] sm:$0xff]   ;;  %v5852_v5 = vld [vmem:[%s5764_s28 + $0x30] sm:$0xff]   ;;  %s6021_s12 = smul.u32 7, %s7437_s22  ;;  %s7439_s3 = smov 32  }
  0x3a   : > { %v5089_v48 = vunpack.c.l.bf16 %v5813_v42  ;;  %v5098_v58 = vunpack.c.h.bf16 %v5831_v55  ;;  %v5097_v59 = vunpack.c.l.bf16 %v5831_v55  ;;  %v5094_v61 = vunpack.c.h.bf16 %v5810_v41 }
  0x3b   : > { %v5105_v8 = vunpack.c.l.bf16 %v5849_v4  ;;  %v5102_v9 = vunpack.c.h.bf16 %v5852_v5  ;;  %v5101_v11 = vunpack.c.l.bf16 %v5852_v5  ;;  %vm7414_vm15 = vcmask 982912   ;;  %s6030_s29 = scalar_lea.vmem [#allocation6], %s6021_s12  ;;  %s6046_s11 = scalar_lea.vmem [#allocation4], %s6021_s12 }
  0x3e   : > { %v525_v14 = vld [vmem:[#allocation2] sm:$0x1] }
  0x3f   : > { %v5754_v15 = vpack.c.bf16 %v525_v14, %v525_v14 }
  0x41   : > { %4273 = vmatmul.msk.bf16.vlgmr.msra.gmra.mxu3 %vm568_vm1, %v5754_v15 }
  0xc4   : > { %v594_v22 = vpop.f32.mrf.mxu3 }
  0xc5   : > { %v5778_v23 = vperm.slane %v594_v22, 0 }
  0xc7   : > { %v648_v25 = vadd.f32 %v5085_v19, %v5778_v23  ;;  %v646_v27 = vadd.f32 %v5081_v20, %v5778_v23  ;;  %v644_v28 = vadd.f32 %v5077_v21, %v5778_v23  ;;  %v649_v34 = vadd.f32 %v5086_v24, %v5778_v23 }
  0xc8   : > { %v647_v38 = vadd.f32 %v5082_v29, %v5778_v23  ;;  %v645_v40 = vadd.f32 %v5078_v30, %v5778_v23  ;;  %v652_v51 = vadd.f32 %v5093_v45, %v5778_v23  ;;  %v651_v52 = vadd.f32 %v5090_v46, %v5778_v23 }
  0xc9   : > { %v664_v31 = vmax.f32 %v648_v25, 0.0  ;;  %v662_v32 = vmax.f32 %v646_v27, 0.0  ;;  %v660_v33 = vmax.f32 %v644_v28, 0.0  ;;  %v665_v43 = vmax.f32 %v649_v34, 0.0 }
  0xca   : > { %v663_v44 = vmax.f32 %v647_v38, 0.0  ;;  %v661_v47 = vmax.f32 %v645_v40, 0.0  ;;  %v650_v54 = vadd.f32 %v5089_v48, %v5778_v23  ;;  %v668_v56 = vmax.f32 %v652_v51, 0.0 }
  0xcb   : > { %v684_v35 = vmul.f32 %v5787_v26, %v664_v31  ;;  %v682_v36 = vmul.f32 %v5787_v26, %v662_v32  ;;  %v680_v37 = vmul.f32 %v5787_v26, %v660_v33  ;;  %v685_v49 = vmul.f32 %v5787_v26, %v665_v43 }
  0xcc   : > { %v596_v39 = vpop.f32.mrf.mxu3  ;;  %v683_v50 = vmul.f32 %v5787_v26, %v663_v44  ;;  %v681_v53 = vmul.f32 %v5787_v26, %v661_v47  ;;  %v667_v57 = vmax.f32 %v651_v52, 0.0  ;;  %v666_v60 = vmax.f32 %v650_v54, 0.0 }
  0xcd   : > { %704 = vadd.xlane.f32.xlu2 %v684_v35  ;;  %700 = vadd.xlane.f32.xlu1 %v682_v36  ;;  %v688_v62 = vmul.f32 %v5787_v26, %v668_v56  ;;  %v655_v0 = vadd.f32 %v5098_v58, %v5778_v23  ;;  %v654_v1 = vadd.f32 %v5097_v59, %v5778_v23  ;;  %v5106_v33 = vunpack.c.h.bf16 %v5849_v4 }
  0xce   : > { %696 = vadd.xlane.f32.xlu0 %v680_v37  ;;  %v687_v63 = vmul.f32 %v5787_v26, %v667_v57  ;;  %v686_v2 = vmul.f32 %v5787_v26, %v666_v60  ;;  %v653_v3 = vadd.f32 %v5094_v61, %v5778_v23  ;;  %v658_v14 = vadd.f32 %v5105_v8, %v5778_v23 }
  0xcf   : > { %v671_v6 = vmax.f32 %v655_v0, 0.0  ;;  %v670_v7 = vmax.f32 %v654_v1, 0.0  ;;  %v657_v22 = vadd.f32 %v5102_v9, %v5778_v23  ;;  %v656_v27 = vadd.f32 %v5101_v11, %v5778_v23 }
  0xd0   : > { %v669_v10 = vmax.f32 %v653_v3, 0.0  ;;  %v674_v28 = vmax.f32 %v658_v14, 0.0  ;;  %v659_v37 = vadd.f32 %v5106_v33, %v5778_v23  ;;  %v728_v40 = vlaneseq }
  0xd1   : > { %v691_v12 = vmul.f32 %v5787_v26, %v671_v6  ;;  %v690_v13 = vmul.f32 %v5787_v26, %v670_v7  ;;  %v673_v31 = vmax.f32 %v657_v22, 0.0  ;;  %v672_v32 = vmax.f32 %v656_v27, 0.0 }
  0xd2   : > { %v689_v25 = vmul.f32 %v5787_v26, %v669_v10  ;;  %v694_v34 = vmul.f32 %v5787_v26, %v674_v28  ;;  %v675_v38 = vmax.f32 %v659_v37, 0.0 }
  0xd3   : > { %v693_v35 = vmul.f32 %v5787_v26, %v673_v31  ;;  %v692_v36 = vmul.f32 %v5787_v26, %v672_v32 }
  0xd4   : > { %v695_v39 = vmul.f32 %v5787_v26, %v675_v38 }
  0xd5   : > { %706 = vadd.xlane.f32.xlu2 %v685_v49  ;;  %702 = vadd.xlane.f32.xlu1 %v683_v50  ;;  %v5877_v49 = vand.u32 127, %v728_v40 }
  0xd6   : > { %698 = vadd.xlane.f32.xlu0 %v681_v53 }
  0xd7   : > { %v5880_v50 = vadd.s32 4294967288, %v5877_v49  ;;  %v5883_v51 = vadd.s32 4294967280, %v5877_v49  ;;  %v5887_v26 = vadd.s32 4294967272, %v5877_v49  ;;  %v5898_v1 = vadd.s32 4294967248, %v5877_v49 }
  0xd8   : > { %v5914_v31 = vadd.s32 4294967224, %v5877_v49  ;;  %v5917_v32 = vadd.s32 4294967232, %v5877_v49 }
  0xdd   : > { %712 = vadd.xlane.f32.xlu2 %v688_v62  ;;  %710 = vadd.xlane.f32.xlu1 %v687_v63  ;;  %v5893_v62 = vadd.s32 4294967264, %v5877_v49 }
  0xde   : > { %708 = vadd.xlane.f32.xlu0 %v686_v2  ;;  %v5901_v2 = vadd.s32 4294967256, %v5877_v49 }
  0xe5   : > { %718 = vadd.xlane.f32.xlu2 %v691_v12  ;;  %716 = vadd.xlane.f32.xlu1 %v690_v13  ;;  %v5906_v13 = vadd.s32 4294967240, %v5877_v49 }
  0xe6   : > { %714 = vadd.xlane.f32.xlu0 %v689_v25 }
  0xed   : > { %724 = vadd.xlane.f32.xlu2 %v694_v34  ;;  %722 = vadd.xlane.f32.xlu1 %v693_v35 }
  0xee   : > { %720 = vadd.xlane.f32.xlu0 %v692_v36  ;;  %v5921_v36 = vadd.s32 4294967216, %v5877_v49 }
  0xf6   : > { %726 = vadd.xlane.f32.xlu0 %v695_v39 }
 0x140   : > { %v705_v43 = vpop.xlane.xlu2 %704  ;;  %v701_v44 = vpop.xlane.xlu1 %700 }
 0x141   : > { %v697_v47 = vpop.xlane.xlu0 %696  ;;  %v753_v57 = vperm.slane %v701_v44, %v5883_v51  ;;  %v761_v7 = vperm.slane %v705_v43, %v5893_v62 }
 0x142   : > { %v747_v54 = vperm.slane %v697_v47, %v5877_v49 }
 0x148   : > { %v707_v23 = vpop.xlane.xlu2 %706  ;;  %v703_v52 = vpop.xlane.xlu1 %702 }
 0x149   : > { %v699_v53 = vpop.xlane.xlu0 %698  ;;  %v757_v0 = vperm.slane %v703_v52, %v5887_v26  ;;  %v765_v25 = vperm.slane %v707_v23, %v5901_v2  ;;  %v5929_v23 = vadd.s32 4294967208, %v5877_v49 }
 0x14a   : > { %v749_v56 = vperm.slane %v699_v53, %v5880_v50  ;;  %v5933_v53 = vadd.s32 4294967200, %v5877_v49 }
 0x14c   : > { %v751_v60 = vsel %vm750_vm2, %v749_v56, %v747_v54  ;;  %v5936_v54 = vadd.s32 4294967192, %v5877_v49 }
 0x14d   : > { %v755_v63 = vsel %vm754_vm3, %v753_v57, %v751_v60 }
 0x14e   : > { %v759_v3 = vsel %vm758_vm4, %v757_v0, %v755_v63 }
 0x14f   : > { %v763_v14 = vsel %vm762_vm5, %v761_v7, %v759_v3  ;;  %v5944_v7 = vadd.s32 4294967184, %v5877_v49 }
 0x150   : > { %v711_v6 = vpop.xlane.xlu1 %710  ;;  %v713_v12 = vpop.xlane.xlu2 %712  ;;  %v767_v28 = vsel %vm766_vm6, %v765_v25, %v763_v14  ;;  %v5948_v14 = vadd.s32 4294967176, %v5877_v49 }
 0x151   : > { %v709_v10 = vpop.xlane.xlu0 %708  ;;  %v773_v27 = vperm.slane %v711_v6, %v5906_v13  ;;  %v777_v40 = vperm.slane %v713_v12, %v5917_v32 }
 0x152   : > { %v769_v22 = vperm.slane %v709_v10, %v5898_v1 }
 0x154   : > { %v771_v34 = vsel %vm770_vm7, %v769_v22, %v767_v28 }
 0x155   : > { %v775_v38 = vsel %vm774_vm8, %v773_v27, %v771_v34 }
 0x156   : > { %v779_v47 = vsel %vm778_vm9, %v777_v40, %v775_v38  ;;  %v4926_v40 = vld [vmem:[%s7402_s5 + $0x28] sm:$0xf0] }
 0x158   : > { %v717_v35 = vpop.xlane.xlu1 %716  ;;  %v719_v43 = vpop.xlane.xlu2 %718 }
 0x159   : > { %v715_v37 = vpop.xlane.xlu0 %714  ;;  %v785_v44 = vperm.slane %v717_v35, %v5921_v36  ;;  %v789_v63 = vperm.slane %v719_v43, %v5929_v23  ;;  %v4258_v43 = vld [vmem:[%s7402_s5 + $0x8] sm:$0xf] }
 0x15a   : > { %v781_v39 = vperm.slane %v715_v37, %v5914_v31 }
 0x15c   : > { %v783_v52 = vsel %vm782_vm10, %v781_v39, %v779_v47  ;;  %v4270_v39 = vld [vmem:[%s7402_s5 + $0x20] sm:$0xf]  ;;  %v4923_v47 = vld [vmem:[%s7402_s5 + $0x10] sm:$0xf0] }
 0x15d   : > { %v787_v56 = vsel %vm7408_vm11, %v785_v44, %v783_v52  ;;  %vm7413_vm11 = vcmask 1048512   ;;  %v4271_v44 = vor.u32 %v4926_v40, %v4270_v39  ;;  %v4934_v52 = vld [vmem:[%s5964_s20 + $0x38] sm:$0xff]  ;;  %v4922_v39 = vld [vmem:[%s7402_s5 + $0x8] sm:$0xf0] }
 0x15e   : > { %v791_v6 = vsel %vm7409_vm12, %v789_v63, %v787_v56  ;;  %vm7412_vm12 = vcmp.lt.s32.totalorder %v5877_v49, 16  ;;  %v4259_v56 = vor.u32 %v4923_v47, %v4258_v43  ;;  %887 = vmatpush.bf16.msrb.mxu3 %v4934_v52  ;;  %v4931_v63 = vld [vmem:[%s5964_s20 + $0x20] sm:$0xff]  ;;  %v4942_v43 = vld [vmem:[%s7405_s8 + $0x38] sm:$0xff]  ;;  %v4940_v47 = vld [vmem:[%s7405_s8 + $0x28] sm:$0xff] }
 0x15f   : > { %604 = vmatpush.bf16.msra.mxu2 %v4271_v44  ;;  %v4941_v44 = vld [vmem:[%s7405_s8 + $0x30] sm:$0xff] }
 0x160   : > { %v723_v57 = vpop.xlane.xlu1 %722  ;;  %v725_v12 = vpop.xlane.xlu2 %724 }
 0x161   : > { %v721_v60 = vpop.xlane.xlu0 %720  ;;  %v797_v3 = vperm.slane %v723_v57, %v5936_v54  ;;  %v801_v25 = vperm.slane %v725_v12, %v5944_v7  ;;  %v4933_v57 = vld [vmem:[%s5964_s20 + $0x30] sm:$0xff] }
 0x162   : > { %v793_v0 = vperm.slane %v721_v60, %v5933_v53  ;;  %888 = vmatpush.bf16.msrb.mxu3 %v4933_v57  ;;  %v4932_v60 = vld [vmem:[%s5964_s20 + $0x28] sm:$0xff] }
 0x163   : > { %605 = vmatpush.bf16.msra.mxu2 %v4259_v56  ;;  %v4939_v56 = vld [vmem:[%s7405_s8 + $0x20] sm:$0xff] }
 0x164   : > { %v795_v10 = vsel %vm7410_vm13, %v793_v0, %v791_v6  ;;  %vm7411_vm13 = vcmask 1040384   ;;  %v4930_v0 = vld [vmem:[%s5964_s20 + $0x18] sm:$0xff] }
 0x165   : > { %v799_v22 = vsel %vm798_vm14, %v797_v3, %v795_v10 }
 0x166   : > { %v803_v34 = vsel %vm7414_vm15, %v801_v25, %v799_v22  ;;  %4274 = vmatmul.msk.bf16.vlgmr.msra.gmra.mxu2 %vm568_vm1, %v5754_v15  ;;  %889 = vmatpush.bf16.msrb.mxu3 %v4932_v60  ;;  %v4929_v25 = vld [vmem:[%s5964_s20 + $0x10] sm:$0xff]  ;;  %v4938_v60 = vld [vmem:[%s7405_s8 + $0x18] sm:$0xff] }
 0x169   : > { %v727_v27 = vpop.xlane.xlu0 %726 }
 0x16a   : > { %v805_v28 = vperm.slane %v727_v27, %v5948_v14  ;;  %890 = vmatpush.bf16.msrb.mxu3 %v4931_v63  ;;  %v4928_v27 = vld [vmem:[%s5964_s20 + $0x8] sm:$0xff] }
 0x16c   : > { %v807_v35 = vsel %vm7413_vm11, %v805_v28, %v803_v34  ;;  %v4927_v28 = vld [vmem:[%s5964_s20] sm:$0xff]  ;;  %v4262_v34 = vld [vmem:[%s7402_s5 + $0x18] sm:$0xf] }
 0x16d   : > { %v809_v37 = vsel %vm7412_vm12, %v807_v35, -1e+30  ;;  %v4925_v35 = vld [vmem:[%s7402_s5 + $0x20] sm:$0xf0] }
 0x16e   : > { %v811_v38 = vsel %vm7411_vm13, %v809_v37, -inf  ;;  %891 = vmatpush.bf16.msrb.mxu3 %v4930_v0 }
 0x16f   : > { %812 = vmax.xlane.f32.xlu1 %v811_v38  ;;  %v4250_v38 = vld [vmem:[%s7402_s5] sm:$0xf] }
 0x170   : > { %v4251_v40 = vor.u32 %v4922_v39, %v4250_v38 }
 0x172   : > { %892 = vmatpush.bf16.msrb.mxu3 %v4929_v25 }
 0x176   : > { %893 = vmatpush.bf16.msrb.mxu3 %v4928_v27 }
 0x17a   : > { %894 = vmatpush.bf16.msrb.mxu3 %v4927_v28 }
 0x1e2   : > { %v813_v3 = vpop.xlane.xlu1 %812 }
 0x1e3   : > { %v814_v6 = vsub.f32 %v809_v37, %v813_v3  ;;  %v4263_v37 = vor.u32 %v4925_v35, %v4262_v34  ;;  %v4935_v34 = vld [vmem:[%s7405_s8] sm:$0xff] }
 0x1e4   : > { %v523_v35 = vld [vmem:[%s512_s24] sm:$0x1] }
 0x1e5   : > { %v815_v10 = vmul.f32 1.442695, %v814_v6  ;;  %578 = vmatpush.bf16.msra.mxu0 %v4263_v37  ;;  %v4936_v6 = vld [vmem:[%s7405_s8 + $0x8] sm:$0xff]  ;;  %524 = vst.msk [vmem:[#allocation3] sm:$0x1] %vm7420_vm0, %v523_v35  ;;  %vm7445_vm0 = vcmp.lt.s32.totalorder %v5877_v49, 16 }
 0x1e7   : > { %5417 = vpow2.f32 %v815_v10 }
 0x1e9   : > { %579 = vmatpush.bf16.msra.mxu0 %v4251_v40  ;;  %v607_v52 = vpop.f32.mrf.mxu2 }
 0x1ec   : > { %4272 = vmatmul.msk.bf16.vlgmr.msra.gmra.mxu0 %vm568_vm1, %v5754_v15  ;;  %v4937_v15 = vld [vmem:[%s7405_s8 + $0x10] sm:$0xff]  ;;  %v526_v40 = vld [vmem:[#allocation3] sm:$0x1] }
 0x1ed   : > { %v5418_v12 = vpop.eup %5417  ;;  %989 = vmatpush.bf16.msrb.mxu0 %v4942_v43  ;;  %1024 = vrot.lane.b32.xlu1 %v526_v40, %s7415_s27 }
 0x1ee   : > { %v817_v22 = vsel %vm7411_vm13, %v5418_v12, 0.0 }
 0x1ef   : > { %818 = vadd.xlane.f32.xlu2 %v817_v22  ;;  %v900_v22 = vld [vmem:[%s7404_s7] sm:$0x1] }
 0x1f0   : > { %v901_v25 = vadd.f32 %v900_v22, %v607_v52  ;;  %v922_v22 = vld [vmem:[%s6046_s11] sm:$0x1] }
 0x1f1   : > { %990 = vmatpush.bf16.msrb.mxu0 %v4941_v44  ;;  %v609_v63 = vpop.f32.mrf.mxu2 }
 0x1f2   : > { %v4307_v27 = vmul.f32 -1.442695, %v901_v25 }
 0x1f5   : > { %991 = vmatpush.bf16.msrb.mxu0 %v4940_v47 }
 0x1f9   : > { %992 = vmatpush.bf16.msrb.mxu0 %v4939_v56 }
 0x1fd   : > { %993 = vmatpush.bf16.msrb.mxu0 %v4938_v60 }
 0x201   : > { %994 = vmatpush.bf16.msrb.mxu0 %v4937_v15 }
 0x205   : > { %995 = vmatpush.bf16.msrb.mxu0 %v4936_v6 }
 0x209   : > { %996 = vmatpush.bf16.msrb.mxu0 %v4935_v34 }
 0x262   : > { %v819_v57 = vpop.xlane.xlu2 %818 }
 0x263   : > { %5419 = vrcp.f32 %v819_v57 }
 0x264   : > { %5421 = vpow2.f32 %v4307_v27 }
 0x269   : > { %v5420_v0 = vpop.eup %5419  ;;  %v581_v37 = vpop.f32.mrf.mxu0 }
 0x26a   : > { %v821_v3 = vmul.f32 %v5420_v0, %v5418_v12  ;;  %v5422_v12 = vpop.eup %5421  ;;  %v923_v25 = vadd.f32 %v922_v22, %v581_v37 }
 0x26b   : > { %v905_v28 = vadd.f32 1.0, %v5422_v12 }
 0x26c   : > { %v822_v10 = vpack.c.bf16 %v821_v3, %v821_v3  ;;  %1051 = vst [vmem:[%s6030_s29] sm:$0x1] %v821_v3 }
 0x26d   : > { %5423 = vrcp.f32 %v905_v28  ;;  %vm911_vm13 = vweird.f32 %v905_v28  ;;  %v917_v52 = vand.u32 2147483648, %v905_v28  ;;  %v915_v57 = vand.u32 2147483647, %v905_v28 }
 0x26e   : > { %895 = vmatmul.bf16.vlgmr.msrb.gmra.mxu3 %v822_v10 }
 0x26f   : > { %v918_v60 = vor.u32 1.1754944e-38, %v917_v52  ;;  %vm916_vm15 = vcmp.eq.f32.partialorder %v915_v57, 8.507059e+37 }
 0x271   : > { %v583_v43 = vpop.f32.mrf.mxu0 }
 0x273   : > { %v5424_v38 = vpop.eup %5423 }
 0x274   : > { %v907_v39 = vmul.f32 %v5424_v38, %v905_v28  ;;  %vm912_vm12 = vweird.f32 %v5424_v38 }
 0x275   : > { %vm913_vm11 = vmor %vm911_vm13, %vm912_vm12 }
 0x276   : > { %v908_v44 = vsub.f32 1.0, %v907_v39 }
 0x278   : > { %v909_v47 = vmul.f32 %v5424_v38, %v908_v44 }
 0x27a   : > { %v910_v56 = vadd.f32 %v5424_v38, %v909_v47 }
 0x27c   : > { %v914_v63 = vsel %vm913_vm11, %v5424_v38, %v910_v56 }
 0x27d   : > { %v919_v0 = vsel %vm916_vm15, %v918_v60, %v914_v63 }
 0x2f1   : > { %v896_v15 = vpop.f32.mrf.mxu3 }
 0x2f2   : > { %v921_v3 = vmul.f32 %v919_v0, %v896_v15 }
 0x2f4   : > { %v924_v6 = vpack.c.bf16 %v921_v3, %v921_v3  ;;  %v1025_v3 = vpop.permute.xlu1 %1024 }
 0x2f6   : > { %997 = vmatmul.bf16.vlgmr.msrb.gmra.mxu0 %v924_v6 }
 0x2f9   : > { %v898_v10 = vpop.f32.mrf.mxu3 }
 0x373   : > { %v998_v27 = vpop.f32.mrf.mxu0 }
 0x374   : > { %v1002_v12 = vadd.f32 %v998_v27, %v923_v25  ;;  %v4946_v27 = vld [vmem:[%s7402_s5 + $0x1c] sm:$0xf] }
 0x376   : > { %5425 = vtanh.f32 %v1002_v12  ;;  %v4340_v35 = vmul.f32 -1.442695, %v1002_v12  ;;  %v4357_v12 = vld [vmem:[%s7402_s5 + $0x24] sm:$0xf0] }
 0x378   : > { %5427 = vpow2.f32 %v4340_v35  ;;  %v4345_v35 = vld [vmem:[%s7402_s5 + $0xc] sm:$0xf0] }
 0x37b   : > { %v1000_v34 = vpop.f32.mrf.mxu0 }
 0x37c   : > { %v5426_v28 = vpop.eup %5425  ;;  %v4943_v34 = vld [vmem:[%s7402_s5 + $0x4] sm:$0xf] }
 0x37d   : > { %1029 = vrot.lane.b32.xlu0 %v5426_v28, %s7418_s0  ;;  %v4360_v28 = vor.u32 %v4946_v27, %v4357_v12 }
 0x37e   : > { %v5428_v38 = vpop.eup %5427 }
 0x37f   : > { %v1006_v39 = vadd.f32 1.0, %v5428_v38  ;;  %v4355_v38 = vld [vmem:[%s7402_s5 + $0x18] sm:$0xf]  ;;  %1118 = vmatpush.bf16.msrb.mxu2 %v4360_v28 }
 0x381   : > { %5429 = vrcp.f32 %v1006_v39  ;;  %v1018_v37 = vand.u32 2147483648, %v1006_v39  ;;  %vm1012_vm12 = vweird.f32 %v1006_v39  ;;  %v1016_v56 = vand.u32 2147483647, %v1006_v39 }
 0x383   : > { %v1019_v60 = vor.u32 1.1754944e-38, %v1018_v37  ;;  %vm1017_vm15 = vcmp.eq.f32.partialorder %v1016_v56, 8.507059e+37 }
 0x387   : > { %v5430_v40 = vpop.eup %5429 }
 0x388   : > { %v1008_v43 = vmul.f32 %v5430_v40, %v1006_v39  ;;  %vm1013_vm11 = vweird.f32 %v5430_v40  ;;  %v4947_v39 = vld [vmem:[%s7402_s5 + $0x20] sm:$0xf0] }
 0x389   : > { %vm1014_vm13 = vmor %vm1012_vm12, %vm1013_vm11  ;;  %vm7440_vm11 = vcmask 720512   ;;  %vm7441_vm12 = vcmask 786112  }
 0x38a   : > { %v1009_v44 = vsub.f32 1.0, %v1008_v43  ;;  %v4343_v43 = vld [vmem:[%s7402_s5] sm:$0xf] }
 0x38c   : > { %v1010_v47 = vmul.f32 %v5430_v40, %v1009_v44  ;;  %v4944_v44 = vld [vmem:[%s7402_s5 + $0x8] sm:$0xf0] }
 0x38e   : > { %v1011_v52 = vadd.f32 %v5430_v40, %v1010_v47  ;;  %v4348_v47 = vor.u32 %v4943_v34, %v4345_v35  ;;  %v6109_v35 = vld [vmem:[%s7403_s6] ss:$0 sm:$0xff] }
 0x390   : > { %v1015_v57 = vsel %vm1014_vm13, %v5430_v40, %v1011_v52  ;;  %v4356_v40 = vor.u32 %v4947_v39, %v4355_v38  ;;  %v4344_v52 = vor.u32 %v4944_v44, %v4343_v43  ;;  %1119 = vmatpush.bf16.msrb.mxu2 %v4348_v47  ;;  %vm7442_vm13 = vcmask 851712  }
 0x391   : > { %v1020_v63 = vsel %vm1017_vm15, %v1019_v60, %v1015_v57  ;;  %v4363_v60 = vld [vmem:[%s7402_s5 + $0x20] sm:$0xf]  ;;  %vm7443_vm15 = vcmask 982912  }
 0x392   : > { %v1027_v6 = vmul.f32 %v1025_v3, %v1020_v63  ;;  %1105 = vmatpush.bf16.msra.mxu1 %v4356_v40 }
 0x396   : > { %1106 = vmatpush.bf16.msra.mxu1 %v4344_v52 }
 0x3ef   : > { %v1030_v15 = vpop.permute.xlu0 %1029 }
 0x3f0   : > { %v1032_v0 = vmul.f32 %v1030_v15, %v1020_v63  ;;  %v4948_v15 = vld [vmem:[%s7402_s5 + $0x28] sm:$0xf0] }
 0x3f1   : > { %v4364_v3 = vor.u32 %v4948_v15, %v4363_v60 }
 0x3f2   : > { %1034 = vrot.lane.b32.xlu2 %v1032_v0, %s7415_s27  ;;  %v4351_v0 = vld [vmem:[%s7402_s5 + $0x8] sm:$0xf] }
 0x3f3   : > { %1131 = vmatpush.bf16.msrb.mxu1 %v4364_v3 }
 0x44c   : > { %v1035_v10 = vpop.permute.xlu2 %1034 }
 0x44d   : > { %v6051_v22 = vadd.f32 %v1035_v10, %v1027_v6 }
 0x44f   : > { %5431 = vtanh.f32 %v6051_v22 }
 0x455   : > { %v5432_v25 = vpop.eup %5431 }
 0x456   : > { %1040 = vrot.lane.b32.xlu0 %v5432_v25, %s7418_s0 }
 0x4c8   : > { %v1041_v37 = vpop.permute.xlu0 %1040 }
 0x4c9   : > { %v6079_v56 = vmul.f32 %v1041_v37, %v1020_v63  ;;  %v4945_v63 = vld [vmem:[%s7402_s5 + $0x10] sm:$0xf0] }
 0x4ca   : > { %v4352_v6 = vor.u32 %v4945_v63, %v4351_v0 }
 0x4cb   : > { %v1052_v57 = vpack.c.bf16 %v6079_v56, %v6079_v56 }
 0x4cc   : > { %1132 = vmatpush.bf16.msrb.mxu1 %v4352_v6 }
 0x4cd   : > { %1062 = vrot.lane.b32.xlu2 %v1052_v57, %s7439_s3 }
 0x527   : > { %v1063_v10 = vpop.permute.xlu2 %1062 }
 0x528   : > { %4365 = vmatmul.msk.bf16.vlgmr.msra.gmra.mxu1 %vm568_vm1, %v1063_v10  ;;  %4366 = vmatmul.msk.bf16.vlgmr.msrb.gmra.mxu2 %vm568_vm1, %v1063_v10 }
 0x538   : > { %4367 = vmatmul.msk.bf16.vlgmr.msrb.gmra.mxu1 %vm568_vm1, %v1063_v10 }
 0x5a5   : > { %v6099_v25 = vpop.f32.mrf.mxu1 }
 0x5ab   : > { %v1121_v27 = vpop.f32.mrf.mxu2 }
 0x5ac   : > { %v6101_v12 = vperm.slane %v1121_v27, 0 }
 0x5ad   : > { %v1110_v34 = vpop.f32.mrf.mxu1 }
 0x5ae   : > { %v1173_v28 = vadd.f32 %v5081_v20, %v6101_v12  ;;  %v1172_v38 = vadd.f32 %v5078_v30, %v6101_v12  ;;  %v1171_v39 = vadd.f32 %v5077_v21, %v6101_v12  ;;  %v1176_v20 = vadd.f32 %v5086_v24, %v6101_v12 }
 0x5af   : > { %v1175_v30 = vadd.f32 %v5085_v19, %v6101_v12  ;;  %v1174_v18 = vadd.f32 %v5082_v29, %v6101_v12  ;;  %v1179_v16 = vadd.f32 %v5093_v45, %v6101_v12  ;;  %v1178_v17 = vadd.f32 %v5090_v46, %v6101_v12 }
 0x5b0   : > { %v1189_v40 = vmax.f32 %v1173_v28, 0.0  ;;  %v1188_v43 = vmax.f32 %v1172_v38, 0.0  ;;  %v1187_v44 = vmax.f32 %v1171_v39, 0.0  ;;  %v1192_v24 = vmax.f32 %v1176_v20, 0.0 }
 0x5b1   : > { %v1191_v60 = vmax.f32 %v1175_v30, 0.0  ;;  %v1190_v15 = vmax.f32 %v1174_v18, 0.0  ;;  %v1177_v29 = vadd.f32 %v5089_v48, %v6101_v12  ;;  %v1195_v6 = vmax.f32 %v1179_v16, 0.0 }
 0x5b2   : > { %v1209_v47 = vmul.f32 %v6109_v35, %v1189_v40  ;;  %v1208_v52 = vmul.f32 %v6109_v35, %v1188_v43  ;;  %v1207_v37 = vmul.f32 %v6109_v35, %v1187_v44  ;;  %v1212_v0 = vmul.f32 %v6109_v35, %v1192_v24 }
 0x5b3   : > { %v1123_v57 = vpop.f32.mrf.mxu2  ;;  %v1211_v3 = vmul.f32 %v6109_v35, %v1191_v60  ;;  %v1210_v19 = vmul.f32 %v6109_v35, %v1190_v15  ;;  %v1194_v10 = vmax.f32 %v1178_v17, 0.0  ;;  %v1193_v27 = vmax.f32 %v1177_v29, 0.0 }
 0x5b4   : > { %1227 = vadd.xlane.f32.xlu2 %v1209_v47  ;;  %1225 = vadd.xlane.f32.xlu0 %v1208_v52  ;;  %v1215_v34 = vmul.f32 %v6109_v35, %v1195_v6  ;;  %v1182_v46 = vadd.f32 %v5098_v58, %v6101_v12  ;;  %v1181_v42 = vadd.f32 %v5097_v59, %v6101_v12 }
 0x5b5   : > { %1223 = vadd.xlane.f32.xlu1 %v1207_v37  ;;  %v6129_v21 = vpop.f32.mrf.mxu1  ;;  %v1214_v45 = vmul.f32 %v6109_v35, %v1194_v10  ;;  %v1213_v48 = vmul.f32 %v6109_v35, %v1193_v27  ;;  %v1180_v28 = vadd.f32 %v5094_v61, %v6101_v12  ;;  %v1185_v55 = vadd.f32 %v5105_v8, %v6101_v12 }
 0x5b6   : > { %v1198_v38 = vmax.f32 %v1182_v46, 0.0  ;;  %v1197_v39 = vmax.f32 %v1181_v42, 0.0  ;;  %v1184_v59 = vadd.f32 %v5102_v9, %v6101_v12  ;;  %v1183_v61 = vadd.f32 %v5101_v11, %v6101_v12 }
 0x5b7   : > { %v1196_v40 = vmax.f32 %v1180_v28, 0.0  ;;  %v1201_v44 = vmax.f32 %v1185_v55, 0.0  ;;  %v1186_v9 = vadd.f32 %v5106_v33, %v6101_v12 }
 0x5b8   : > { %v1218_v43 = vmul.f32 %v6109_v35, %v1198_v38  ;;  %v1217_v58 = vmul.f32 %v6109_v35, %v1197_v39  ;;  %v1200_v20 = vmax.f32 %v1184_v59, 0.0  ;;  %v1199_v47 = vmax.f32 %v1183_v61, 0.0 }
 0x5b9   : > { %v1216_v41 = vmul.f32 %v6109_v35, %v1196_v40  ;;  %v1221_v52 = vmul.f32 %v6109_v35, %v1201_v44  ;;  %v1202_v5 = vmax.f32 %v1186_v9, 0.0 }
 0x5ba   : > { %v1220_v8 = vmul.f32 %v6109_v35, %v1200_v20  ;;  %v1219_v37 = vmul.f32 %v6109_v35, %v1199_v47 }
 0x5bb   : > { %v1222_v11 = vmul.f32 %v6109_v35, %v1202_v5 }
 0x5bc   : > { %1233 = vadd.xlane.f32.xlu2 %v1212_v0  ;;  %1231 = vadd.xlane.f32.xlu0 %v1211_v3 }
 0x5bd   : > { %1229 = vadd.xlane.f32.xlu1 %v1210_v19  ;;  %v1136_v63 = vpop.f32.mrf.mxu1 }
 0x5c4   : > { %1239 = vadd.xlane.f32.xlu2 %v1215_v34  ;;  %1237 = vadd.xlane.f32.xlu0 %v1214_v45 }
 0x5c5   : > { %1235 = vadd.xlane.f32.xlu1 %v1213_v48 }
 0x5cc   : > { %1245 = vadd.xlane.f32.xlu2 %v1218_v43  ;;  %1243 = vadd.xlane.f32.xlu0 %v1217_v58 }
 0x5cd   : > { %1241 = vadd.xlane.f32.xlu1 %v1216_v41 }
 0x5d4   : > { %1251 = vadd.xlane.f32.xlu2 %v1221_v52  ;;  %1249 = vadd.xlane.f32.xlu0 %v1220_v8 }
 0x5d5   : > { %1247 = vadd.xlane.f32.xlu1 %v1219_v37 }
 0x5dd   : > { %1253 = vadd.xlane.f32.xlu1 %v1222_v11 }
 0x627   : > { %v1228_v30 = vpop.xlane.xlu2 %1227  ;;  %v1226_v57 = vpop.xlane.xlu0 %1225 }
 0x628   : > { %v1224_v18 = vpop.xlane.xlu1 %1223  ;;  %v1272_v24 = vperm.slane %v1226_v57, %v5880_v50  ;;  %v1274_v4 = vperm.slane %v1228_v30, %v5883_v51 }
 0x629   : > { %v1271_v60 = vperm.slane %v1224_v18, %v5877_v49 }
 0x62b   : > { %v1273_v33 = vsel %vm750_vm2, %v1272_v24, %v1271_v60 }
 0x62c   : > { %v1275_v35 = vsel %vm754_vm3, %v1274_v4, %v1273_v33  ;;  %v4953_v4 = vld [vmem:[%s5964_s20 + $0x20] sm:$0xff]  ;;  %v4952_v33 = vld [vmem:[%s5964_s20 + $0x18] sm:$0xff] }
 0x62f   : > { %v1234_v15 = vpop.xlane.xlu2 %1233  ;;  %v1232_v0 = vpop.xlane.xlu0 %1231 }
 0x630   : > { %v1230_v3 = vpop.xlane.xlu1 %1229  ;;  %v1278_v16 = vperm.slane %v1232_v0, %v5893_v62  ;;  %v1280_v27 = vperm.slane %v1234_v15, %v5901_v2  ;;  %v4956_v15 = vld [vmem:[%s5964_s20 + $0x38] sm:$0xff]  ;;  %v4955_v0 = vld [vmem:[%s5964_s20 + $0x30] sm:$0xff] }
 0x631   : > { %v1276_v12 = vperm.slane %v1230_v3, %v5887_v26  ;;  %1380 = vmatpush.bf16.msra.mxu2 %v4956_v15  ;;  %v4954_v3 = vld [vmem:[%s5964_s20 + $0x28] sm:$0xff] }
 0x633   : > { %v1277_v17 = vsel %vm758_vm4, %v1276_v12, %v1275_v35 }
 0x634   : > { %v1279_v6 = vsel %vm762_vm5, %v1278_v16, %v1277_v17 }
 0x635   : > { %v1281_v45 = vsel %vm766_vm6, %v1280_v27, %v1279_v6  ;;  %1381 = vmatpush.bf16.msra.mxu2 %v4955_v0  ;;  %v4964_v6 = vld [vmem:[%s7405_s8 + $0x38] sm:$0xff]  ;;  %v4949_v27 = vld [vmem:[%s5964_s20] sm:$0xff] }
 0x636   : > { %1483 = vmatpush.bf16.msra.mxu3 %v4964_v6 }
 0x637   : > { %v1238_v19 = vpop.xlane.xlu0 %1237  ;;  %v1240_v63 = vpop.xlane.xlu2 %1239 }
 0x638   : > { %v1236_v29 = vpop.xlane.xlu1 %1235  ;;  %v1284_v34 = vperm.slane %v1238_v19, %v5906_v13  ;;  %v1286_v39 = vperm.slane %v1240_v63, %v5917_v32  ;;  %v4950_v63 = vld [vmem:[%s5964_s20 + $0x8] sm:$0xff] }
 0x639   : > { %v1282_v10 = vperm.slane %v1236_v29, %v5898_v1  ;;  %1382 = vmatpush.bf16.msra.mxu2 %v4954_v3  ;;  %v4951_v29 = vld [vmem:[%s5964_s20 + $0x10] sm:$0xff] }
 0x63b   : > { %v1283_v46 = vsel %vm770_vm7, %v1282_v10, %v1281_v45  ;;  %v4963_v10 = vld [vmem:[%s7405_s8 + $0x30] sm:$0xff]  ;;  %v4961_v45 = vld [vmem:[%s7405_s8 + $0x20] sm:$0xff] }
 0x63c   : > { %v1285_v28 = vsel %vm774_vm8, %v1284_v34, %v1283_v46  ;;  %1484 = vmatpush.bf16.msra.mxu3 %v4963_v10  ;;  %v4962_v34 = vld [vmem:[%s7405_s8 + $0x28] sm:$0xff]  ;;  %v4960_v46 = vld [vmem:[%s7405_s8 + $0x18] sm:$0xff] }
 0x63d   : > { %v1287_v58 = vsel %vm778_vm9, %v1286_v39, %v1285_v28  ;;  %1383 = vmatpush.bf16.msra.mxu2 %v4953_v4  ;;  %v4958_v28 = vld [vmem:[%s7405_s8 + $0x8] sm:$0xff] }
 0x63f   : > { %v1244_v42 = vpop.xlane.xlu0 %1243  ;;  %v1246_v40 = vpop.xlane.xlu2 %1245 }
 0x640   : > { %v1242_v48 = vpop.xlane.xlu1 %1241  ;;  %v1290_v43 = vperm.slane %v1244_v42, %v5921_v36  ;;  %v1292_v44 = vperm.slane %v1246_v40, %v5929_v23  ;;  %1485 = vmatpush.bf16.msra.mxu3 %v4962_v34  ;;  %v4959_v42 = vld [vmem:[%s7405_s8 + $0x10] sm:$0xff] }
 0x641   : > { %v1288_v38 = vperm.slane %v1242_v48, %v5914_v31  ;;  %1384 = vmatpush.bf16.msra.mxu2 %v4952_v33 }
 0x643   : > { %v1289_v55 = vsel %vm782_vm10, %v1288_v38, %v1287_v58 }
 0x644   : > { %v1291_v59 = vsel %vm7440_vm11, %v1290_v43, %v1289_v55  ;;  %vm7444_vm11 = vcmask 1048512   ;;  %1486 = vmatpush.bf16.msra.mxu3 %v4961_v45  ;;  %v1393_v43 = vld [vmem:[%s7404_s7] sm:$0x1] }
 0x645   : > { %v1293_v52 = vsel %vm7441_vm12, %v1292_v44, %v1291_v59  ;;  %vm7446_vm12 = vcmask 1040384   ;;  %1385 = vmatpush.bf16.msra.mxu2 %v4951_v29  ;;  %v1394_v58 = vadd.f32 %v1393_v43, %v6129_v21  ;;  %v4453_v43 = vld [vmem:[%s7402_s5 + $0x24] sm:$0xf0] }
 0x647   : > { %v1250_v41 = vpop.xlane.xlu0 %1249  ;;  %v1252_v37 = vpop.xlane.xlu2 %1251  ;;  %v4400_v55 = vmul.f32 -1.442695, %v1394_v58 }
 0x648   : > { %v1248_v61 = vpop.xlane.xlu1 %1247  ;;  %v1296_v47 = vperm.slane %v1250_v41, %v5936_v54  ;;  %v1298_v5 = vperm.slane %v1252_v37, %v5944_v7  ;;  %1487 = vmatpush.bf16.msra.mxu3 %v4960_v46 }
 0x649   : > { %v1294_v20 = vperm.slane %v1248_v61, %v5933_v53  ;;  %1386 = vmatpush.bf16.msra.mxu2 %v4950_v63  ;;  %v4957_v61 = vld [vmem:[%s7405_s8] sm:$0xff] }
 0x64b   : > { %v1295_v8 = vsel %vm7442_vm13, %v1294_v20, %v1293_v52 }
 0x64c   : > { %v1297_v9 = vsel %vm798_vm14, %v1296_v47, %v1295_v8  ;;  %1488 = vmatpush.bf16.msra.mxu3 %v4959_v42 }
 0x64d   : > { %v1299_v57 = vsel %vm7443_vm15, %v1298_v5, %v1297_v9  ;;  %1387 = vmatpush.bf16.msra.mxu2 %v4949_v27 }
 0x650   : > { %v1254_v11 = vpop.xlane.xlu1 %1253  ;;  %1489 = vmatpush.bf16.msra.mxu3 %v4958_v28 }
 0x651   : > { %v1300_v30 = vperm.slane %v1254_v11, %v5948_v14 }
 0x653   : > { %v1301_v18 = vsel %vm7444_vm11, %v1300_v30, %v1299_v57 }
 0x654   : > { %v1303_v24 = vsel %vm7445_vm0, %v1301_v18, -1e+30  ;;  %vm7447_vm0 = vmmov %vm7446_vm12  ;;  %1490 = vmatpush.bf16.msra.mxu3 %v4957_v61 }
 0x655   : > { %v1304_v60 = vsel %vm7446_vm12, %v1303_v24, -inf }
 0x656   : > { %1305 = vmax.xlane.f32.xlu0 %v1304_v60  ;;  %v4401_v60 = vld [vmem:[%s6046_s11 + $0x1] sm:$0x1] }
 0x657   : > { %v1417_v15 = vadd.f32 %v4401_v60, %v6099_v25  ;;  %v6300_v60 = vld [vmem:[%s5764_s28 + $0x8] sm:$0xff]  }
 0x6c9   : > { %v1306_v12 = vpop.xlane.xlu0 %1305 }
 0x6ca   : > { %v1307_v16 = vsub.f32 %v1303_v24, %v1306_v12 }
 0x6cc   : > { %v1308_v35 = vmul.f32 1.442695, %v1307_v16 }
 0x6ce   : > { %5433 = vpow2.f32 %v1308_v35 }
 0x6d4   : > { %v5434_v17 = vpop.eup %5433 }
 0x6d5   : > { %v1310_v19 = vsel %vm7447_vm0, %v5434_v17, 0.0 }
 0x6d6   : > { %1311 = vadd.xlane.f32.xlu2 %v1310_v19 }
 0x749   : > { %v1312_v48 = vpop.xlane.xlu2 %1311 }
 0x74a   : > { %5435 = vrcp.f32 %v1312_v48 }
 0x74b   : > { %5437 = vpow2.f32 %v4400_v55  ;;  %v4441_v55 = vld [vmem:[%s7402_s5 + $0xc] sm:$0xf0] }
 0x750   : > { %v5436_v38 = vpop.eup %5435 }
 0x751   : > { %v1314_v39 = vmul.f32 %v5436_v38, %v5434_v17  ;;  %v5438_v59 = vpop.eup %5437 }
 0x752   : > { %v1398_v41 = vadd.f32 1.0, %v5438_v59  ;;  %v4451_v59 = vld [vmem:[%s7402_s5 + $0x18] sm:$0xf] }
 0x753   : > { %4436 = vst [vmem:[%s6030_s29 + $0x1] sm:$0x1] %v1314_v39  ;;  %v1315_v40 = vpack.c.bf16 %v1314_v39, %v1314_v39 }
 0x754   : > { %5439 = vrcp.f32 %v1398_v41  ;;  %v1410_v37 = vand.u32 2147483648, %v1398_v41  ;;  %vm1404_vm15 = vweird.f32 %v1398_v41  ;;  %v1408_v21 = vand.u32 2147483647, %v1398_v41 }
 0x755   : > { %1388 = vmatmul.bf16.vlgmr.msra.gmra.mxu2 %v1315_v40  ;;  %v4968_v40 = vld [vmem:[%s7402_s5 + $0x1c] sm:$0xf] }
 0x756   : > { %v1411_v5 = vor.u32 1.1754944e-38, %v1410_v37  ;;  %vm1409_vm12 = vcmp.eq.f32.partialorder %v1408_v21, 8.507059e+37  ;;  %v4456_v58 = vor.u32 %v4968_v40, %v4453_v43 }
 0x758   : > { %1609 = vmatpush.bf16.msra.mxu1 %v4456_v58  ;;  %v6345_v58 = vld [vmem:[%s5764_s28 + $0x20] sm:$0xff]  }
 0x75a   : > { %v5440_v44 = vpop.eup %5439 }
 0x75b   : > { %v1400_v20 = vmul.f32 %v5440_v44, %v1398_v41  ;;  %vm1405_vm13 = vweird.f32 %v5440_v44  ;;  %v4969_v41 = vld [vmem:[%s7402_s5 + $0x20] sm:$0xf0] }
 0x75c   : > { %vm1406_vm11 = vmor %vm1404_vm15, %vm1405_vm13  ;;  %v4452_v61 = vor.u32 %v4969_v41, %v4451_v59 }
 0x75d   : > { %v1401_v47 = vsub.f32 1.0, %v1400_v20  ;;  %v4966_v20 = vld [vmem:[%s7402_s5 + $0x8] sm:$0xf0] }
 0x75e   : > { %1596 = vmatpush.bf16.msra.mxu0 %v4452_v61  ;;  %v5157_v61 = vunpack.c.l.bf16 %v6345_v58 }
 0x75f   : > { %v1402_v52 = vmul.f32 %v5440_v44, %v1401_v47 }
 0x761   : > { %v1403_v8 = vadd.f32 %v5440_v44, %v1402_v52 }
 0x763   : > { %v1407_v9 = vsel %vm1406_vm11, %v5440_v44, %v1403_v8  ;;  %v4439_v44 = vld [vmem:[%s7402_s5] sm:$0xf] }
 0x764   : > { %v1412_v30 = vsel %vm1409_vm12, %v1411_v5, %v1407_v9  ;;  %v4440_v52 = vor.u32 %v4966_v20, %v4439_v44  ;;  %v4459_v9 = vld [vmem:[%s7402_s5 + $0x20] sm:$0xf]  ;;  %v4970_v5 = vld [vmem:[%s7402_s5 + $0x28] sm:$0xf0]  ;;  %vm7449_vm12 = vcmask 720512  }
 0x766   : > { %1597 = vmatpush.bf16.msra.mxu0 %v4440_v52 }
 0x7d8   : > { %v1389_v11 = vpop.f32.mrf.mxu2 }
 0x7d9   : > { %v1414_v57 = vmul.f32 %v1412_v30, %v1389_v11  ;;  %v4447_v11 = vld [vmem:[%s7402_s5 + $0x8] sm:$0xf]  ;;  %v4460_v30 = vor.u32 %v4970_v5, %v4459_v9 }
 0x7db   : > { %v1418_v18 = vpack.c.bf16 %v1414_v57, %v1414_v57  ;;  %v4967_v57 = vld [vmem:[%s7402_s5 + $0x10] sm:$0xf0]  ;;  %1622 = vmatpush.bf16.msrb.mxu0 %v4460_v30 }
 0x7dd   : > { %1491 = vmatmul.bf16.vlgmr.msra.gmra.mxu3 %v1418_v18  ;;  %v4448_v18 = vor.u32 %v4967_v57, %v4447_v11  ;;  %v6368_v57 = vld [vmem:[%s5764_s28 + $0x28] sm:$0xff]  }
 0x7df   : > { %1623 = vmatpush.bf16.msrb.mxu0 %v4448_v18 }
 0x7e0   : > { %v1391_v24 = vpop.f32.mrf.mxu2 }
 0x860   : > { %v1492_v0 = vpop.f32.mrf.mxu3 }
 0x861   : > { %v1496_v3 = vadd.f32 %v1492_v0, %v1417_v15  ;;  %v6303_v15 = vld [vmem:[%s5764_s28] sm:$0xff]   ;;  %v5145_v0 = vunpack.c.l.bf16 %v6300_v60 }
 0x863   : > { %5441 = vtanh.f32 %v1496_v3  ;;  %v4434_v12 = vmul.f32 -1.442695, %v1496_v3  ;;  %v5142_v3 = vunpack.c.h.bf16 %v6303_v15 }
 0x865   : > { %5443 = vpow2.f32 %v4434_v12 }
 0x868   : > { %v1494_v4 = vpop.f32.mrf.mxu3 }
 0x869   : > { %v5442_v33 = vpop.eup %5441  ;;  %v5141_v4 = vunpack.c.l.bf16 %v6303_v15 }
 0x86a   : > { %1519 = vrot.lane.b32.xlu1 %v5442_v33, %s7448_s2  ;;  %v6309_v33 = vld [vmem:[%s5764_s28 + $0x10] sm:$0xff]  }
 0x86b   : > { %v5444_v16 = vpop.eup %5443 }
 0x86c   : > { %v1500_v35 = vadd.f32 1.0, %v5444_v16 }
 0x86e   : > { %5445 = vrcp.f32 %v1500_v35  ;;  %v1512_v10 = vand.u32 2147483648, %v1500_v35  ;;  %vm1506_vm13 = vweird.f32 %v1500_v35  ;;  %v1510_v25 = vand.u32 2147483647, %v1500_v35 }
 0x870   : > { %v1513_v34 = vor.u32 1.1754944e-38, %v1512_v10  ;;  %vm1511_vm11 = vcmp.eq.f32.partialorder %v1510_v25, 8.507059e+37  ;;  %v5149_v10 = vunpack.c.l.bf16 %v6309_v33  ;;  %v5146_v25 = vunpack.c.h.bf16 %v6300_v60 }
 0x874   : > { %v5446_v17 = vpop.eup %5445 }
 0x875   : > { %v1502_v19 = vmul.f32 %v5446_v17, %v1500_v35  ;;  %vm1507_vm0 = vweird.f32 %v5446_v17 }
 0x876   : > { %vm1508_vm15 = vmor %vm1506_vm13, %vm1507_vm0  ;;  %vm7450_vm0 = vcmask 786112   ;;  %vm7451_vm13 = vcmask 851712  }
 0x877   : > { %v1503_v29 = vsub.f32 1.0, %v1502_v19 }
 0x879   : > { %v1504_v63 = vmul.f32 %v5446_v17, %v1503_v29  ;;  %v6322_v29 = vld [vmem:[%s7403_s6] ss:$0 sm:$0xff] }
 0x87b   : > { %v1505_v6 = vadd.f32 %v5446_v17, %v1504_v63 }
 0x87d   : > { %v1509_v27 = vsel %vm1508_vm15, %v5446_v17, %v1505_v6  ;;  %v5150_v17 = vunpack.c.h.bf16 %v6309_v33  ;;  %vm7452_vm15 = vcmask 982912  }
 0x87e   : > { %v1514_v46 = vsel %vm1511_vm11, %v1513_v34, %v1509_v27  ;;  %vm7453_vm11 = vcmask 1048512  }
 0x87f   : > { %v1517_v48 = vmul.f32 %v1514_v46, %v6051_v22  ;;  %v4965_v22 = vld [vmem:[%s7402_s5 + $0x4] sm:$0xf] }
 0x880   : > { %v4444_v47 = vor.u32 %v4965_v22, %v4441_v55  ;;  %v6348_v55 = vld [vmem:[%s5764_s28 + $0x18] sm:$0xff]  }
 0x881   : > { %v5154_v44 = vunpack.c.h.bf16 %v6348_v55 }
 0x882   : > { %1610 = vmatpush.bf16.msra.mxu1 %v4444_v47  ;;  %v5153_v47 = vunpack.c.l.bf16 %v6348_v55 }
 0x8dc   : > { %v1520_v45 = vpop.permute.xlu1 %1519 }
 0x8dd   : > { %v1522_v42 = vmul.f32 %v1520_v45, %v1514_v46 }
 0x8df   : > { %1524 = vrot.lane.b32.xlu0 %v1522_v42, %s7439_s3 }
 0x951   : > { %v1525_v28 = vpop.permute.xlu0 %1524 }
 0x952   : > { %v6251_v38 = vadd.f32 %v1525_v28, %v1517_v48 }
 0x954   : > { %5447 = vtanh.f32 %v6251_v38 }
 0x95a   : > { %v5448_v39 = vpop.eup %5447 }
 0x95b   : > { %1530 = vrot.lane.b32.xlu2 %v5448_v39, %s7448_s2 }
 0x9b5   : > { %v1531_v8 = vpop.permute.xlu2 %1530 }
 0x9b6   : > { %v6279_v37 = vmul.f32 %v1531_v8, %v1514_v46 }
 0x9b8   : > { %v1543_v21 = vpack.c.bf16 %v6279_v37, %v6279_v37 }
 0x9ba   : > { %1553 = vrot.lane.b32.xlu0 %v1543_v21, %s7439_s3 }
 0xa2c   : > { %v1554_v24 = vpop.permute.xlu0 %1553 }
 0xa2d   : > { %4461 = vmatmul.msk.bf16.vlgmr.msra.gmra.mxu0 %vm568_vm1, %v1554_v24  ;;  %4462 = vmatmul.msk.bf16.vlgmr.msra.gmra.mxu1 %vm568_vm1, %v1554_v24 }
 0xa3d   : > { %4463 = vmatmul.msk.bf16.vlgmr.msrb.gmra.mxu0 %vm568_vm1, %v1554_v24 }
 0xaaa   : > { %v6311_v12 = vpop.f32.mrf.mxu0  ;;  %v1612_v16 = vpop.f32.mrf.mxu1 }
 0xaab   : > { %v6313_v35 = vperm.slane %v1612_v16, 0  ;;  %v5162_v16 = vunpack.c.h.bf16 %v6368_v57 }
 0xaad   : > { %v1664_v19 = vadd.f32 %v5145_v0, %v6313_v35  ;;  %v1663_v63 = vadd.f32 %v5142_v3, %v6313_v35  ;;  %v1662_v6 = vadd.f32 %v5141_v4, %v6313_v35  ;;  %v1667_v46 = vadd.f32 %v5150_v17, %v6313_v35 }
 0xaae   : > { %v1666_v39 = vadd.f32 %v5149_v10, %v6313_v35  ;;  %v1665_v22 = vadd.f32 %v5146_v25, %v6313_v35  ;;  %v1670_v21 = vadd.f32 %v5157_v61, %v6313_v35  ;;  %v1669_v9 = vadd.f32 %v5154_v44, %v6313_v35 }
 0xaaf   : > { %v1680_v27 = vmax.f32 %v1664_v19, 0.0  ;;  %v1679_v34 = vmax.f32 %v1663_v63, 0.0  ;;  %v1678_v45 = vmax.f32 %v1662_v6, 0.0  ;;  %v1683_v59 = vmax.f32 %v1667_v46, 0.0 }
 0xab0   : > { %v1682_v41 = vmax.f32 %v1666_v39, 0.0  ;;  %v1681_v20 = vmax.f32 %v1665_v22, 0.0  ;;  %v1668_v30 = vadd.f32 %v5153_v47, %v6313_v35  ;;  %v1686_v18 = vmax.f32 %v1670_v21, 0.0  ;;  %v6386_v39 = vld [vmem:[%s5764_s28 + $0x38] sm:$0xff]  }
 0xab1   : > { %v1700_v42 = vmul.f32 %v6322_v29, %v1680_v27  ;;  %v1699_v48 = vmul.f32 %v6322_v29, %v1679_v34  ;;  %v1698_v28 = vmul.f32 %v6322_v29, %v1678_v45  ;;  %v1703_v52 = vmul.f32 %v6322_v29, %v1683_v59 }
 0xab2   : > { %v1601_v40 = vpop.f32.mrf.mxu0  ;;  %v1614_v43 = vpop.f32.mrf.mxu1  ;;  %v1702_v8 = vmul.f32 %v6322_v29, %v1682_v41  ;;  %v1701_v11 = vmul.f32 %v6322_v29, %v1681_v20  ;;  %v1685_v24 = vmax.f32 %v1669_v9, 0.0  ;;  %v5161_v19 = vunpack.c.l.bf16 %v6368_v57 }
 0xab3   : > { %1718 = vadd.xlane.f32.xlu0 %v1700_v42  ;;  %1716 = vadd.xlane.f32.xlu2 %v1699_v48  ;;  %v1684_v63 = vmax.f32 %v1668_v30, 0.0  ;;  %v5158_v6 = vunpack.c.h.bf16 %v6345_v58  ;;  %v1706_v27 = vmul.f32 %v6322_v29, %v1686_v18  ;;  %v1673_v45 = vadd.f32 %v5162_v16, %v6313_v35  ;;  %v6389_v40 = vld [vmem:[%s5764_s28 + $0x30] sm:$0xff]  }
 0xab4   : > { %1714 = vadd.xlane.f32.xlu1 %v1698_v28  ;;  %v1705_v34 = vmul.f32 %v6322_v29, %v1685_v24  ;;  %v1672_v46 = vadd.f32 %v5161_v19, %v6313_v35  ;;  %v5169_v59 = vunpack.c.l.bf16 %v6386_v39  ;;  %v5166_v41 = vunpack.c.h.bf16 %v6389_v40 }
 0xab5   : > { %v1704_v48 = vmul.f32 %v6322_v29, %v1684_v63  ;;  %v1671_v28 = vadd.f32 %v5158_v6, %v6313_v35  ;;  %v1689_v43 = vmax.f32 %v1673_v45, 0.0 }
 0xab6   : > { %v1688_v22 = vmax.f32 %v1672_v46, 0.0  ;;  %v1676_v9 = vadd.f32 %v5169_v59, %v6313_v35 }
 0xab7   : > { %v1687_v20 = vmax.f32 %v1671_v28, 0.0 }
 0xab8   : > { %v1708_v21 = vmul.f32 %v6322_v29, %v1688_v22  ;;  %v1692_v24 = vmax.f32 %v1676_v9, 0.0 }
 0xab9   : > { %v1707_v30 = vmul.f32 %v6322_v29, %v1687_v20 }
 0xaba   : > { %v6361_v5 = vpop.f32.mrf.mxu0  ;;  %v1712_v45 = vmul.f32 %v6322_v29, %v1692_v24 }
 0xabb   : > { %1724 = vadd.xlane.f32.xlu0 %v1703_v52  ;;  %1722 = vadd.xlane.f32.xlu2 %v1702_v8  ;;  %v5165_v52 = vunpack.c.l.bf16 %v6389_v40  ;;  %v1709_v8 = vmul.f32 %v6322_v29, %v1689_v43 }
 0xabc   : > { %1720 = vadd.xlane.f32.xlu1 %v1701_v11  ;;  %v1675_v11 = vadd.f32 %v5166_v41, %v6313_v35 }
 0xabd   : > { %v1674_v18 = vadd.f32 %v5165_v52, %v6313_v35 }
 0xabe   : > { %v1691_v63 = vmax.f32 %v1675_v11, 0.0 }
 0xac0   : > { %v1711_v46 = vmul.f32 %v6322_v29, %v1691_v63 }
 0xac2   : > { %v1627_v42 = vpop.f32.mrf.mxu0 }
 0xac3   : > { %1730 = vadd.xlane.f32.xlu0 %v1706_v27  ;;  %1728 = vadd.xlane.f32.xlu2 %v1705_v34  ;;  %v1690_v27 = vmax.f32 %v1674_v18, 0.0  ;;  %v5170_v34 = vunpack.c.h.bf16 %v6386_v39 }
 0xac4   : > { %1726 = vadd.xlane.f32.xlu1 %v1704_v48 }
 0xac5   : > { %v1710_v42 = vmul.f32 %v6322_v29, %v1690_v27  ;;  %v1677_v48 = vadd.f32 %v5170_v34, %v6313_v35 }
 0xac7   : > { %v1693_v28 = vmax.f32 %v1677_v48, 0.0 }
 0xac9   : > { %v1713_v43 = vmul.f32 %v6322_v29, %v1693_v28 }
 0xacb   : > { %1736 = vadd.xlane.f32.xlu0 %v1709_v8  ;;  %1734 = vadd.xlane.f32.xlu2 %v1708_v21 }
 0xacc   : > { %1732 = vadd.xlane.f32.xlu1 %v1707_v30 }
 0xad3   : > { %1742 = vadd.xlane.f32.xlu0 %v1712_v45  ;;  %1740 = vadd.xlane.f32.xlu2 %v1711_v46 }
 0xad4   : > { %1738 = vadd.xlane.f32.xlu1 %v1710_v42 }
 0xadc   : > { %1744 = vadd.xlane.f32.xlu1 %v1713_v43 }
 0xb26   : > { %v1719_v22 = vpop.xlane.xlu0 %1718  ;;  %v1717_v20 = vpop.xlane.xlu2 %1716 }
 0xb27   : > { %v1715_v8 = vpop.xlane.xlu1 %1714  ;;  %v1763_v21 = vperm.slane %v1717_v20, %v5880_v50  ;;  %v1765_v24 = vperm.slane %v1719_v22, %v5883_v51 }
 0xb28   : > { %v1762_v9 = vperm.slane %v1715_v8, %v5877_v49 }
 0xb2a   : > { %v1764_v35 = vsel %vm750_vm2, %v1763_v21, %v1762_v9 }
 0xb2b   : > { %v1766_v29 = vsel %vm754_vm3, %v1765_v24, %v1764_v35 }
 0xb2e   : > { %v1725_v11 = vpop.xlane.xlu0 %1724  ;;  %v1723_v30 = vpop.xlane.xlu2 %1722 }
 0xb2f   : > { %v1721_v18 = vpop.xlane.xlu1 %1720  ;;  %v1769_v27 = vperm.slane %v1723_v30, %v5893_v62  ;;  %v1771_v20 = vperm.slane %v1725_v11, %v5901_v2 }
 0xb30   : > { %v1767_v63 = vperm.slane %v1721_v18, %v5887_v26 }
 0xb32   : > { %v1768_v45 = vsel %vm758_vm4, %v1767_v63, %v1766_v29 }
 0xb33   : > { %v1770_v28 = vsel %vm762_vm5, %v1769_v27, %v1768_v45 }
 0xb34   : > { %v1772_v8 = vsel %vm766_vm6, %v1771_v20, %v1770_v28 }
 0xb36   : > { %v1729_v46 = vpop.xlane.xlu2 %1728  ;;  %v1731_v48 = vpop.xlane.xlu0 %1730 }
 0xb37   : > { %v1727_v42 = vpop.xlane.xlu1 %1726  ;;  %v1775_v22 = vperm.slane %v1729_v46, %v5906_v13  ;;  %v1777_v35 = vperm.slane %v1731_v48, %v5917_v32 }
 0xb38   : > { %v1773_v43 = vperm.slane %v1727_v42, %v5898_v1 }
 0xb3a   : > { %v1774_v21 = vsel %vm770_vm7, %v1773_v43, %v1772_v8 }
 0xb3b   : > { %v1776_v18 = vsel %vm774_vm8, %v1775_v22, %v1774_v21 }
 0xb3c   : > { %v1778_v29 = vsel %vm778_vm9, %v1777_v35, %v1776_v18 }
 0xb3e   : > { %v1735_v9 = vpop.xlane.xlu2 %1734  ;;  %v1737_v63 = vpop.xlane.xlu0 %1736 }
 0xb3f   : > { %v1733_v30 = vpop.xlane.xlu1 %1732  ;;  %v1781_v27 = vperm.slane %v1735_v9, %v5921_v36  ;;  %v1783_v28 = vperm.slane %v1737_v63, %v5929_v23 }
 0xb40   : > { %v1779_v24 = vperm.slane %v1733_v30, %v5914_v31 }
 0xb42   : > { %v1780_v11 = vsel %vm782_vm10, %v1779_v24, %v1778_v29  ;;  %v4978_v29 = vld [vmem:[%s5964_s20 + $0x38] sm:$0xff] }
 0xb43   : > { %v1782_v45 = vsel %vm7449_vm12, %v1781_v27, %v1780_v11  ;;  %vm7454_vm12 = vcmp.lt.s32.totalorder %v5877_v49, 16  ;;  %1871 = vmatpush.bf16.msrb.mxu1 %v4978_v29  ;;  %v4977_v11 = vld [vmem:[%s5964_s20 + $0x30] sm:$0xff] }
 0xb44   : > { %v1784_v48 = vsel %vm7450_vm0, %v1783_v28, %v1782_v45  ;;  %vm7455_vm0 = vcmask 1040384   ;;  %v4976_v45 = vld [vmem:[%s5964_s20 + $0x28] sm:$0xff] }
 0xb46   : > { %v1741_v46 = vpop.xlane.xlu2 %1740  ;;  %v1743_v8 = vpop.xlane.xlu0 %1742 }
 0xb47   : > { %v1739_v42 = vpop.xlane.xlu1 %1738  ;;  %v1787_v20 = vperm.slane %v1741_v46, %v5936_v54  ;;  %v1789_v9 = vperm.slane %v1743_v8, %v5944_v7  ;;  %1872 = vmatpush.bf16.msrb.mxu1 %v4977_v11  ;;  %v4975_v46 = vld [vmem:[%s5964_s20 + $0x20] sm:$0xff]  ;;  %v4973_v8 = vld [vmem:[%s5964_s20 + $0x10] sm:$0xff]  ;;  %v4980_v11 = vld [vmem:[%s7405_s8 + $0x8] sm:$0xff] }
 0xb48   : > { %v1785_v43 = vperm.slane %v1739_v42, %v5933_v53  ;;  %v4974_v42 = vld [vmem:[%s5964_s20 + $0x18] sm:$0xff] }
 0xb4a   : > { %v1786_v22 = vsel %vm7451_vm13, %v1785_v43, %v1784_v48  ;;  %vm7456_vm13 = vmmov %vm7455_vm0 }
 0xb4b   : > { %v1788_v21 = vsel %vm798_vm14, %v1787_v20, %v1786_v22  ;;  %1873 = vmatpush.bf16.msrb.mxu1 %v4976_v45 }
 0xb4c   : > { %v1790_v24 = vsel %vm7452_vm15, %v1789_v9, %v1788_v21  ;;  %v4972_v21 = vld [vmem:[%s5964_s20 + $0x8] sm:$0xff]  ;;  %v4986_v9 = vld [vmem:[%s7405_s8 + $0x38] sm:$0xff] }
 0xb4d   : > { %1974 = vmatpush.bf16.msrb.mxu2 %v4986_v9 }
 0xb4f   : > { %v1745_v30 = vpop.xlane.xlu1 %1744  ;;  %1874 = vmatpush.bf16.msrb.mxu1 %v4975_v46 }
 0xb50   : > { %v1791_v18 = vperm.slane %v1745_v30, %v5948_v14  ;;  %v4985_v30 = vld [vmem:[%s7405_s8 + $0x30] sm:$0xff] }
 0xb51   : > { %1975 = vmatpush.bf16.msrb.mxu2 %v4985_v30 }
 0xb52   : > { %v1792_v35 = vsel %vm7453_vm11, %v1791_v18, %v1790_v24  ;;  %v4971_v18 = vld [vmem:[%s5964_s20] sm:$0xff]  ;;  %v4984_v24 = vld [vmem:[%s7405_s8 + $0x28] sm:$0xff] }
 0xb53   : > { %v1794_v63 = vsel %vm7454_vm12, %v1792_v35, -1e+30  ;;  %1875 = vmatpush.bf16.msrb.mxu1 %v4974_v42  ;;  %v4983_v35 = vld [vmem:[%s7405_s8 + $0x20] sm:$0xff] }
 0xb54   : > { %v1795_v27 = vsel %vm7455_vm0, %v1794_v63, -inf }
 0xb55   : > { %1796 = vmax.xlane.f32.xlu2 %v1795_v27  ;;  %1976 = vmatpush.bf16.msrb.mxu2 %v4984_v24  ;;  %v4981_v27 = vld [vmem:[%s7405_s8 + $0x10] sm:$0xff] }
 0xb57   : > { %1876 = vmatpush.bf16.msrb.mxu1 %v4973_v8 }
 0xb59   : > { %1977 = vmatpush.bf16.msrb.mxu2 %v4983_v35 }
 0xb5b   : > { %1877 = vmatpush.bf16.msrb.mxu1 %v4972_v21  ;;  %v4979_v21 = vld [vmem:[%s7405_s8] sm:$0xff] }
 0xb5f   : > { %1878 = vmatpush.bf16.msrb.mxu1 %v4971_v18 }
 0xbc8   : > { %v1797_v28 = vpop.xlane.xlu2 %1796 }
 0xbc9   : > { %v1798_v43 = vsub.f32 %v1794_v63, %v1797_v28  ;;  %v4982_v63 = vld [vmem:[%s7405_s8 + $0x18] sm:$0xff]  ;;  %v1884_v28 = vld [vmem:[%s7404_s7] sm:$0x1] }
 0xbca   : > { %1978 = vmatpush.bf16.msrb.mxu2 %v4982_v63 }
 0xbcb   : > { %v1799_v20 = vmul.f32 1.442695, %v1798_v43  ;;  %v1885_v43 = vadd.f32 %v1884_v28, %v6361_v5  ;;  %v4497_v28 = vld [vmem:[%s6046_s11 + $0x2] sm:$0x1] }
 0xbcd   : > { %5449 = vpow2.f32 %v1799_v20  ;;  %v4496_v20 = vmul.f32 -1.442695, %v1885_v43  ;;  %v1908_v43 = vadd.f32 %v4497_v28, %v6311_v12 }
 0xbce   : > { %1979 = vmatpush.bf16.msrb.mxu2 %v4981_v27 }
 0xbd2   : > { %1980 = vmatpush.bf16.msrb.mxu2 %v4980_v11 }
 0xbd3   : > { %v5450_v48 = vpop.eup %5449 }
 0xbd4   : > { %v1801_v22 = vsel %vm7456_vm13, %v5450_v48, 0.0 }
 0xbd5   : > { %1802 = vadd.xlane.f32.xlu0 %v1801_v22 }
 0xbd6   : > { %1981 = vmatpush.bf16.msrb.mxu2 %v4979_v21 }
 0xc48   : > { %v1803_v29 = vpop.xlane.xlu0 %1802 }
 0xc49   : > { %5451 = vrcp.f32 %v1803_v29 }
 0xc4a   : > { %5453 = vpow2.f32 %v4496_v20 }
 0xc4f   : > { %v5452_v45 = vpop.eup %5451 }
 0xc50   : > { %v1805_v46 = vmul.f32 %v5452_v45, %v5450_v48  ;;  %v5454_v22 = vpop.eup %5453 }
 0xc51   : > { %v1889_v8 = vadd.f32 1.0, %v5454_v22 }
 0xc52   : > { %4532 = vst [vmem:[%s6030_s29 + $0x2] sm:$0x1] %v1805_v46  ;;  %v1806_v42 = vpack.c.bf16 %v1805_v46, %v1805_v46 }
 0xc53   : > { %5455 = vrcp.f32 %v1889_v8  ;;  %v1901_v35 = vand.u32 2147483648, %v1889_v8  ;;  %vm1895_vm11 = vweird.f32 %v1889_v8  ;;  %v1899_v5 = vand.u32 2147483647, %v1889_v8 }
 0xc54   : > { %1879 = vmatmul.bf16.vlgmr.msrb.gmra.mxu1 %v1806_v42 }
 0xc55   : > { %v1902_v27 = vor.u32 1.1754944e-38, %v1901_v35  ;;  %vm1900_vm0 = vcmp.eq.f32.partialorder %v1899_v5, 8.507059e+37 }
 0xc59   : > { %v5456_v48 = vpop.eup %5455 }
 0xc5a   : > { %v1891_v9 = vmul.f32 %v5456_v48, %v1889_v8  ;;  %vm1896_vm15 = vweird.f32 %v5456_v48 }
 0xc5b   : > { %vm1897_vm12 = vmor %vm1895_vm11, %vm1896_vm15 }
 0xc5c   : > { %v1892_v30 = vsub.f32 1.0, %v1891_v9 }
 0xc5e   : > { %v1893_v18 = vmul.f32 %v5456_v48, %v1892_v30 }
 0xc60   : > { %v1894_v24 = vadd.f32 %v5456_v48, %v1893_v18 }
 0xc62   : > { %v1898_v63 = vsel %vm1897_vm12, %v5456_v48, %v1894_v24 }
 0xc63   : > { %v1903_v11 = vsel %vm1900_vm0, %v1902_v27, %v1898_v63  ;;  %vm7457_vm0 = vcmask 720512  }
 0xcd1   : > { %v1880_v29 = vpop.f32.mrf.mxu1 }
 0xcd2   : > { %v1905_v45 = vmul.f32 %v1903_v11, %v1880_v29 }
 0xcd4   : > { %v1909_v46 = vpack.c.bf16 %v1905_v45, %v1905_v45 }
 0xcd6   : > { %1982 = vmatmul.bf16.vlgmr.msrb.gmra.mxu2 %v1909_v46 }
 0xcd9   : > { %v1882_v42 = vpop.f32.mrf.mxu1 }
 0xd59   : > { %v1983_v20 = vpop.f32.mrf.mxu2 }
 0xd5a   : > { %v1987_v22 = vadd.f32 %v1983_v20, %v1908_v43 }
 0xd5c   : > { %5457 = vtanh.f32 %v1987_v22  ;;  %v4530_v8 = vmul.f32 -1.442695, %v1987_v22 }
 0xd5e   : > { %5459 = vpow2.f32 %v4530_v8 }
 0xd61   : > { %v1985_v21 = vpop.f32.mrf.mxu2 }
 0xd62   : > { %v5458_v9 = vpop.eup %5457  ;;  %v4990_v21 = vld [vmem:[%s7402_s5 + $0x1c] sm:$0xf] }
 0xd63   : > { %2010 = vrot.lane.b32.xlu1 %v5458_v9, %s7448_s2  ;;  %v4549_v9 = vld [vmem:[%s7402_s5 + $0x24] sm:$0xf0] }
 0xd64   : > { %v5460_v48 = vpop.eup %5459  ;;  %v4552_v8 = vor.u32 %v4990_v21, %v4549_v9 }
 0xd65   : > { %v1991_v30 = vadd.f32 1.0, %v5460_v48  ;;  %v4537_v48 = vld [vmem:[%s7402_s5 + $0xc] sm:$0xf0] }
 0xd66   : > { %2100 = vmatpush.bf16.msra.mxu0 %v4552_v8 }
 0xd67   : > { %5461 = vrcp.f32 %v1991_v30  ;;  %v2003_v27 = vand.u32 2147483648, %v1991_v30  ;;  %vm1997_vm15 = vweird.f32 %v1991_v30  ;;  %v2001_v12 = vand.u32 2147483647, %v1991_v30 }
 0xd69   : > { %v2004_v11 = vor.u32 1.1754944e-38, %v2003_v27  ;;  %vm2002_vm12 = vcmp.eq.f32.partialorder %v2001_v12, 8.507059e+37 }
 0xd6d   : > { %v5462_v18 = vpop.eup %5461 }
 0xd6e   : > { %v1993_v24 = vmul.f32 %v5462_v18, %v1991_v30  ;;  %vm1998_vm13 = vweird.f32 %v5462_v18  ;;  %v4547_v30 = vld [vmem:[%s7402_s5 + $0x18] sm:$0xf] }
 0xd6f   : > { %vm1999_vm11 = vmor %vm1997_vm15, %vm1998_vm13  ;;  %vm7458_vm13 = vcmask 786112   ;;  %vm7459_vm15 = vcmask 851712  }
 0xd70   : > { %v1994_v35 = vsub.f32 1.0, %v1993_v24 }
 0xd72   : > { %v1995_v5 = vmul.f32 %v5462_v18, %v1994_v35  ;;  %v4535_v35 = vld [vmem:[%s7402_s5] sm:$0xf] }
 0xd74   : > { %v1996_v63 = vadd.f32 %v5462_v18, %v1995_v5  ;;  %v4988_v5 = vld [vmem:[%s7402_s5 + $0x8] sm:$0xf0] }
 0xd75   : > { %v4536_v27 = vor.u32 %v4988_v5, %v4535_v35 }
 0xd76   : > { %v2000_v29 = vsel %vm1999_vm11, %v5462_v18, %v1996_v63  ;;  %v4991_v18 = vld [vmem:[%s7402_s5 + $0x20] sm:$0xf0]  ;;  %vm7460_vm11 = vcmask 982912  }
 0xd77   : > { %v2005_v46 = vsel %vm2002_vm12, %v2004_v11, %v2000_v29  ;;  %v4548_v24 = vor.u32 %v4991_v18, %v4547_v30  ;;  %vm7461_vm12 = vcmask 1048512  }
 0xd78   : > { %v2008_v28 = vmul.f32 %v2005_v46, %v6251_v38  ;;  %v4987_v38 = vld [vmem:[%s7402_s5 + $0x4] sm:$0xf] }
 0xd79   : > { %v4540_v63 = vor.u32 %v4987_v38, %v4537_v48  ;;  %2087 = vmatpush.bf16.msrb.mxu3 %v4548_v24  ;;  %v6547_v48 = vld [vmem:[%s7403_s6] ss:$0 sm:$0xff] }
 0xd7b   : > { %2101 = vmatpush.bf16.msra.mxu0 %v4540_v63 }
 0xd7d   : > { %2088 = vmatpush.bf16.msrb.mxu3 %v4536_v27 }
 0xdd5   : > { %v2011_v45 = vpop.permute.xlu1 %2010 }
 0xdd6   : > { %v2013_v42 = vmul.f32 %v2011_v45, %v2005_v46  ;;  %v4555_v45 = vld [vmem:[%s7402_s5 + $0x20] sm:$0xf] }
 0xdd8   : > { %2015 = vrot.lane.b32.xlu2 %v2013_v42, %s7439_s3  ;;  %v4992_v42 = vld [vmem:[%s7402_s5 + $0x28] sm:$0xf0] }
 0xe32   : > { %v2016_v43 = vpop.permute.xlu2 %2015 }
 0xe33   : > { %v6491_v20 = vadd.f32 %v2016_v43, %v2008_v28  ;;  %v4543_v28 = vld [vmem:[%s7402_s5 + $0x8] sm:$0xf]  ;;  %v4556_v43 = vor.u32 %v4992_v42, %v4555_v45 }
 0xe35   : > { %5463 = vtanh.f32 %v6491_v20  ;;  %2113 = vmatpush.bf16.msra.mxu3 %v4556_v43 }
 0xe3b   : > { %v5464_v22 = vpop.eup %5463 }
 0xe3c   : > { %2021 = vrot.lane.b32.xlu0 %v5464_v22, %s7448_s2 }
 0xeae   : > { %v2022_v12 = vpop.permute.xlu0 %2021 }
 0xeaf   : > { %v6519_v29 = vmul.f32 %v2022_v12, %v2005_v46  ;;  %v4989_v46 = vld [vmem:[%s7402_s5 + $0x10] sm:$0xf0] }
 0xeb0   : > { %v4544_v22 = vor.u32 %v4989_v46, %v4543_v28 }
 0xeb1   : > { %v2034_v11 = vpack.c.bf16 %v6519_v29, %v6519_v29 }
 0xeb2   : > { %2114 = vmatpush.bf16.msra.mxu3 %v4544_v22 }
 0xeb3   : > { %2044 = vrot.lane.b32.xlu1 %v2034_v11, %s7439_s3 }
 0xf25   : > { %v2045_v21 = vpop.permute.xlu1 %2044 }
 0xf26   : > { %4557 = vmatmul.msk.bf16.vlgmr.msrb.gmra.mxu3 %vm568_vm1, %v2045_v21  ;;  %4558 = vmatmul.msk.bf16.vlgmr.msra.gmra.mxu0 %vm568_vm1, %v2045_v21 }
 0xf36   : > { %4559 = vmatmul.msk.bf16.vlgmr.msra.gmra.mxu3 %vm568_vm1, %v2045_v21 }
 0xfa3   : > { %v2103_v9 = vpop.f32.mrf.mxu0 }
 0xfa4   : > { %v6539_v38 = vperm.slane %v2103_v9, 0 }
 0xfa6   : > { %v2155_v8 = vadd.f32 %v5145_v0, %v6539_v38  ;;  %v2154_v30 = vadd.f32 %v5142_v3, %v6539_v38  ;;  %v2153_v18 = vadd.f32 %v5141_v4, %v6539_v38  ;;  %v2158_v0 = vadd.f32 %v5150_v17, %v6539_v38 }
 0xfa7   : > { %v2157_v15 = vadd.f32 %v5149_v10, %v6539_v38  ;;  %v2156_v4 = vadd.f32 %v5146_v25, %v6539_v38  ;;  %v2161_v33 = vadd.f32 %v5157_v61, %v6539_v38  ;;  %v2160_v60 = vadd.f32 %v5154_v44, %v6539_v38 }
 0xfa8   : > { %v2171_v24 = vmax.f32 %v2155_v8, 0.0  ;;  %v2170_v35 = vmax.f32 %v2154_v30, 0.0  ;;  %v2169_v5 = vmax.f32 %v2153_v18, 0.0  ;;  %v2174_v45 = vmax.f32 %v2158_v0, 0.0 }
 0xfa9   : > { %v6555_v63 = vpop.f32.mrf.mxu3  ;;  %v2173_v17 = vmax.f32 %v2157_v15, 0.0  ;;  %v2172_v42 = vmax.f32 %v2156_v4, 0.0  ;;  %v2159_v25 = vadd.f32 %v5153_v47, %v6539_v38  ;;  %v2177_v22 = vmax.f32 %v2161_v33, 0.0 }
 0xfaa   : > { %v2191_v27 = vmul.f32 %v6547_v48, %v2171_v24  ;;  %v2190_v12 = vmul.f32 %v6547_v48, %v2170_v35  ;;  %v2189_v11 = vmul.f32 %v6547_v48, %v2169_v5  ;;  %v2194_v43 = vmul.f32 %v6547_v48, %v2174_v45 }
 0xfab   : > { %v2105_v3 = vpop.f32.mrf.mxu0  ;;  %v2193_v46 = vmul.f32 %v6547_v48, %v2173_v17  ;;  %v2192_v10 = vmul.f32 %v6547_v48, %v2172_v42  ;;  %v2176_v21 = vmax.f32 %v2160_v60, 0.0  ;;  %v2175_v9 = vmax.f32 %v2159_v25, 0.0 }
 0xfac   : > { %2209 = vadd.xlane.f32.xlu1 %v2191_v27  ;;  %2207 = vadd.xlane.f32.xlu2 %v2190_v12  ;;  %v2197_v61 = vmul.f32 %v6547_v48, %v2177_v22  ;;  %v2164_v44 = vadd.f32 %v5162_v16, %v6539_v38  ;;  %v2163_v55 = vadd.f32 %v5161_v19, %v6539_v38 }
 0xfad   : > { %2205 = vadd.xlane.f32.xlu0 %v2189_v11  ;;  %v2196_v30 = vmul.f32 %v6547_v48, %v2176_v21  ;;  %v2195_v47 = vmul.f32 %v6547_v48, %v2175_v9  ;;  %v2162_v18 = vadd.f32 %v5158_v6, %v6539_v38  ;;  %v2167_v57 = vadd.f32 %v5169_v59, %v6539_v38 }
 0xfae   : > { %v2180_v24 = vmax.f32 %v2164_v44, 0.0  ;;  %v2179_v35 = vmax.f32 %v2163_v55, 0.0  ;;  %v2166_v58 = vadd.f32 %v5166_v41, %v6539_v38  ;;  %v2165_v6 = vadd.f32 %v5165_v52, %v6539_v38 }
 0xfaf   : > { %v2178_v5 = vmax.f32 %v2162_v18, 0.0  ;;  %v2183_v12 = vmax.f32 %v2167_v57, 0.0  ;;  %v2168_v41 = vadd.f32 %v5170_v34, %v6539_v38 }
 0xfb0   : > { %v2200_v27 = vmul.f32 %v6547_v48, %v2180_v24  ;;  %v2199_v16 = vmul.f32 %v6547_v48, %v2179_v35  ;;  %v2182_v11 = vmax.f32 %v2166_v58, 0.0  ;;  %v2181_v15 = vmax.f32 %v2165_v6, 0.0 }
 0xfb1   : > { %v2092_v28 = vpop.f32.mrf.mxu3  ;;  %v2198_v19 = vmul.f32 %v6547_v48, %v2178_v5  ;;  %v2203_v3 = vmul.f32 %v6547_v48, %v2183_v12  ;;  %v2184_v40 = vmax.f32 %v2168_v41, 0.0 }
 0xfb2   : > { %v2202_v59 = vmul.f32 %v6547_v48, %v2182_v11  ;;  %v2201_v4 = vmul.f32 %v6547_v48, %v2181_v15 }
 0xfb3   : > { %v2204_v52 = vmul.f32 %v6547_v48, %v2184_v40 }
 0xfb4   : > { %2215 = vadd.xlane.f32.xlu1 %v2194_v43  ;;  %2213 = vadd.xlane.f32.xlu2 %v2193_v46 }
 0xfb5   : > { %2211 = vadd.xlane.f32.xlu0 %v2192_v10 }
 0xfb9   : > { %v6581_v8 = vpop.f32.mrf.mxu3 }
 0xfbc   : > { %2221 = vadd.xlane.f32.xlu1 %v2197_v61  ;;  %2219 = vadd.xlane.f32.xlu2 %v2196_v30 }
 0xfbd   : > { %2217 = vadd.xlane.f32.xlu0 %v2195_v47 }
 0xfc1   : > { %v2118_v0 = vpop.f32.mrf.mxu3 }
 0xfc4   : > { %2227 = vadd.xlane.f32.xlu1 %v2200_v27  ;;  %2225 = vadd.xlane.f32.xlu2 %v2199_v16 }
 0xfc5   : > { %2223 = vadd.xlane.f32.xlu0 %v2198_v19 }
 0xfcc   : > { %2233 = vadd.xlane.f32.xlu1 %v2203_v3  ;;  %2231 = vadd.xlane.f32.xlu2 %v2202_v59 }
 0xfcd   : > { %2229 = vadd.xlane.f32.xlu0 %v2201_v4 }
 0xfd5   : > { %2235 = vadd.xlane.f32.xlu0 %v2204_v52 }
0x101f   : > { %v2210_v45 = vpop.xlane.xlu1 %2209  ;;  %v2208_v17 = vpop.xlane.xlu2 %2207 }
0x1020   : > { %v2206_v42 = vpop.xlane.xlu0 %2205  ;;  %v2254_v28 = vperm.slane %v2208_v17, %v5880_v50  ;;  %v2256_v39 = vperm.slane %v2210_v45, %v5883_v51 }
0x1021   : > { %v2253_v43 = vperm.slane %v2206_v42, %v5877_v49 }
0x1023   : > { %v2255_v34 = vsel %vm750_vm2, %v2254_v28, %v2253_v43 }
0x1024   : > { %v2257_v48 = vsel %vm754_vm3, %v2256_v39, %v2255_v34  ;;  %v4999_v39 = vld [vmem:[%s5964_s20 + $0x30] sm:$0xff]  ;;  %v4998_v34 = vld [vmem:[%s5964_s20 + $0x28] sm:$0xff] }
0x1027   : > { %v2216_v46 = vpop.xlane.xlu1 %2215  ;;  %v2214_v33 = vpop.xlane.xlu2 %2213 }
0x1028   : > { %v2212_v60 = vpop.xlane.xlu0 %2211  ;;  %v2260_v10 = vperm.slane %v2214_v33, %v5893_v62  ;;  %v2262_v44 = vperm.slane %v2216_v46, %v5901_v2 }
0x1029   : > { %v2258_v38 = vperm.slane %v2212_v60, %v5887_v26  ;;  %v5000_v60 = vld [vmem:[%s5964_s20 + $0x38] sm:$0xff] }
0x102a   : > { %2362 = vmatpush.bf16.msrb.mxu0 %v5000_v60 }
0x102b   : > { %v2259_v25 = vsel %vm758_vm4, %v2258_v38, %v2257_v48  ;;  %v4997_v38 = vld [vmem:[%s5964_s20 + $0x20] sm:$0xff] }
0x102c   : > { %v2261_v61 = vsel %vm762_vm5, %v2260_v10, %v2259_v25  ;;  %v4996_v10 = vld [vmem:[%s5964_s20 + $0x18] sm:$0xff] }
0x102d   : > { %v2263_v47 = vsel %vm766_vm6, %v2262_v44, %v2261_v61  ;;  %v4995_v61 = vld [vmem:[%s5964_s20 + $0x10] sm:$0xff]  ;;  %v5008_v44 = vld [vmem:[%s7405_s8 + $0x38] sm:$0xff] }
0x102e   : > { %2363 = vmatpush.bf16.msrb.mxu0 %v4999_v39  ;;  %2465 = vmatpush.bf16.msra.mxu1 %v5008_v44  ;;  %v4593_v39 = vld [vmem:[%s6046_s11 + $0x3] sm:$0x1] }
0x102f   : > { %v2220_v22 = vpop.xlane.xlu2 %2219  ;;  %v2222_v9 = vpop.xlane.xlu1 %2221 }
0x1030   : > { %v2218_v21 = vpop.xlane.xlu0 %2217  ;;  %v2266_v55 = vperm.slane %v2220_v22, %v5906_v13  ;;  %v2268_v27 = vperm.slane %v2222_v9, %v5917_v32 }
0x1031   : > { %v2264_v30 = vperm.slane %v2218_v21, %v5898_v1 }
0x1032   : > { %2364 = vmatpush.bf16.msrb.mxu0 %v4998_v34  ;;  %v2399_v34 = vadd.f32 %v4593_v39, %v6555_v63 }
0x1033   : > { %v2265_v18 = vsel %vm770_vm7, %v2264_v30, %v2263_v47  ;;  %v4994_v30 = vld [vmem:[%s5964_s20 + $0x8] sm:$0xff]  ;;  %v5007_v47 = vld [vmem:[%s7405_s8 + $0x30] sm:$0xff] }
0x1034   : > { %v2267_v5 = vsel %vm774_vm8, %v2266_v55, %v2265_v18  ;;  %v4993_v55 = vld [vmem:[%s5964_s20] sm:$0xff]  ;;  %2466 = vmatpush.bf16.msra.mxu1 %v5007_v47  ;;  %v5006_v18 = vld [vmem:[%s7405_s8 + $0x28] sm:$0xff] }
0x1035   : > { %v2269_v58 = vsel %vm778_vm9, %v2268_v27, %v2267_v5  ;;  %v5003_v5 = vld [vmem:[%s7405_s8 + $0x10] sm:$0xff]  ;;  %v5002_v27 = vld [vmem:[%s7405_s8 + $0x8] sm:$0xff] }
0x1036   : > { %2365 = vmatpush.bf16.msrb.mxu0 %v4997_v38 }
0x1037   : > { %v2226_v24 = vpop.xlane.xlu2 %2225  ;;  %v2228_v16 = vpop.xlane.xlu1 %2227 }
0x1038   : > { %v2224_v35 = vpop.xlane.xlu0 %2223  ;;  %v2272_v57 = vperm.slane %v2226_v24, %v5921_v36  ;;  %v2274_v15 = vperm.slane %v2228_v16, %v5929_v23  ;;  %2467 = vmatpush.bf16.msra.mxu1 %v5006_v18  ;;  %v5005_v24 = vld [vmem:[%s7405_s8 + $0x20] sm:$0xff] }
0x1039   : > { %v2270_v0 = vperm.slane %v2224_v35, %v5914_v31  ;;  %v5004_v35 = vld [vmem:[%s7405_s8 + $0x18] sm:$0xff] }
0x103a   : > { %2366 = vmatpush.bf16.msrb.mxu0 %v4996_v10 }
0x103b   : > { %v2271_v19 = vsel %vm782_vm10, %v2270_v0, %v2269_v58 }
0x103c   : > { %v2273_v6 = vsel %vm7457_vm0, %v2272_v57, %v2271_v19  ;;  %vm7462_vm0 = vcmp.lt.s32.totalorder %v5877_v49, 16  ;;  %2468 = vmatpush.bf16.msra.mxu1 %v5005_v24  ;;  %v2375_v19 = vld [vmem:[%s7404_s7] sm:$0x1] }
0x103d   : > { %v2275_v4 = vsel %vm7458_vm13, %v2274_v15, %v2273_v6  ;;  %vm7463_vm13 = vcmask 1040384   ;;  %v2376_v6 = vadd.f32 %v2375_v19, %v6581_v8 }
0x103e   : > { %2367 = vmatpush.bf16.msrb.mxu0 %v4995_v61 }
0x103f   : > { %v2232_v12 = vpop.xlane.xlu2 %2231  ;;  %v2234_v40 = vpop.xlane.xlu1 %2233 }
0x1040   : > { %v2230_v11 = vpop.xlane.xlu0 %2229  ;;  %v2278_v59 = vperm.slane %v2232_v12, %v5936_v54  ;;  %v2280_v45 = vperm.slane %v2234_v40, %v5944_v7  ;;  %2469 = vmatpush.bf16.msra.mxu1 %v5004_v35  ;;  %v4592_v12 = vmul.f32 -1.442695, %v2376_v6  ;;  %v5012_v6 = vld [vmem:[%s7402_s5 + $0x1c] sm:$0xf] }
0x1041   : > { %v2276_v3 = vperm.slane %v2230_v11, %v5933_v53 }
0x1042   : > { %2368 = vmatpush.bf16.msrb.mxu0 %v4994_v30 }
0x1043   : > { %v2277_v41 = vsel %vm7459_vm15, %v2276_v3, %v2275_v4  ;;  %vm7464_vm15 = vmmov %vm7463_vm13  ;;  %v5001_v3 = vld [vmem:[%s7405_s8] sm:$0xff] }
0x1044   : > { %v2279_v52 = vsel %vm798_vm14, %v2278_v59, %v2277_v41  ;;  %2470 = vmatpush.bf16.msra.mxu1 %v5003_v5 }
0x1045   : > { %v2281_v28 = vsel %vm7460_vm11, %v2280_v45, %v2279_v52 }
0x1046   : > { %2369 = vmatpush.bf16.msrb.mxu0 %v4993_v55 }
0x1048   : > { %v2236_v17 = vpop.xlane.xlu0 %2235  ;;  %2471 = vmatpush.bf16.msra.mxu1 %v5002_v27 }
0x1049   : > { %v2282_v42 = vperm.slane %v2236_v17, %v5948_v14 }
0x104b   : > { %v2283_v43 = vsel %vm7461_vm12, %v2282_v42, %v2281_v28 }
0x104c   : > { %v2285_v46 = vsel %vm7462_vm0, %v2283_v43, -1e+30  ;;  %2472 = vmatpush.bf16.msra.mxu1 %v5001_v3  ;;  %v4643_v3 = vld [vmem:[%s7402_s5 + $0x18] sm:$0xf] }
0x104d   : > { %v2286_v33 = vsel %vm7463_vm13, %v2285_v46, -inf }
0x104e   : > { %2287 = vmax.xlane.f32.xlu2 %v2286_v33 }
0x10c1   : > { %v2288_v48 = vpop.xlane.xlu2 %2287 }
0x10c2   : > { %v2289_v25 = vsub.f32 %v2285_v46, %v2288_v48 }
0x10c4   : > { %v2290_v22 = vmul.f32 1.442695, %v2289_v25 }
0x10c6   : > { %5465 = vpow2.f32 %v2290_v22 }
0x10cc   : > { %v5466_v21 = vpop.eup %5465 }
0x10cd   : > { %v2292_v9 = vsel %vm7464_vm15, %v5466_v21, 0.0 }
0x10ce   : > { %2293 = vadd.xlane.f32.xlu1 %v2292_v9 }
0x1141   : > { %v2294_v0 = vpop.xlane.xlu1 %2293 }
0x1142   : > { %5467 = vrcp.f32 %v2294_v0 }
0x1143   : > { %5469 = vpow2.f32 %v4592_v12  ;;  %v4645_v12 = vld [vmem:[%s7402_s5 + $0x24] sm:$0xf0] }
0x1148   : > { %v5468_v16 = vpop.eup %5467 }
0x1149   : > { %v2296_v57 = vmul.f32 %v5468_v16, %v5466_v21  ;;  %v5470_v11 = vpop.eup %5469 }
0x114a   : > { %v2380_v15 = vadd.f32 1.0, %v5470_v11  ;;  %v4648_v11 = vor.u32 %v5012_v6, %v4645_v12 }
0x114b   : > { %4628 = vst [vmem:[%s6030_s29 + $0x3] sm:$0x1] %v2296_v57  ;;  %v2297_v58 = vpack.c.bf16 %v2296_v57, %v2296_v57 }
0x114c   : > { %5471 = vrcp.f32 %v2380_v15  ;;  %v2392_v45 = vand.u32 2147483648, %v2380_v15  ;;  %vm2386_vm12 = vweird.f32 %v2380_v15  ;;  %v2390_v8 = vand.u32 2147483647, %v2380_v15  ;;  %2591 = vmatpush.bf16.msrb.mxu3 %v4648_v11 }
0x114d   : > { %2370 = vmatmul.bf16.vlgmr.msrb.gmra.mxu0 %v2297_v58 }
0x114e   : > { %v2393_v42 = vor.u32 1.1754944e-38, %v2392_v45  ;;  %vm2391_vm13 = vcmp.eq.f32.partialorder %v2390_v8, 8.507059e+37 }
0x1152   : > { %v5472_v59 = vpop.eup %5471 }
0x1153   : > { %v2382_v4 = vmul.f32 %v5472_v59, %v2380_v15  ;;  %vm2387_vm11 = vweird.f32 %v5472_v59  ;;  %v4633_v15 = vld [vmem:[%s7402_s5 + $0xc] sm:$0xf0] }
0x1154   : > { %vm2388_vm0 = vmor %vm2386_vm12, %vm2387_vm11 }
0x1155   : > { %v2383_v41 = vsub.f32 1.0, %v2382_v4 }
0x1157   : > { %v2384_v40 = vmul.f32 %v5472_v59, %v2383_v41  ;;  %v4631_v41 = vld [vmem:[%s7402_s5] sm:$0xf] }
0x1159   : > { %v2385_v52 = vadd.f32 %v5472_v59, %v2384_v40  ;;  %v5010_v40 = vld [vmem:[%s7402_s5 + $0x8] sm:$0xf0] }
0x115a   : > { %v4632_v45 = vor.u32 %v5010_v40, %v4631_v41 }
0x115b   : > { %v2389_v17 = vsel %vm2388_vm0, %v5472_v59, %v2385_v52  ;;  %v5013_v59 = vld [vmem:[%s7402_s5 + $0x20] sm:$0xf0] }
0x115c   : > { %v2394_v43 = vsel %vm2391_vm13, %v2393_v42, %v2389_v17  ;;  %v4644_v4 = vor.u32 %v5013_v59, %v4643_v3  ;;  %v6785_v3 = vld [vmem:[%s5764_s28 + $0x20] sm:$0xff]   ;;  %v6788_v59 = vld [vmem:[%s5764_s28 + $0x18] sm:$0xff]   ;;  %vm7465_vm13 = vcmask 720512  }
0x115d   : > { %v5221_v40 = vunpack.c.l.bf16 %v6785_v3 }
0x115e   : > { %2578 = vmatpush.bf16.msra.mxu2 %v4644_v4 }
0x1162   : > { %2579 = vmatpush.bf16.msra.mxu2 %v4632_v45 }
0x11ca   : > { %v2371_v28 = vpop.f32.mrf.mxu0 }
0x11cb   : > { %v2396_v46 = vmul.f32 %v2394_v43, %v2371_v28  ;;  %v4651_v28 = vld [vmem:[%s7402_s5 + $0x20] sm:$0xf]  ;;  %v5014_v43 = vld [vmem:[%s7402_s5 + $0x28] sm:$0xf0] }
0x11cd   : > { %v2400_v33 = vpack.c.bf16 %v2396_v46, %v2396_v46  ;;  %v4639_v46 = vld [vmem:[%s7402_s5 + $0x8] sm:$0xf] }
0x11cf   : > { %2473 = vmatmul.bf16.vlgmr.msra.gmra.mxu1 %v2400_v33  ;;  %v4652_v33 = vor.u32 %v5014_v43, %v4651_v28 }
0x11d1   : > { %2604 = vmatpush.bf16.msrb.mxu2 %v4652_v33 }
0x11d2   : > { %v2373_v60 = vpop.f32.mrf.mxu0 }
0x11d3   : > { %v5011_v60 = vld [vmem:[%s7402_s5 + $0x10] sm:$0xf0] }
0x11d4   : > { %v4640_v39 = vor.u32 %v5011_v60, %v4639_v46 }
0x11d6   : > { %2605 = vmatpush.bf16.msrb.mxu2 %v4640_v39 }
0x124c   : > { %v2474_v38 = vpop.f32.mrf.mxu1 }
0x124d   : > { %v2478_v10 = vadd.f32 %v2474_v38, %v2399_v34  ;;  %v6740_v38 = vld [vmem:[%s5764_s28 + $0x8] sm:$0xff]  }
0x124f   : > { %5473 = vtanh.f32 %v2478_v10  ;;  %v4626_v22 = vmul.f32 -1.442695, %v2478_v10  ;;  %v6743_v10 = vld [vmem:[%s5764_s28] sm:$0xff]  }
0x1251   : > { %5475 = vpow2.f32 %v4626_v22  ;;  %v5205_v22 = vunpack.c.l.bf16 %v6743_v10 }
0x1254   : > { %v2476_v48 = vpop.f32.mrf.mxu1 }
0x1255   : > { %v5474_v25 = vpop.eup %5473  ;;  %v5209_v48 = vunpack.c.l.bf16 %v6740_v38 }
0x1256   : > { %2501 = vrot.lane.b32.xlu0 %v5474_v25, %s7448_s2  ;;  %v5206_v25 = vunpack.c.h.bf16 %v6743_v10 }
0x1257   : > { %v5476_v21 = vpop.eup %5475 }
0x1258   : > { %v2482_v9 = vadd.f32 1.0, %v5476_v21  ;;  %v6749_v21 = vld [vmem:[%s5764_s28 + $0x10] sm:$0xff]  }
0x125a   : > { %5477 = vrcp.f32 %v2482_v9  ;;  %v2494_v18 = vand.u32 2147483648, %v2482_v9  ;;  %vm2488_vm11 = vweird.f32 %v2482_v9  ;;  %v2492_v63 = vand.u32 2147483647, %v2482_v9 }
0x125c   : > { %v2495_v35 = vor.u32 1.1754944e-38, %v2494_v18  ;;  %vm2493_vm0 = vcmp.eq.f32.partialorder %v2492_v63, 8.507059e+37 }
0x1260   : > { %v5478_v61 = vpop.eup %5477 }
0x1261   : > { %v2484_v30 = vmul.f32 %v5478_v61, %v2482_v9  ;;  %vm2489_vm15 = vweird.f32 %v5478_v61 }
0x1262   : > { %vm2490_vm12 = vmor %vm2488_vm11, %vm2489_vm15  ;;  %vm7466_vm15 = vcmask 786112   ;;  %vm7467_vm11 = vcmask 851712  }
0x1263   : > { %v2485_v44 = vsub.f32 1.0, %v2484_v30 }
0x1265   : > { %v2486_v55 = vmul.f32 %v5478_v61, %v2485_v44  ;;  %v5214_v44 = vunpack.c.h.bf16 %v6749_v21 }
0x1267   : > { %v2487_v47 = vadd.f32 %v5478_v61, %v2486_v55 }
0x1269   : > { %v2491_v24 = vsel %vm2490_vm12, %v5478_v61, %v2487_v47  ;;  %v6762_v47 = vld [vmem:[%s7403_s6] ss:$0 sm:$0xff]  ;;  %vm7468_vm12 = vcmask 982912  }
0x126a   : > { %v2496_v0 = vsel %vm2493_vm0, %v2495_v35, %v2491_v24  ;;  %v5213_v24 = vunpack.c.l.bf16 %v6749_v21  ;;  %v5210_v35 = vunpack.c.h.bf16 %v6740_v38  ;;  %vm7469_vm0 = vcmask 1048512  }
0x126b   : > { %v2499_v16 = vmul.f32 %v2496_v0, %v6491_v20  ;;  %v5009_v20 = vld [vmem:[%s7402_s5 + $0x4] sm:$0xf] }
0x126c   : > { %v4636_v52 = vor.u32 %v5009_v20, %v4633_v15 }
0x126e   : > { %2592 = vmatpush.bf16.msrb.mxu3 %v4636_v52  ;;  %v5218_v52 = vunpack.c.h.bf16 %v6788_v59 }
0x12c8   : > { %v2502_v5 = vpop.permute.xlu0 %2501 }
0x12c9   : > { %v2504_v27 = vmul.f32 %v2502_v5, %v2496_v0 }
0x12cb   : > { %2506 = vrot.lane.b32.xlu2 %v2504_v27, %s7439_s3 }
0x1325   : > { %v2507_v57 = vpop.permute.xlu2 %2506 }
0x1326   : > { %v6691_v58 = vadd.f32 %v2507_v57, %v2499_v16 }
0x1328   : > { %5479 = vtanh.f32 %v6691_v58 }
0x132e   : > { %v5480_v19 = vpop.eup %5479 }
0x132f   : > { %2512 = vrot.lane.b32.xlu1 %v5480_v19, %s7448_s2 }
0x13a1   : > { %v2513_v8 = vpop.permute.xlu1 %2512 }
0x13a2   : > { %v6719_v17 = vmul.f32 %v2513_v8, %v2496_v0  ;;  %v5217_v8 = vunpack.c.l.bf16 %v6788_v59 }
0x13a4   : > { %v2525_v42 = vpack.c.bf16 %v6719_v17, %v6719_v17 }
0x13a6   : > { %2535 = vrot.lane.b32.xlu0 %v2525_v42, %s7439_s3 }
0x1418   : > { %v2536_v34 = vpop.permute.xlu0 %2535 }
0x1419   : > { %4653 = vmatmul.msk.bf16.vlgmr.msra.gmra.mxu2 %vm568_vm1, %v2536_v34  ;;  %4654 = vmatmul.msk.bf16.vlgmr.msrb.gmra.mxu3 %vm568_vm1, %v2536_v34 }
0x1429   : > { %4655 = vmatmul.msk.bf16.vlgmr.msrb.gmra.mxu2 %vm568_vm1, %v2536_v34  ;;  %v6808_v34 = vld [vmem:[%s5764_s28 + $0x28] sm:$0xff]  }
0x149c   : > { %v6751_v9 = vpop.f32.mrf.mxu2  ;;  %v2594_v61 = vpop.f32.mrf.mxu3 }
0x149d   : > { %v6753_v30 = vperm.slane %v2594_v61, 0 }
0x149f   : > { %v2646_v55 = vadd.f32 %v5209_v48, %v6753_v30  ;;  %v2645_v18 = vadd.f32 %v5206_v25, %v6753_v30  ;;  %v2644_v63 = vadd.f32 %v5205_v22, %v6753_v30  ;;  %v2649_v16 = vadd.f32 %v5214_v44, %v6753_v30 }
0x14a0   : > { %v2648_v12 = vadd.f32 %v5213_v24, %v6753_v30  ;;  %v2647_v15 = vadd.f32 %v5210_v35, %v6753_v30  ;;  %v2652_v43 = vadd.f32 %v5221_v40, %v6753_v30  ;;  %v2651_v46 = vadd.f32 %v5218_v52, %v6753_v30 }
0x14a1   : > { %v2662_v5 = vmax.f32 %v2646_v55, 0.0  ;;  %v2661_v0 = vmax.f32 %v2645_v18, 0.0  ;;  %v2660_v27 = vmax.f32 %v2644_v63, 0.0  ;;  %v2665_v4 = vmax.f32 %v2649_v16, 0.0 }
0x14a2   : > { %v2664_v41 = vmax.f32 %v2648_v12, 0.0  ;;  %v2663_v45 = vmax.f32 %v2647_v15, 0.0  ;;  %v2650_v39 = vadd.f32 %v5217_v8, %v6753_v30  ;;  %v2668_v61 = vmax.f32 %v2652_v43, 0.0  ;;  %v6829_v15 = vld [vmem:[%s5764_s28 + $0x30] sm:$0xff]  }
0x14a3   : > { %v2682_v57 = vmul.f32 %v6762_v47, %v2662_v5  ;;  %v2681_v19 = vmul.f32 %v6762_v47, %v2661_v0  ;;  %v2680_v6 = vmul.f32 %v6762_v47, %v2660_v27  ;;  %v2685_v42 = vmul.f32 %v6762_v47, %v2665_v4 }
0x14a4   : > { %v2583_v20 = vpop.f32.mrf.mxu2  ;;  %v2596_v11 = vpop.f32.mrf.mxu3  ;;  %v2684_v28 = vmul.f32 %v6762_v47, %v2664_v41  ;;  %v2683_v60 = vmul.f32 %v6762_v47, %v2663_v45  ;;  %v2667_v55 = vmax.f32 %v2651_v46, 0.0  ;;  %v5226_v18 = vunpack.c.h.bf16 %v6808_v34 }
0x14a5   : > { %2700 = vadd.xlane.f32.xlu1 %v2682_v57  ;;  %2698 = vadd.xlane.f32.xlu0 %v2681_v19  ;;  %v5225_v63 = vunpack.c.l.bf16 %v6808_v34  ;;  %v2666_v5 = vmax.f32 %v2650_v39, 0.0  ;;  %v5222_v0 = vunpack.c.h.bf16 %v6785_v3  ;;  %v2688_v27 = vmul.f32 %v6762_v47, %v2668_v61  ;;  %v6826_v11 = vld [vmem:[%s5764_s28 + $0x38] sm:$0xff]  }
0x14a6   : > { %2696 = vadd.xlane.f32.xlu2 %v2680_v6  ;;  %v2687_v16 = vmul.f32 %v6762_v47, %v2667_v55  ;;  %v2655_v57 = vadd.f32 %v5226_v18, %v6753_v30  ;;  %v5233_v45 = vunpack.c.l.bf16 %v6826_v11  ;;  %v5229_v43 = vunpack.c.l.bf16 %v6829_v15 }
0x14a7   : > { %v2654_v19 = vadd.f32 %v5225_v63, %v6753_v30  ;;  %v2686_v12 = vmul.f32 %v6762_v47, %v2666_v5  ;;  %v2653_v20 = vadd.f32 %v5222_v0, %v6753_v30 }
0x14a8   : > { %v2671_v4 = vmax.f32 %v2655_v57, 0.0  ;;  %v2658_v39 = vadd.f32 %v5233_v45, %v6753_v30  ;;  %v2656_v5 = vadd.f32 %v5229_v43, %v6753_v30 }
0x14a9   : > { %v2670_v41 = vmax.f32 %v2654_v19, 0.0  ;;  %v5234_v19 = vunpack.c.h.bf16 %v6826_v11  ;;  %v7473_v11 = vunpack.c.h.bf16 %v6829_v15 }
0x14aa   : > { %v2691_v46 = vmul.f32 %v6762_v47, %v2671_v4  ;;  %v2672_v57 = vmax.f32 %v2656_v5, 0.0 }
0x14ab   : > { %v2659_v4 = vadd.f32 %v5234_v19, %v6753_v30 }
0x14ac   : > { %v6801_v33 = vpop.f32.mrf.mxu2 }
0x14ad   : > { %2706 = vadd.xlane.f32.xlu1 %v2685_v42  ;;  %2704 = vadd.xlane.f32.xlu0 %v2684_v28  ;;  %v7422_v42 = vunpack.c.h.bf16 %v6829_v15  ;;  %v2669_v28 = vmax.f32 %v2653_v20, 0.0  ;;  %v2692_v20 = vmul.f32 %v6762_v47, %v2672_v57 }
0x14ae   : > { %2702 = vadd.xlane.f32.xlu2 %v2683_v60  ;;  %v2690_v60 = vmul.f32 %v6762_v47, %v2670_v41  ;;  %v2675_v41 = vmax.f32 %v2659_v4, 0.0 }
0x14af   : > { %v2657_v61 = vadd.f32 %v7422_v42, %v6753_v30  ;;  %v2689_v55 = vmul.f32 %v6762_v47, %v2669_v28 }
0x14b0   : > { %v2695_v28 = vmul.f32 %v6762_v47, %v2675_v41 }
0x14b4   : > { %v2609_v6 = vpop.f32.mrf.mxu2 }
0x14b5   : > { %2712 = vadd.xlane.f32.xlu1 %v2688_v27  ;;  %2710 = vadd.xlane.f32.xlu0 %v2687_v16  ;;  %v2674_v27 = vmax.f32 %v2658_v39, 0.0  ;;  %v2673_v16 = vmax.f32 %v2657_v61, 0.0 }
0x14b6   : > { %2708 = vadd.xlane.f32.xlu2 %v2686_v12 }
0x14b7   : > { %v2694_v6 = vmul.f32 %v6762_v47, %v2674_v27  ;;  %v2693_v12 = vmul.f32 %v6762_v47, %v2673_v16 }
0x14bd   : > { %2718 = vadd.xlane.f32.xlu1 %v2691_v46  ;;  %2716 = vadd.xlane.f32.xlu0 %v2690_v60 }
0x14be   : > { %2714 = vadd.xlane.f32.xlu2 %v2689_v55 }
0x14c5   : > { %2724 = vadd.xlane.f32.xlu1 %v2694_v6  ;;  %2722 = vadd.xlane.f32.xlu0 %v2693_v12 }
0x14c6   : > { %2720 = vadd.xlane.f32.xlu2 %v2692_v20 }
0x14ce   : > { %2726 = vadd.xlane.f32.xlu2 %v2695_v28 }
0x1518   : > { %v2701_v46 = vpop.xlane.xlu1 %2700  ;;  %v2699_v60 = vpop.xlane.xlu0 %2698 }
0x1519   : > { %v2697_v39 = vpop.xlane.xlu2 %2696  ;;  %v2745_v61 = vperm.slane %v2699_v60, %v5880_v50  ;;  %v2747_v57 = vperm.slane %v2701_v46, %v5883_v51 }
0x151a   : > { %v2744_v55 = vperm.slane %v2697_v39, %v5877_v49 }
0x151c   : > { %v2746_v30 = vsel %vm750_vm2, %v2745_v61, %v2744_v55 }
0x151d   : > { %v2748_v47 = vsel %vm754_vm3, %v2747_v57, %v2746_v30 }
0x1520   : > { %v2707_v5 = vpop.xlane.xlu1 %2706  ;;  %v2705_v27 = vpop.xlane.xlu0 %2704 }
0x1521   : > { %v2703_v16 = vpop.xlane.xlu2 %2702  ;;  %v2751_v12 = vperm.slane %v2705_v27, %v5893_v62  ;;  %v2753_v42 = vperm.slane %v2707_v5, %v5901_v2 }
0x1522   : > { %v2749_v6 = vperm.slane %v2703_v16, %v5887_v26 }
0x1524   : > { %v2750_v20 = vsel %vm758_vm4, %v2749_v6, %v2748_v47 }
0x1525   : > { %v2752_v60 = vsel %vm762_vm5, %v2751_v12, %v2750_v20 }
0x1526   : > { %v2754_v61 = vsel %vm766_vm6, %v2753_v42, %v2752_v60 }
0x1528   : > { %v2711_v4 = vpop.xlane.xlu0 %2710  ;;  %v2713_v28 = vpop.xlane.xlu1 %2712 }
0x1529   : > { %v2709_v41 = vpop.xlane.xlu2 %2708  ;;  %v2757_v46 = vperm.slane %v2711_v4, %v5906_v13  ;;  %v2759_v6 = vperm.slane %v2713_v28, %v5917_v32 }
0x152a   : > { %v2755_v39 = vperm.slane %v2709_v41, %v5898_v1 }
0x152c   : > { %v2756_v55 = vsel %vm770_vm7, %v2755_v39, %v2754_v61 }
0x152d   : > { %v2758_v57 = vsel %vm774_vm8, %v2757_v46, %v2756_v55 }
0x152e   : > { %v2760_v20 = vsel %vm778_vm9, %v2759_v6, %v2758_v57 }
0x1530   : > { %v2717_v27 = vpop.xlane.xlu0 %2716  ;;  %v2719_v47 = vpop.xlane.xlu1 %2718 }
0x1531   : > { %v2715_v16 = vpop.xlane.xlu2 %2714  ;;  %v2763_v12 = vperm.slane %v2717_v27, %v5921_v36  ;;  %v2765_v60 = vperm.slane %v2719_v47, %v5929_v23 }
0x1532   : > { %v2761_v30 = vperm.slane %v2715_v16, %v5914_v31 }
0x1534   : > { %v2762_v5 = vsel %vm782_vm10, %v2761_v30, %v2760_v20 }
0x1535   : > { %v2764_v4 = vsel %vm7465_vm13, %v2763_v12, %v2762_v5  ;;  %vm7470_vm13 = vcmp.lt.s32.totalorder %v5877_v49, 16  ;;  %v5022_v5 = vld [vmem:[%s5964_s20 + $0x38] sm:$0xff] }
0x1536   : > { %v2766_v28 = vsel %vm7466_vm15, %v2765_v60, %v2764_v4  ;;  %vm7471_vm15 = vcmask 1040384   ;;  %2853 = vmatpush.bf16.msra.mxu3 %v5022_v5  ;;  %v5021_v4 = vld [vmem:[%s5964_s20 + $0x30] sm:$0xff]  ;;  %v5018_v60 = vld [vmem:[%s5964_s20 + $0x18] sm:$0xff] }
0x1537   : > { %v5025_v5 = vld [vmem:[%s7405_s8 + $0x10] sm:$0xff] }
0x1538   : > { %v2723_v42 = vpop.xlane.xlu0 %2722  ;;  %v2725_v55 = vpop.xlane.xlu1 %2724 }
0x1539   : > { %v2721_v41 = vpop.xlane.xlu2 %2720  ;;  %v2769_v46 = vperm.slane %v2723_v42, %v5936_v54  ;;  %v2771_v16 = vperm.slane %v2725_v55, %v5944_v7  ;;  %v5020_v42 = vld [vmem:[%s5964_s20 + $0x28] sm:$0xff] }
0x153a   : > { %v2767_v39 = vperm.slane %v2721_v41, %v5933_v53  ;;  %2854 = vmatpush.bf16.msra.mxu3 %v5021_v4  ;;  %v5019_v41 = vld [vmem:[%s5964_s20 + $0x20] sm:$0xff] }
0x153c   : > { %v2768_v61 = vsel %vm7467_vm11, %v2767_v39, %v2766_v28  ;;  %vm7472_vm11 = vmmov %vm7471_vm15 }
0x153d   : > { %v2770_v27 = vsel %vm798_vm14, %v2769_v46, %v2768_v61 }
0x153e   : > { %v2772_v6 = vsel %vm7468_vm12, %v2771_v16, %v2770_v27  ;;  %2855 = vmatpush.bf16.msra.mxu3 %v5020_v42  ;;  %v5017_v27 = vld [vmem:[%s5964_s20 + $0x10] sm:$0xff]  ;;  %v5016_v16 = vld [vmem:[%s5964_s20 + $0x8] sm:$0xff] }
0x153f   : > { %v5024_v42 = vld [vmem:[%s7405_s8 + $0x8] sm:$0xff] }
0x1541   : > { %v2727_v57 = vpop.xlane.xlu2 %2726 }
0x1542   : > { %v2773_v30 = vperm.slane %v2727_v57, %v5948_v14  ;;  %2856 = vmatpush.bf16.msra.mxu3 %v5019_v41  ;;  %v5030_v57 = vld [vmem:[%s7405_s8 + $0x38] sm:$0xff] }
0x1543   : > { %2956 = vmatpush.bf16.msra.mxu0 %v5030_v57  ;;  %v5023_v57 = vld [vmem:[%s7405_s8] sm:$0xff] }
0x1544   : > { %v2774_v47 = vsel %vm7469_vm0, %v2773_v30, %v2772_v6  ;;  %v5015_v30 = vld [vmem:[%s5964_s20] sm:$0xff]  ;;  %v5029_v6 = vld [vmem:[%s7405_s8 + $0x30] sm:$0xff] }
0x1545   : > { %v2776_v12 = vsel %vm7470_vm13, %v2774_v47, -1e+30  ;;  %v5028_v47 = vld [vmem:[%s7405_s8 + $0x28] sm:$0xff] }
0x1546   : > { %v2777_v20 = vsel %vm7471_vm15, %v2776_v12, -inf  ;;  %2857 = vmatpush.bf16.msra.mxu3 %v5018_v60 }
0x1547   : > { %2778 = vmax.xlane.f32.xlu0 %v2777_v20  ;;  %2957 = vmatpush.bf16.msra.mxu0 %v5029_v6  ;;  %v5026_v20 = vld [vmem:[%s7405_s8 + $0x18] sm:$0xff] }
0x154a   : > { %2858 = vmatpush.bf16.msra.mxu3 %v5017_v27 }
0x154b   : > { %2958 = vmatpush.bf16.msra.mxu0 %v5028_v47 }
0x154e   : > { %2859 = vmatpush.bf16.msra.mxu3 %v5016_v16 }
0x1552   : > { %2860 = vmatpush.bf16.msra.mxu3 %v5015_v30 }
0x15ba   : > { %v2779_v39 = vpop.xlane.xlu0 %2778 }
0x15bb   : > { %v2780_v46 = vsub.f32 %v2776_v12, %v2779_v39  ;;  %v5027_v12 = vld [vmem:[%s7405_s8 + $0x20] sm:$0xff] }
0x15bc   : > { %2959 = vmatpush.bf16.msra.mxu0 %v5027_v12 }
0x15bd   : > { %v2781_v28 = vmul.f32 1.442695, %v2780_v46  ;;  %v2866_v46 = vld [vmem:[%s7404_s7] sm:$0x1] }
0x15bf   : > { %5481 = vpow2.f32 %v2781_v28  ;;  %v2867_v28 = vadd.f32 %v2866_v46, %v6801_v33 }
0x15c0   : > { %2960 = vmatpush.bf16.msra.mxu0 %v5026_v20 }
0x15c4   : > { %2961 = vmatpush.bf16.msra.mxu0 %v5025_v5 }
0x15c5   : > { %v5482_v61 = vpop.eup %5481 }
0x15c6   : > { %v2783_v55 = vsel %vm7472_vm11, %v5482_v61, 0.0 }
0x15c7   : > { %2784 = vadd.xlane.f32.xlu1 %v2783_v55  ;;  %v4688_v55 = vmul.f32 -1.442695, %v2867_v28  ;;  %v4689_v28 = vld [vmem:[%s6046_s11 + $0x4] sm:$0x1] }
0x15c8   : > { %2962 = vmatpush.bf16.msra.mxu0 %v5024_v42 }
0x15cc   : > { %2963 = vmatpush.bf16.msra.mxu0 %v5023_v57 }
0x163a   : > { %v2785_v4 = vpop.xlane.xlu1 %2784 }
0x163b   : > { %5483 = vrcp.f32 %v2785_v4 }
0x163c   : > { %5485 = vpow2.f32 %v4688_v55  ;;  %v2890_v55 = vadd.f32 %v4689_v28, %v6751_v9 }
0x1641   : > { %v5484_v41 = vpop.eup %5483 }
0x1642   : > { %v2787_v60 = vmul.f32 %v5484_v41, %v5482_v61  ;;  %v5486_v27 = vpop.eup %5485 }
0x1643   : > { %v2871_v16 = vadd.f32 1.0, %v5486_v27 }
0x1644   : > { %4724 = vst [vmem:[%s6030_s29 + $0x4] sm:$0x1] %v2787_v60  ;;  %v2788_v39 = vpack.c.bf16 %v2787_v60, %v2787_v60 }
0x1645   : > { %5487 = vrcp.f32 %v2871_v16  ;;  %v2883_v20 = vand.u32 2147483648, %v2871_v16  ;;  %vm2877_vm0 = vweird.f32 %v2871_v16  ;;  %v2881_v33 = vand.u32 2147483647, %v2871_v16 }
0x1646   : > { %2861 = vmatmul.bf16.vlgmr.msra.gmra.mxu3 %v2788_v39 }
0x1647   : > { %v2884_v4 = vor.u32 1.1754944e-38, %v2883_v20  ;;  %vm2882_vm15 = vcmp.eq.f32.partialorder %v2881_v33, 8.507059e+37 }
0x164b   : > { %v5488_v61 = vpop.eup %5487 }
0x164c   : > { %v2873_v30 = vmul.f32 %v5488_v61, %v2871_v16  ;;  %vm2878_vm12 = vweird.f32 %v5488_v61 }
0x164d   : > { %vm2879_vm13 = vmor %vm2877_vm0, %vm2878_vm12 }
0x164e   : > { %v2874_v6 = vsub.f32 1.0, %v2873_v30 }
0x1650   : > { %v2875_v47 = vmul.f32 %v5488_v61, %v2874_v6 }
0x1652   : > { %v2876_v12 = vadd.f32 %v5488_v61, %v2875_v47 }
0x1654   : > { %v2880_v5 = vsel %vm2879_vm13, %v5488_v61, %v2876_v12 }
0x1655   : > { %v2885_v41 = vsel %vm2882_vm15, %v2884_v4, %v2880_v5  ;;  %vm7474_vm15 = vcmask 720512  }
0x16c9   : > { %v2862_v42 = vpop.f32.mrf.mxu3 }
0x16ca   : > { %v2887_v60 = vmul.f32 %v2885_v41, %v2862_v42 }
0x16cc   : > { %v2891_v39 = vpack.c.bf16 %v2887_v60, %v2887_v60 }
0x16ce   : > { %2964 = vmatmul.bf16.vlgmr.msra.gmra.mxu0 %v2891_v39 }
0x16d1   : > { %v2864_v46 = vpop.f32.mrf.mxu3 }
0x174b   : > { %v2965_v27 = vpop.f32.mrf.mxu0 }
0x174c   : > { %v2969_v57 = vadd.f32 %v2965_v27, %v2890_v55 }
0x174e   : > { %5489 = vtanh.f32 %v2969_v57  ;;  %v4722_v16 = vmul.f32 -1.442695, %v2969_v57 }
0x1750   : > { %5491 = vpow2.f32 %v4722_v16  ;;  %v4741_v16 = vld [vmem:[%s7402_s5 + $0x24] sm:$0xf0] }
0x1753   : > { %v2967_v30 = vpop.f32.mrf.mxu0 }
0x1754   : > { %v5490_v6 = vpop.eup %5489 }
0x1755   : > { %2992 = vrot.lane.b32.xlu2 %v5490_v6, %s7448_s2  ;;  %v5034_v6 = vld [vmem:[%s7402_s5 + $0x1c] sm:$0xf] }
0x1756   : > { %v5492_v61 = vpop.eup %5491 }
0x1757   : > { %v2973_v47 = vadd.f32 1.0, %v5492_v61  ;;  %v4744_v61 = vor.u32 %v5034_v6, %v4741_v16 }
0x1759   : > { %5493 = vrcp.f32 %v2973_v47  ;;  %v2985_v42 = vand.u32 2147483648, %v2973_v47  ;;  %vm2979_vm12 = vweird.f32 %v2973_v47  ;;  %v2983_v9 = vand.u32 2147483647, %v2973_v47  ;;  %3082 = vmatpush.bf16.msra.mxu2 %v4744_v61 }
0x175b   : > { %v2986_v60 = vor.u32 1.1754944e-38, %v2985_v42  ;;  %vm2984_vm13 = vcmp.eq.f32.partialorder %v2983_v9, 8.507059e+37 }
0x175f   : > { %v5494_v12 = vpop.eup %5493 }
0x1760   : > { %v2975_v20 = vmul.f32 %v5494_v12, %v2973_v47  ;;  %vm2980_vm11 = vweird.f32 %v5494_v12  ;;  %v4729_v47 = vld [vmem:[%s7402_s5 + $0xc] sm:$0xf0] }
0x1761   : > { %vm2981_vm0 = vmor %vm2979_vm12, %vm2980_vm11  ;;  %vm7475_vm11 = vcmask 786112   ;;  %vm7476_vm12 = vcmask 851712  }
0x1762   : > { %v2976_v33 = vsub.f32 1.0, %v2975_v20  ;;  %v5035_v20 = vld [vmem:[%s7402_s5 + $0x20] sm:$0xf0] }
0x1764   : > { %v2977_v5 = vmul.f32 %v5494_v12, %v2976_v33 }
0x1766   : > { %v2978_v4 = vadd.f32 %v5494_v12, %v2977_v5  ;;  %v4727_v5 = vld [vmem:[%s7402_s5] sm:$0xf] }
0x1768   : > { %v2982_v41 = vsel %vm2981_vm0, %v5494_v12, %v2978_v4  ;;  %v4739_v12 = vld [vmem:[%s7402_s5 + $0x18] sm:$0xf]  ;;  %v5032_v4 = vld [vmem:[%s7402_s5 + $0x8] sm:$0xf0]  ;;  %vm7477_vm0 = vcmask 982912  }
0x1769   : > { %v2987_v46 = vsel %vm2984_vm13, %v2986_v60, %v2982_v41  ;;  %v4740_v33 = vor.u32 %v5035_v20, %v4739_v12  ;;  %v4728_v9 = vor.u32 %v5032_v4, %v4727_v5  ;;  %vm7478_vm13 = vcmask 1048512  }
0x176a   : > { %v2990_v55 = vmul.f32 %v2987_v46, %v6691_v58  ;;  %v5031_v58 = vld [vmem:[%s7402_s5 + $0x4] sm:$0xf] }
0x176b   : > { %v4732_v42 = vor.u32 %v5031_v58, %v4729_v47  ;;  %3069 = vmatpush.bf16.msrb.mxu1 %v4740_v33  ;;  %v6989_v33 = vld [vmem:[%s7403_s6] ss:$0 sm:$0xff] }
0x176d   : > { %3083 = vmatpush.bf16.msra.mxu2 %v4732_v42 }
0x176f   : > { %3070 = vmatpush.bf16.msrb.mxu1 %v4728_v9 }
0x17af   : > { %v2993_v39 = vpop.permute.xlu2 %2992 }
0x17b0   : > { %v2995_v28 = vmul.f32 %v2993_v39, %v2987_v46 }
0x17b2   : > { %2997 = vrot.lane.b32.xlu0 %v2995_v28, %s7439_s3  ;;  %v4747_v28 = vld [vmem:[%s7402_s5 + $0x20] sm:$0xf] }
0x1824   : > { %v2998_v27 = vpop.permute.xlu0 %2997 }
0x1825   : > { %v6931_v57 = vadd.f32 %v2998_v27, %v2990_v55  ;;  %v5036_v55 = vld [vmem:[%s7402_s5 + $0x28] sm:$0xf0]  ;;  %v4735_v27 = vld [vmem:[%s7402_s5 + $0x8] sm:$0xf] }
0x1827   : > { %5495 = vtanh.f32 %v6931_v57 }
0x182d   : > { %v5496_v30 = vpop.eup %5495 }
0x182e   : > { %3003 = vrot.lane.b32.xlu1 %v5496_v30, %s7448_s2  ;;  %v4748_v30 = vor.u32 %v5036_v55, %v4747_v28 }
0x1830   : > { %3095 = vmatpush.bf16.msra.mxu1 %v4748_v30 }
0x18a0   : > { %v3004_v41 = vpop.permute.xlu1 %3003 }
0x18a1   : > { %v6959_v60 = vmul.f32 %v3004_v41, %v2987_v46  ;;  %v5033_v46 = vld [vmem:[%s7402_s5 + $0x10] sm:$0xf0] }
0x18a2   : > { %v4736_v6 = vor.u32 %v5033_v46, %v4735_v27 }
0x18a3   : > { %v3016_v39 = vpack.c.bf16 %v6959_v60, %v6959_v60 }
0x18a4   : > { %3096 = vmatpush.bf16.msra.mxu1 %v4736_v6 }
0x18a5   : > { %3026 = vrot.lane.b32.xlu0 %v3016_v39, %s7439_s3 }
0x1917   : > { %v3027_v16 = vpop.permute.xlu0 %3026 }
0x1918   : > { %4749 = vmatmul.msk.bf16.vlgmr.msrb.gmra.mxu1 %vm568_vm1, %v3027_v16  ;;  %4750 = vmatmul.msk.bf16.vlgmr.msra.gmra.mxu2 %vm568_vm1, %v3027_v16 }
0x1928   : > { %4751 = vmatmul.msk.bf16.vlgmr.msra.gmra.mxu1 %vm568_vm1, %v3027_v16 }
0x1995   : > { %v6979_v58 = vpop.f32.mrf.mxu1 }
0x199b   : > { %v3085_v61 = vpop.f32.mrf.mxu2 }
0x199c   : > { %v6981_v47 = vperm.slane %v3085_v61, 0 }
0x199d   : > { %v3074_v12 = vpop.f32.mrf.mxu1 }
0x199e   : > { %v3137_v20 = vadd.f32 %v5209_v48, %v6981_v47  ;;  %v3136_v5 = vadd.f32 %v5206_v25, %v6981_v47  ;;  %v3135_v4 = vadd.f32 %v5205_v22, %v6981_v47  ;;  %v3141_v48 = vadd.f32 %v5217_v8, %v6981_v47 }
0x199f   : > { %v3140_v25 = vadd.f32 %v5214_v44, %v6981_v47  ;;  %v3138_v10 = vadd.f32 %v5210_v35, %v6981_v47  ;;  %v3144_v44 = vadd.f32 %v5222_v0, %v6981_v47  ;;  %v3143_v38 = vadd.f32 %v5221_v40, %v6981_v47 }
0x19a0   : > { %v3153_v42 = vmax.f32 %v3137_v20, 0.0  ;;  %v3152_v9 = vmax.f32 %v3136_v5, 0.0  ;;  %v3151_v41 = vmax.f32 %v3135_v4, 0.0  ;;  %v3157_v8 = vmax.f32 %v3141_v48, 0.0 }
0x19a1   : > { %v3156_v30 = vmax.f32 %v3140_v25, 0.0  ;;  %v3154_v46 = vmax.f32 %v3138_v10, 0.0  ;;  %v3139_v61 = vadd.f32 %v5213_v24, %v6981_v47  ;;  %v3160_v20 = vmax.f32 %v3144_v44, 0.0 }
0x19a2   : > { %v3173_v39 = vmul.f32 %v6989_v33, %v3153_v42  ;;  %v3172_v28 = vmul.f32 %v6989_v33, %v3152_v9  ;;  %v3171_v55 = vmul.f32 %v6989_v33, %v3151_v41  ;;  %v3177_v6 = vmul.f32 %v6989_v33, %v3157_v8 }
0x19a3   : > { %v3087_v27 = vpop.f32.mrf.mxu2  ;;  %v3176_v16 = vmul.f32 %v6989_v33, %v3156_v30  ;;  %v3174_v35 = vmul.f32 %v6989_v33, %v3154_v46  ;;  %v3159_v5 = vmax.f32 %v3143_v38, 0.0  ;;  %v3155_v4 = vmax.f32 %v3139_v61, 0.0 }
0x19a4   : > { %3191 = vadd.xlane.f32.xlu1 %v3173_v39  ;;  %3189 = vadd.xlane.f32.xlu0 %v3172_v28  ;;  %v3180_v42 = vmul.f32 %v6989_v33, %v3160_v20  ;;  %v3147_v3 = vadd.f32 %v5229_v43, %v6981_v47  ;;  %v3146_v21 = vadd.f32 %v5226_v18, %v6981_v47 }
0x19a5   : > { %3187 = vadd.xlane.f32.xlu2 %v3171_v55  ;;  %v7009_v22 = vpop.f32.mrf.mxu1  ;;  %v3179_v0 = vmul.f32 %v6989_v33, %v3159_v5  ;;  %v3175_v24 = vmul.f32 %v6989_v33, %v3155_v4  ;;  %v3142_v40 = vadd.f32 %v5218_v52, %v6981_v47  ;;  %v3150_v18 = vadd.f32 %v5234_v19, %v6981_v47 }
0x19a6   : > { %v3163_v9 = vmax.f32 %v3147_v3, 0.0  ;;  %v3162_v41 = vmax.f32 %v3146_v21, 0.0  ;;  %v3149_v28 = vadd.f32 %v5233_v45, %v6981_v47  ;;  %v3145_v52 = vadd.f32 %v5225_v63, %v6981_v47 }
0x19a7   : > { %v3158_v48 = vmax.f32 %v3142_v40, 0.0  ;;  %v3166_v55 = vmax.f32 %v3150_v18, 0.0  ;;  %v3148_v45 = vadd.f32 %v7473_v11, %v6981_v47 }
0x19a8   : > { %v3183_v39 = vmul.f32 %v6989_v33, %v3163_v9  ;;  %v3182_v43 = vmul.f32 %v6989_v33, %v3162_v41  ;;  %v3165_v25 = vmax.f32 %v3149_v28, 0.0  ;;  %v3161_v27 = vmax.f32 %v3145_v52, 0.0 }
0x19a9   : > { %v3178_v59 = vmul.f32 %v6989_v33, %v3158_v48  ;;  %v3186_v10 = vmul.f32 %v6989_v33, %v3166_v55  ;;  %v3164_v34 = vmax.f32 %v3148_v45, 0.0 }
0x19aa   : > { %v3185_v19 = vmul.f32 %v6989_v33, %v3165_v25  ;;  %v3181_v8 = vmul.f32 %v6989_v33, %v3161_v27 }
0x19ab   : > { %v3184_v63 = vmul.f32 %v6989_v33, %v3164_v34 }
0x19ac   : > { %3199 = vadd.xlane.f32.xlu1 %v3177_v6  ;;  %3197 = vadd.xlane.f32.xlu0 %v3176_v16 }
0x19ad   : > { %3193 = vadd.xlane.f32.xlu2 %v3174_v35  ;;  %v3100_v12 = vpop.f32.mrf.mxu1 }
0x19b4   : > { %3205 = vadd.xlane.f32.xlu1 %v3180_v42  ;;  %3203 = vadd.xlane.f32.xlu0 %v3179_v0 }
0x19b5   : > { %3195 = vadd.xlane.f32.xlu2 %v3175_v24 }
0x19bc   : > { %3211 = vadd.xlane.f32.xlu1 %v3183_v39  ;;  %3209 = vadd.xlane.f32.xlu0 %v3182_v43 }
0x19bd   : > { %3201 = vadd.xlane.f32.xlu2 %v3178_v59 }
0x19c4   : > { %3217 = vadd.xlane.f32.xlu1 %v3186_v10  ;;  %3215 = vadd.xlane.f32.xlu0 %v3185_v19 }
0x19c5   : > { %3207 = vadd.xlane.f32.xlu2 %v3181_v8 }
0x19cd   : > { %3213 = vadd.xlane.f32.xlu2 %v3184_v63 }
0x1a17   : > { %v3190_v30 = vpop.xlane.xlu0 %3189  ;;  %v3192_v46 = vpop.xlane.xlu1 %3191 }
0x1a18   : > { %v3188_v6 = vpop.xlane.xlu2 %3187  ;;  %v3236_v35 = vperm.slane %v3190_v30, %v5880_v50  ;;  %v3238_v15 = vperm.slane %v3192_v46, %v5883_v51 }
0x1a19   : > { %v3235_v61 = vperm.slane %v3188_v6, %v5877_v49 }
0x1a1b   : > { %v3237_v12 = vsel %vm750_vm2, %v3236_v35, %v3235_v61 }
0x1a1c   : > { %v3239_v4 = vsel %vm754_vm3, %v3238_v15, %v3237_v12  ;;  %v5043_v12 = vld [vmem:[%s5964_s20 + $0x30] sm:$0xff] }
0x1a1f   : > { %v3198_v44 = vpop.xlane.xlu0 %3197  ;;  %v3200_v38 = vpop.xlane.xlu1 %3199 }
0x1a20   : > { %v3194_v16 = vpop.xlane.xlu2 %3193  ;;  %v3244_v21 = vperm.slane %v3198_v44, %v5901_v2  ;;  %v3246_v41 = vperm.slane %v3200_v38, %v5898_v1 }
0x1a21   : > { %v3240_v20 = vperm.slane %v3194_v16, %v5887_v26 }
0x1a23   : > { %v3241_v0 = vsel %vm758_vm4, %v3240_v20, %v3239_v4  ;;  %v5042_v20 = vld [vmem:[%s5964_s20 + $0x28] sm:$0xff] }
0x1a27   : > { %v3204_v5 = vpop.xlane.xlu0 %3203  ;;  %v3206_v42 = vpop.xlane.xlu1 %3205 }
0x1a28   : > { %v3196_v47 = vpop.xlane.xlu2 %3195  ;;  %v3250_v18 = vperm.slane %v3204_v5, %v5917_v32  ;;  %v3252_v55 = vperm.slane %v3206_v42, %v5914_v31  ;;  %v5040_v5 = vld [vmem:[%s5964_s20 + $0x18] sm:$0xff] }
0x1a29   : > { %v3242_v33 = vperm.slane %v3196_v47, %v5893_v62  ;;  %v5044_v47 = vld [vmem:[%s5964_s20 + $0x38] sm:$0xff] }
0x1a2a   : > { %3344 = vmatpush.bf16.msrb.mxu2 %v5044_v47 }
0x1a2b   : > { %v3243_v3 = vsel %vm762_vm5, %v3242_v33, %v3241_v0  ;;  %v5041_v33 = vld [vmem:[%s5964_s20 + $0x20] sm:$0xff] }
0x1a2c   : > { %v3245_v40 = vsel %vm766_vm6, %v3244_v21, %v3243_v3 }
0x1a2d   : > { %v3247_v48 = vsel %vm770_vm7, %v3246_v41, %v3245_v40  ;;  %v5038_v40 = vld [vmem:[%s5964_s20 + $0x8] sm:$0xff]  ;;  %v5051_v41 = vld [vmem:[%s7405_s8 + $0x30] sm:$0xff] }
0x1a2e   : > { %3345 = vmatpush.bf16.msrb.mxu2 %v5043_v12 }
0x1a2f   : > { %v3210_v39 = vpop.xlane.xlu0 %3209  ;;  %v3212_v28 = vpop.xlane.xlu1 %3211 }
0x1a30   : > { %v3202_v24 = vpop.xlane.xlu2 %3201  ;;  %v3256_v19 = vperm.slane %v3210_v39, %v5929_v23  ;;  %v3258_v45 = vperm.slane %v3212_v28, %v5933_v53  ;;  %v5050_v39 = vld [vmem:[%s7405_s8 + $0x28] sm:$0xff]  ;;  %v5047_v28 = vld [vmem:[%s7405_s8 + $0x10] sm:$0xff] }
0x1a31   : > { %v3248_v9 = vperm.slane %v3202_v24, %v5906_v13  ;;  %v5039_v24 = vld [vmem:[%s5964_s20 + $0x10] sm:$0xff] }
0x1a32   : > { %3346 = vmatpush.bf16.msrb.mxu2 %v5042_v20 }
0x1a33   : > { %v3249_v43 = vsel %vm774_vm8, %v3248_v9, %v3247_v48  ;;  %v5052_v9 = vld [vmem:[%s7405_s8 + $0x38] sm:$0xff]  ;;  %v5037_v48 = vld [vmem:[%s5964_s20] sm:$0xff] }
0x1a34   : > { %v3251_v59 = vsel %vm778_vm9, %v3250_v18, %v3249_v43  ;;  %3447 = vmatpush.bf16.msrb.mxu3 %v5052_v9  ;;  %v5049_v43 = vld [vmem:[%s7405_s8 + $0x20] sm:$0xff]  ;;  %v5048_v18 = vld [vmem:[%s7405_s8 + $0x18] sm:$0xff] }
0x1a35   : > { %v3253_v27 = vsel %vm782_vm10, %v3252_v55, %v3251_v59 }
0x1a36   : > { %3347 = vmatpush.bf16.msrb.mxu2 %v5041_v33  ;;  %v4785_v33 = vld [vmem:[%s6046_s11 + $0x5] sm:$0x1] }
0x1a37   : > { %v3216_v8 = vpop.xlane.xlu0 %3215  ;;  %v3218_v34 = vpop.xlane.xlu1 %3217 }
0x1a38   : > { %v3208_v52 = vpop.xlane.xlu2 %3207  ;;  %v3262_v46 = vperm.slane %v3216_v8, %v5944_v7  ;;  %v3264_v16 = vperm.slane %v3218_v34, %v5948_v14  ;;  %3448 = vmatpush.bf16.msrb.mxu3 %v5051_v41  ;;  %v5045_v34 = vld [vmem:[%s7405_s8] sm:$0xff] }
0x1a39   : > { %v3254_v25 = vperm.slane %v3208_v52, %v5921_v36  ;;  %v5046_v52 = vld [vmem:[%s7405_s8 + $0x8] sm:$0xff] }
0x1a3a   : > { %3348 = vmatpush.bf16.msrb.mxu2 %v5040_v5  ;;  %v3381_v5 = vadd.f32 %v4785_v33, %v6979_v58 }
0x1a3b   : > { %v3255_v10 = vsel %vm7474_vm15, %v3254_v25, %v3253_v27  ;;  %vm7479_vm15 = vcmp.lt.s32.totalorder %v5877_v49, 16 }
0x1a3c   : > { %v3257_v11 = vsel %vm7475_vm11, %v3256_v19, %v3255_v10  ;;  %vm7480_vm11 = vcmask 1040384   ;;  %3449 = vmatpush.bf16.msrb.mxu3 %v5050_v39  ;;  %v3357_v10 = vld [vmem:[%s7404_s7] sm:$0x1] }
0x1a3d   : > { %v3259_v6 = vsel %vm7476_vm12, %v3258_v45, %v3257_v11  ;;  %vm7481_vm12 = vmmov %vm7480_vm11  ;;  %v3358_v19 = vadd.f32 %v3357_v10, %v7009_v22 }
0x1a3e   : > { %3349 = vmatpush.bf16.msrb.mxu2 %v5039_v24 }
0x1a3f   : > { %v4784_v8 = vmul.f32 -1.442695, %v3358_v19 }
0x1a40   : > { %v3214_v63 = vpop.xlane.xlu2 %3213  ;;  %3450 = vmatpush.bf16.msrb.mxu3 %v5049_v43 }
0x1a41   : > { %v3260_v30 = vperm.slane %v3214_v63, %v5936_v54 }
0x1a42   : > { %3350 = vmatpush.bf16.msrb.mxu2 %v5038_v40 }
0x1a43   : > { %v3261_v44 = vsel %vm798_vm14, %v3260_v30, %v3259_v6 }
0x1a44   : > { %v3263_v38 = vsel %vm7477_vm0, %v3262_v46, %v3261_v44  ;;  %3451 = vmatpush.bf16.msrb.mxu3 %v5048_v18 }
0x1a45   : > { %v3265_v35 = vsel %vm7478_vm13, %v3264_v16, %v3263_v38 }
0x1a46   : > { %v3267_v61 = vsel %vm7479_vm15, %v3265_v35, -1e+30  ;;  %3351 = vmatpush.bf16.msrb.mxu2 %v5037_v48 }
0x1a47   : > { %v3268_v15 = vsel %vm7480_vm11, %v3267_v61, -inf }
0x1a48   : > { %3269 = vmax.xlane.f32.xlu2 %v3268_v15  ;;  %3452 = vmatpush.bf16.msrb.mxu3 %v5047_v28 }
0x1a4c   : > { %3453 = vmatpush.bf16.msrb.mxu3 %v5046_v52 }
0x1a50   : > { %3454 = vmatpush.bf16.msrb.mxu3 %v5045_v34 }
0x1abb   : > { %v3270_v4 = vpop.xlane.xlu2 %3269 }
0x1abc   : > { %v3271_v42 = vsub.f32 %v3267_v61, %v3270_v4 }
0x1abe   : > { %v3272_v0 = vmul.f32 1.442695, %v3271_v42 }
0x1ac0   : > { %5497 = vpow2.f32 %v3272_v0 }
0x1ac6   : > { %v5498_v3 = vpop.eup %5497 }
0x1ac7   : > { %v3274_v21 = vsel %vm7481_vm12, %v5498_v3, 0.0 }
0x1ac8   : > { %3275 = vadd.xlane.f32.xlu0 %v3274_v21 }
0x1b3b   : > { %v3276_v59 = vpop.xlane.xlu0 %3275 }
0x1b3c   : > { %5499 = vrcp.f32 %v3276_v59 }
0x1b3d   : > { %5501 = vpow2.f32 %v4784_v8 }
0x1b42   : > { %v5500_v55 = vpop.eup %5499 }
0x1b43   : > { %v3278_v25 = vmul.f32 %v5500_v55, %v5498_v3  ;;  %v5502_v11 = vpop.eup %5501 }
0x1b44   : > { %v3362_v45 = vadd.f32 1.0, %v5502_v11  ;;  %v5056_v11 = vld [vmem:[%s7402_s5 + $0x1c] sm:$0xf] }
0x1b45   : > { %4820 = vst [vmem:[%s6030_s29 + $0x5] sm:$0x1] %v3278_v25  ;;  %v3279_v27 = vpack.c.bf16 %v3278_v25, %v3278_v25 }
0x1b46   : > { %5503 = vrcp.f32 %v3362_v45  ;;  %v3374_v44 = vand.u32 2147483648, %v3362_v45  ;;  %vm3368_vm13 = vweird.f32 %v3362_v45  ;;  %v3372_v22 = vand.u32 2147483647, %v3362_v45 }
0x1b47   : > { %3352 = vmatmul.bf16.vlgmr.msrb.gmra.mxu2 %v3279_v27 }
0x1b48   : > { %v3375_v35 = vor.u32 1.1754944e-38, %v3374_v44  ;;  %vm3373_vm11 = vcmp.eq.f32.partialorder %v3372_v22, 8.507059e+37  ;;  %v5054_v44 = vld [vmem:[%s7402_s5 + $0x8] sm:$0xf0] }
0x1b4c   : > { %v5504_v63 = vpop.eup %5503 }
0x1b4d   : > { %v3364_v30 = vmul.f32 %v5504_v63, %v3362_v45  ;;  %vm3369_vm0 = vweird.f32 %v5504_v63  ;;  %v4837_v45 = vld [vmem:[%s7402_s5 + $0x24] sm:$0xf0] }
0x1b4e   : > { %vm3370_vm15 = vmor %vm3368_vm13, %vm3369_vm0  ;;  %v4840_v34 = vor.u32 %v5056_v11, %v4837_v45 }
0x1b4f   : > { %v3365_v46 = vsub.f32 1.0, %v3364_v30  ;;  %v4835_v30 = vld [vmem:[%s7402_s5 + $0x18] sm:$0xf] }
0x1b50   : > { %3573 = vmatpush.bf16.msrb.mxu1 %v4840_v34 }
0x1b51   : > { %v3366_v6 = vmul.f32 %v5504_v63, %v3365_v46  ;;  %v5057_v46 = vld [vmem:[%s7402_s5 + $0x20] sm:$0xf0] }
0x1b53   : > { %v3367_v16 = vadd.f32 %v5504_v63, %v3366_v6  ;;  %v4836_v6 = vor.u32 %v5057_v46, %v4835_v30 }
0x1b55   : > { %v3371_v38 = vsel %vm3370_vm15, %v5504_v63, %v3367_v16  ;;  %v4825_v63 = vld [vmem:[%s7402_s5 + $0xc] sm:$0xf0]  ;;  %v4823_v16 = vld [vmem:[%s7402_s5] sm:$0xf]  ;;  %3560 = vmatpush.bf16.msrb.mxu0 %v4836_v6 }
0x1b56   : > { %v3376_v15 = vsel %vm3373_vm11, %v3375_v35, %v3371_v38  ;;  %v4824_v38 = vor.u32 %v5054_v44, %v4823_v16  ;;  %v5344_v6 = vld [vmem:[%s5764_s28 + $0x20] sm:$0xff]   ;;  %v5343_v16 = vld [vmem:[%s5764_s28 + $0x18] sm:$0xff]  }
0x1b59   : > { %3561 = vmatpush.bf16.msrb.mxu0 %v4824_v38  ;;  %v5285_v38 = vunpack.c.l.bf16 %v5344_v6 }
0x1bca   : > { %v3353_v61 = vpop.f32.mrf.mxu2 }
0x1bcb   : > { %v3378_v47 = vmul.f32 %v3376_v15, %v3353_v61 }
0x1bcd   : > { %v3382_v12 = vpack.c.bf16 %v3378_v47, %v3378_v47  ;;  %v4843_v47 = vld [vmem:[%s7402_s5 + $0x20] sm:$0xf] }
0x1bcf   : > { %3455 = vmatmul.bf16.vlgmr.msrb.gmra.mxu3 %v3382_v12  ;;  %v5058_v12 = vld [vmem:[%s7402_s5 + $0x28] sm:$0xf0] }
0x1bd0   : > { %v4844_v33 = vor.u32 %v5058_v12, %v4843_v47  ;;  %v5281_v47 = vunpack.c.l.bf16 %v5343_v16 }
0x1bd2   : > { %v3355_v20 = vpop.f32.mrf.mxu2  ;;  %3586 = vmatpush.bf16.msra.mxu0 %v4844_v33 }
0x1bd3   : > { %v4831_v20 = vld [vmem:[%s7402_s5 + $0x8] sm:$0xf] }
0x1c52   : > { %v3456_v4 = vpop.f32.mrf.mxu3 }
0x1c53   : > { %v3460_v42 = vadd.f32 %v3456_v4, %v3381_v5  ;;  %v5055_v5 = vld [vmem:[%s7402_s5 + $0x10] sm:$0xf0] }
0x1c54   : > { %v4832_v4 = vor.u32 %v5055_v5, %v4831_v20 }
0x1c55   : > { %5505 = vtanh.f32 %v3460_v42  ;;  %v4818_v21 = vmul.f32 -1.442695, %v3460_v42 }
0x1c56   : > { %3587 = vmatpush.bf16.msra.mxu0 %v4832_v4 }
0x1c57   : > { %5507 = vpow2.f32 %v4818_v21 }
0x1c5a   : > { %v3458_v0 = vpop.f32.mrf.mxu3 }
0x1c5b   : > { %v5506_v3 = vpop.eup %5505  ;;  %v5341_v0 = vld [vmem:[%s5764_s28 + $0x8] sm:$0xff]  }
0x1c5c   : > { %3483 = vrot.lane.b32.xlu1 %v5506_v3, %s7448_s2  ;;  %v5268_v3 = vld [vmem:[%s5764_s28] sm:$0xff]   ;;  %v5273_v21 = vunpack.c.l.bf16 %v5341_v0 }
0x1c5d   : > { %v5508_v24 = vpop.eup %5507 }
0x1c5e   : > { %v3464_v40 = vadd.f32 1.0, %v5508_v24  ;;  %v5270_v24 = vunpack.c.h.bf16 %v5268_v3 }
0x1c60   : > { %5509 = vrcp.f32 %v3464_v40  ;;  %v3476_v18 = vand.u32 2147483648, %v3464_v40  ;;  %vm3470_vm0 = vweird.f32 %v3464_v40  ;;  %v3474_v58 = vand.u32 2147483647, %v3464_v40 }
0x1c62   : > { %v3477_v59 = vor.u32 1.1754944e-38, %v3476_v18  ;;  %vm3475_vm15 = vcmp.eq.f32.partialorder %v3474_v58, 8.507059e+37  ;;  %v7190_v58 = vld [vmem:[%s7403_s6] ss:$0 sm:$0xff] }
0x1c66   : > { %v5510_v9 = vpop.eup %5509 }
0x1c67   : > { %v3466_v41 = vmul.f32 %v5510_v9, %v3464_v40  ;;  %vm3471_vm12 = vweird.f32 %v5510_v9  ;;  %v5269_v40 = vunpack.c.l.bf16 %v5268_v3  ;;  %v5345_v3 = vld [vmem:[%s5764_s28 + $0x28] sm:$0xff]  }
0x1c68   : > { %vm3472_vm13 = vmor %vm3470_vm0, %vm3471_vm12 }
0x1c69   : > { %v3467_v48 = vsub.f32 1.0, %v3466_v41 }
0x1c6b   : > { %v3468_v39 = vmul.f32 %v5510_v9, %v3467_v48 }
0x1c6d   : > { %v3469_v43 = vadd.f32 %v5510_v9, %v3468_v39 }
0x1c6f   : > { %v3473_v28 = vsel %vm3472_vm13, %v5510_v9, %v3469_v43  ;;  %v5342_v9 = vld [vmem:[%s5764_s28 + $0x10] sm:$0xff]  }
0x1c70   : > { %v3478_v55 = vsel %vm3475_vm15, %v3477_v59, %v3473_v28  ;;  %v5278_v43 = vunpack.c.h.bf16 %v5342_v9 }
0x1c71   : > { %v3481_v27 = vmul.f32 %v3478_v55, %v6931_v57  ;;  %v5053_v57 = vld [vmem:[%s7402_s5 + $0x4] sm:$0xf] }
0x1c72   : > { %v4828_v22 = vor.u32 %v5053_v57, %v4825_v63 }
0x1c74   : > { %3574 = vmatpush.bf16.msrb.mxu1 %v4828_v22 }
0x1cce   : > { %v3484_v52 = vpop.permute.xlu1 %3483 }
0x1ccf   : > { %v3486_v25 = vmul.f32 %v3484_v52, %v3478_v55  ;;  %v5277_v52 = vunpack.c.l.bf16 %v5342_v9  ;;  %v5289_v9 = vunpack.c.l.bf16 %v5345_v3 }
0x1cd1   : > { %3488 = vrot.lane.b32.xlu2 %v3486_v25, %s7439_s3 }
0x1d2b   : > { %v3489_v10 = vpop.permute.xlu2 %3488 }
0x1d2c   : > { %v7131_v19 = vadd.f32 %v3489_v10, %v3481_v27 }
0x1d2e   : > { %5511 = vtanh.f32 %v7131_v19 }
0x1d34   : > { %v5512_v8 = vpop.eup %5511 }
0x1d35   : > { %3494 = vrot.lane.b32.xlu0 %v5512_v8, %s7448_s2 }
0x1da7   : > { %v3495_v35 = vpop.permute.xlu0 %3494 }
0x1da8   : > { %v7159_v61 = vmul.f32 %v3495_v35, %v3478_v55  ;;  %v5274_v55 = vunpack.c.h.bf16 %v5341_v0  ;;  %v5282_v35 = vunpack.c.h.bf16 %v5343_v16 }
0x1daa   : > { %v3507_v15 = vpack.c.bf16 %v7159_v61, %v7159_v61 }
0x1dac   : > { %3517 = vrot.lane.b32.xlu1 %v3507_v15, %s7439_s3 }
0x1e1e   : > { %v3518_v42 = vpop.permute.xlu1 %3517 }
0x1e1f   : > { %4845 = vmatmul.msk.bf16.vlgmr.msrb.gmra.mxu0 %vm568_vm1, %v3518_v42  ;;  %4846 = vmatmul.msk.bf16.vlgmr.msrb.gmra.mxu1 %vm568_vm1, %v3518_v42 }
0x1e2f   : > { %4847 = vmatmul.msk.bf16.vlgmr.msra.gmra.mxu0 %vm568_vm1, %v3518_v42  ;;  %vm7482_vm1 = vcmask 720512  }
0x1e9c   : > { %v7182_v41 = vpop.f32.mrf.mxu0  ;;  %v3576_v48 = vpop.f32.mrf.mxu1 }
0x1e9d   : > { %v7184_v39 = vperm.slane %v3576_v48, 0  ;;  %v5286_v48 = vunpack.c.h.bf16 %v5344_v6 }
0x1e9f   : > { %v3628_v18 = vadd.f32 %v5273_v21, %v7184_v39  ;;  %v3627_v28 = vadd.f32 %v5270_v24, %v7184_v39  ;;  %v3626_v59 = vadd.f32 %v5269_v40, %v7184_v39  ;;  %v3631_v8 = vadd.f32 %v5278_v43, %v7184_v39 }
0x1ea0   : > { %v3630_v34 = vadd.f32 %v5277_v52, %v7184_v39  ;;  %v3629_v46 = vadd.f32 %v5274_v55, %v7184_v39  ;;  %v3634_v33 = vadd.f32 %v5285_v38, %v7184_v39  ;;  %v3633_v5 = vadd.f32 %v5282_v35, %v7184_v39 }
0x1ea1   : > { %v3644_v25 = vmax.f32 %v3628_v18, 0.0  ;;  %v3643_v27 = vmax.f32 %v3627_v28, 0.0  ;;  %v3642_v10 = vmax.f32 %v3626_v59, 0.0  ;;  %v3647_v44 = vmax.f32 %v3631_v8, 0.0  ;;  %v5346_v8 = vld [vmem:[%s5764_s28 + $0x30] sm:$0xff]  }
0x1ea2   : > { %v3646_v22 = vmax.f32 %v3630_v34, 0.0  ;;  %v3645_v15 = vmax.f32 %v3629_v46, 0.0  ;;  %v3632_v0 = vadd.f32 %v5281_v47, %v7184_v39  ;;  %v3650_v21 = vmax.f32 %v3634_v33, 0.0 }
0x1ea3   : > { %v3664_v11 = vmul.f32 %v7190_v58, %v3644_v25  ;;  %v3663_v45 = vmul.f32 %v7190_v58, %v3643_v27  ;;  %v3662_v57 = vmul.f32 %v7190_v58, %v3642_v10  ;;  %v3667_v12 = vmul.f32 %v7190_v58, %v3647_v44  ;;  %v5347_v10 = vld [vmem:[%s5764_s28 + $0x38] sm:$0xff]  }
0x1ea4   : > { %v3565_v63 = vpop.f32.mrf.mxu0  ;;  %v3578_v30 = vpop.f32.mrf.mxu1  ;;  %v3666_v20 = vmul.f32 %v7190_v58, %v3646_v22  ;;  %v3665_v42 = vmul.f32 %v7190_v58, %v3645_v15  ;;  %v3649_v24 = vmax.f32 %v3633_v5, 0.0  ;;  %v5290_v40 = vunpack.c.h.bf16 %v5345_v3 }
0x1ea5   : > { %3682 = vadd.xlane.f32.xlu1 %v3664_v11  ;;  %3680 = vadd.xlane.f32.xlu2 %v3663_v45  ;;  %v3648_v43 = vmax.f32 %v3632_v0, 0.0  ;;  %v3670_v18 = vmul.f32 %v7190_v58, %v3650_v21  ;;  %v3636_v52 = vadd.f32 %v5289_v9, %v7184_v39  ;;  %v3635_v27 = vadd.f32 %v5286_v48, %v7184_v39 }
0x1ea6   : > { %3678 = vadd.xlane.f32.xlu0 %v3662_v57  ;;  %v3669_v28 = vmul.f32 %v7190_v58, %v3649_v24  ;;  %v3637_v59 = vadd.f32 %v5290_v40, %v7184_v39  ;;  %v5297_v57 = vunpack.c.l.bf16 %v5347_v10  ;;  %v5294_v34 = vunpack.c.h.bf16 %v5346_v8 }
0x1ea7   : > { %v3668_v25 = vmul.f32 %v7190_v58, %v3648_v43  ;;  %v3652_v45 = vmax.f32 %v3636_v52, 0.0  ;;  %v3651_v63 = vmax.f32 %v3635_v27, 0.0  ;;  %v5293_v30 = vunpack.c.l.bf16 %v5346_v8 }
0x1ea8   : > { %v3653_v11 = vmax.f32 %v3637_v59, 0.0  ;;  %v3640_v16 = vadd.f32 %v5297_v57, %v7184_v39  ;;  %v3639_v44 = vadd.f32 %v5294_v34, %v7184_v39  ;;  %v5298_v47 = vunpack.c.h.bf16 %v5347_v10 }
0x1ea9   : > { %v3672_v6 = vmul.f32 %v7190_v58, %v3652_v45  ;;  %v3671_v22 = vmul.f32 %v7190_v58, %v3651_v63  ;;  %v3638_v38 = vadd.f32 %v5293_v30, %v7184_v39 }
0x1eaa   : > { %v3673_v46 = vmul.f32 %v7190_v58, %v3653_v11  ;;  %v3656_v35 = vmax.f32 %v3640_v16, 0.0  ;;  %v3655_v15 = vmax.f32 %v3639_v44, 0.0 }
0x1eac   : > { %v7206_v4 = vpop.f32.mrf.mxu0  ;;  %v3675_v33 = vmul.f32 %v7190_v58, %v3655_v15 }
0x1ead   : > { %3688 = vadd.xlane.f32.xlu1 %v3667_v12  ;;  %3686 = vadd.xlane.f32.xlu2 %v3666_v20  ;;  %v3654_v12 = vmax.f32 %v3638_v38, 0.0  ;;  %v3676_v20 = vmul.f32 %v7190_v58, %v3656_v35 }
0x1eae   : > { %3684 = vadd.xlane.f32.xlu0 %v3665_v42  ;;  %v3641_v42 = vadd.f32 %v5298_v47, %v7184_v39 }
0x1eaf   : > { %v3674_v5 = vmul.f32 %v7190_v58, %v3654_v12 }
0x1eb0   : > { %v3657_v0 = vmax.f32 %v3641_v42, 0.0  ;;  %v5066_v42 = vld [vmem:[%s5964_s20 + $0x38] sm:$0xff] }
0x1eb1   : > { %3835 = vmatpush.bf16.msra.mxu1 %v5066_v42 }
0x1eb2   : > { %v3677_v3 = vmul.f32 %v7190_v58, %v3657_v0  ;;  %v5065_v0 = vld [vmem:[%s5964_s20 + $0x30] sm:$0xff] }
0x1eb4   : > { %v3591_v55 = vpop.f32.mrf.mxu0 }
0x1eb5   : > { %3694 = vadd.xlane.f32.xlu1 %v3670_v18  ;;  %3692 = vadd.xlane.f32.xlu2 %v3669_v28 }
0x1eb6   : > { %3690 = vadd.xlane.f32.xlu0 %v3668_v25  ;;  %3836 = vmatpush.bf16.msra.mxu1 %v5065_v0 }
0x1ebd   : > { %3700 = vadd.xlane.f32.xlu1 %v3673_v46  ;;  %3698 = vadd.xlane.f32.xlu2 %v3672_v6 }
0x1ebe   : > { %3696 = vadd.xlane.f32.xlu0 %v3671_v22 }
0x1ec5   : > { %3706 = vadd.xlane.f32.xlu1 %v3676_v20  ;;  %3704 = vadd.xlane.f32.xlu2 %v3675_v33 }
0x1ec6   : > { %3702 = vadd.xlane.f32.xlu0 %v3674_v5 }
0x1ece   : > { %3708 = vadd.xlane.f32.xlu0 %v3677_v3  ;;  %v5063_v3 = vld [vmem:[%s5964_s20 + $0x20] sm:$0xff] }
0x1f18   : > { %v3683_v21 = vpop.xlane.xlu1 %3682  ;;  %v3681_v24 = vpop.xlane.xlu2 %3680 }
0x1f19   : > { %v3679_v40 = vpop.xlane.xlu0 %3678  ;;  %v3727_v9 = vperm.slane %v3681_v24, %v5880_v50  ;;  %v3729_v59 = vperm.slane %v3683_v21, %v5883_v51 }
0x1f1a   : > { %v3726_v48 = vperm.slane %v3679_v40, %v5877_v49 }
0x1f1c   : > { %v3728_v39 = vsel %vm750_vm2, %v3727_v9, %v3726_v48  ;;  %vm7483_vm2 = vcmask 786112   ;;  %v5061_v48 = vld [vmem:[%s5964_s20 + $0x10] sm:$0xff] }
0x1f1d   : > { %v3730_v58 = vsel %vm754_vm3, %v3729_v59, %v3728_v39  ;;  %vm7484_vm3 = vcmask 851712   ;;  %v5059_v59 = vld [vmem:[%s5964_s20] sm:$0xff]  ;;  %v5072_v39 = vld [vmem:[%s7405_s8 + $0x28] sm:$0xff] }
0x1f20   : > { %v3689_v43 = vpop.xlane.xlu1 %3688  ;;  %v3687_v18 = vpop.xlane.xlu2 %3686 }
0x1f21   : > { %v3685_v28 = vpop.xlane.xlu0 %3684  ;;  %v3733_v55 = vperm.slane %v3687_v18, %v5893_v62  ;;  %v3735_v45 = vperm.slane %v3689_v43, %v5901_v2  ;;  %v5060_v43 = vld [vmem:[%s5964_s20 + $0x8] sm:$0xff]  ;;  %v5074_v18 = vld [vmem:[%s7405_s8 + $0x38] sm:$0xff] }
0x1f22   : > { %v3731_v52 = vperm.slane %v3685_v28, %v5887_v26  ;;  %3938 = vmatpush.bf16.msra.mxu2 %v5074_v18  ;;  %v5073_v28 = vld [vmem:[%s7405_s8 + $0x30] sm:$0xff] }
0x1f24   : > { %v3732_v25 = vsel %vm758_vm4, %v3731_v52, %v3730_v58  ;;  %vm7485_vm4 = vcmask 982912   ;;  %v5071_v52 = vld [vmem:[%s7405_s8 + $0x20] sm:$0xff]  ;;  %v5069_v58 = vld [vmem:[%s7405_s8 + $0x10] sm:$0xff] }
0x1f25   : > { %v3734_v8 = vsel %vm762_vm5, %v3733_v55, %v3732_v25  ;;  %vm7486_vm5 = vcmask 1048512   ;;  %v5070_v55 = vld [vmem:[%s7405_s8 + $0x18] sm:$0xff] }
0x1f26   : > { %v3736_v57 = vsel %vm766_vm6, %v3735_v45, %v3734_v8  ;;  %vm7487_vm6 = vcmp.lt.s32.totalorder %v5877_v49, 16  ;;  %3939 = vmatpush.bf16.msra.mxu2 %v5073_v28 }
0x1f28   : > { %v3693_v27 = vpop.xlane.xlu2 %3692  ;;  %v3695_v50 = vpop.xlane.xlu1 %3694 }
0x1f29   : > { %v3691_v10 = vpop.xlane.xlu0 %3690  ;;  %v3739_v51 = vperm.slane %v3693_v27, %v5906_v13  ;;  %v3741_v46 = vperm.slane %v3695_v50, %v5917_v32  ;;  %v5068_v27 = vld [vmem:[%s7405_s8 + $0x8] sm:$0xff] }
0x1f2a   : > { %v3737_v11 = vperm.slane %v3691_v10, %v5898_v1  ;;  %3940 = vmatpush.bf16.msra.mxu2 %v5072_v39 }
0x1f2c   : > { %v3738_v26 = vsel %vm770_vm7, %v3737_v11, %v3736_v57  ;;  %vm7488_vm7 = vcmask 1040384   ;;  %v3848_v11 = vld [vmem:[%s7404_s7] sm:$0x1] }
0x1f2d   : > { %v3740_v63 = vsel %vm774_vm8, %v3739_v51, %v3738_v26  ;;  %vm7489_vm8 = vmmov %vm7488_vm7  ;;  %v3849_v45 = vadd.f32 %v3848_v11, %v7206_v4 }
0x1f2e   : > { %v3742_v1 = vsel %vm778_vm9, %v3741_v46, %v3740_v63  ;;  %3941 = vmatpush.bf16.msra.mxu2 %v5071_v52 }
0x1f2f   : > { %v4880_v51 = vmul.f32 -1.442695, %v3849_v45 }
0x1f30   : > { %v3699_v62 = vpop.xlane.xlu2 %3698  ;;  %v3701_v6 = vpop.xlane.xlu1 %3700 }
0x1f31   : > { %v3697_v34 = vpop.xlane.xlu0 %3696  ;;  %v3745_v16 = vperm.slane %v3699_v62, %v5921_v36  ;;  %v3747_v38 = vperm.slane %v3701_v6, %v5929_v23  ;;  %v5067_v62 = vld [vmem:[%s7405_s8] sm:$0xff] }
0x1f32   : > { %v3743_v30 = vperm.slane %v3697_v34, %v5914_v31  ;;  %3942 = vmatpush.bf16.msra.mxu2 %v5070_v55 }
0x1f34   : > { %v3744_v2 = vsel %vm782_vm10, %v3743_v30, %v3742_v1 }
0x1f35   : > { %v3746_v13 = vsel %vm7482_vm1, %v3745_v16, %v3744_v2  ;;  %vm7490_vm1 = vcmask 253952  }
0x1f36   : > { %v3748_v32 = vsel %vm7483_vm2, %v3747_v38, %v3746_v13  ;;  %3943 = vmatpush.bf16.msra.mxu2 %v5069_v58  ;;  %vm7491_vm2 = vmmov %vm7490_vm1 }
0x1f38   : > { %v3705_v44 = vpop.xlane.xlu2 %3704  ;;  %v3707_v15 = vpop.xlane.xlu1 %3706 }
0x1f39   : > { %v3703_v22 = vpop.xlane.xlu0 %3702  ;;  %v3751_v31 = vperm.slane %v3705_v44, %v5936_v54  ;;  %v3753_v12 = vperm.slane %v3707_v15, %v5944_v7  ;;  %v5064_v7 = vld [vmem:[%s5964_s20 + $0x28] sm:$0xff] }
0x1f3a   : > { %v3749_v35 = vperm.slane %v3703_v22, %v5933_v53  ;;  %3837 = vmatpush.bf16.msra.mxu1 %v5064_v7  ;;  %3944 = vmatpush.bf16.msra.mxu2 %v5068_v27 }
0x1f3c   : > { %v3750_v36 = vsel %vm7484_vm3, %v3749_v35, %v3748_v32  ;;  %vm7492_vm3 = vmmov %vm7490_vm1 }
0x1f3d   : > { %v3752_v47 = vsel %vm798_vm14, %v3751_v31, %v3750_v36  ;;  %v4881_v31 = vld [vmem:[%s6046_s11 + $0x6] sm:$0x1]  ;;  %s7314_s11 = scalar_lea.vmem [#allocation5], %s6021_s12  ;;  %s5611_s12 = smov 96  }
0x1f3e   : > { %v3754_v53 = vsel %vm7485_vm4, %v3753_v12, %v3752_v47  ;;  %3838 = vmatpush.bf16.msra.mxu1 %v5063_v3  ;;  %3945 = vmatpush.bf16.msra.mxu2 %v5067_v62  ;;  %v3872_v32 = vadd.f32 %v4881_v31, %v7182_v41  ;;  %vm7493_vm4 = vmmov %vm7490_vm1 }
0x1f41   : > { %v3709_v20 = vpop.xlane.xlu0 %3708 }
0x1f42   : > { %v3755_v23 = vperm.slane %v3709_v20, %v5948_v14  ;;  %v5062_v14 = vld [vmem:[%s5964_s20 + $0x18] sm:$0xff]  ;;  %v1045_v20 = vperm.slane %v6079_v56, 0 }
0x1f43   : > { %3839 = vmatpush.bf16.msra.mxu1 %v5062_v14 }
0x1f44   : > { %v3756_v33 = vsel %vm7486_vm5, %v3755_v23, %v3754_v53  ;;  %v2026_v23 = vperm.slane %v6519_v29, 0  ;;  %v3499_v53 = vperm.slane %v7159_v61, 0  ;;  %vm7494_vm5 = vmmov %vm7490_vm1 }
0x1f45   : > { %v3758_v54 = vsel %vm7487_vm6, %v3756_v33, -1e+30  ;;  %vm7495_vm6 = vmmov %vm7490_vm1 }
0x1f46   : > { %v3759_v5 = vsel %vm7488_vm7, %v3758_v54, -inf  ;;  %vm7496_vm7 = vmmov %vm7490_vm1 }
0x1f47   : > { %3760 = vmax.xlane.f32.xlu2 %v3759_v5  ;;  %3840 = vmatpush.bf16.msra.mxu1 %v5061_v48 }
0x1f4b   : > { %3841 = vmatpush.bf16.msra.mxu1 %v5060_v43  ;;  %v3008_v43 = vperm.slane %v6959_v60, 0  ;;  %v2517_v60 = vperm.slane %v6719_v17, 0 }
0x1f4f   : > { %3842 = vmatpush.bf16.msra.mxu1 %v5059_v59 }
0x1fba   : > { %v3761_v21 = vpop.xlane.xlu2 %3760 }
0x1fbb   : > { %v3762_v24 = vsub.f32 %v3758_v54, %v3761_v21 }
0x1fbd   : > { %v3763_v49 = vmul.f32 1.442695, %v3762_v24 }
0x1fbf   : > { %5513 = vpow2.f32 %v3763_v49 }
0x1fc5   : > { %v5514_v40 = vpop.eup %5513 }
0x1fc6   : > { %v3765_v9 = vsel %vm7489_vm8, %v5514_v40, 0.0  ;;  %vm7497_vm8 = vmmov %vm7490_vm1 }
0x1fc7   : > { %3766 = vadd.xlane.f32.xlu1 %v3765_v9  ;;  %v1535_v9 = vperm.slane %v6279_v37, 0 }
0x203a   : > { %v3767_v25 = vpop.xlane.xlu1 %3766 }
0x203b   : > { %5515 = vrcp.f32 %v3767_v25 }
0x203c   : > { %5517 = vpow2.f32 %v4880_v51 }
0x2041   : > { %v5516_v10 = vpop.eup %5515 }
0x2042   : > { %v3769_v50 = vmul.f32 %v5516_v10, %v5514_v40  ;;  %v5518_v57 = vpop.eup %5517 }
0x2043   : > { %v3853_v26 = vadd.f32 1.0, %v5518_v57 }
0x2044   : > { %4916 = vst [vmem:[%s6030_s29 + $0x6] sm:$0x1] %v3769_v50  ;;  %v3770_v8 = vpack.c.bf16 %v3769_v50, %v3769_v50 }
0x2045   : > { %5519 = vrcp.f32 %v3853_v26  ;;  %v3865_v16 = vand.u32 2147483648, %v3853_v26  ;;  %vm3859_vm10 = vweird.f32 %v3853_v26  ;;  %v3863_v4 = vand.u32 2147483647, %v3853_v26 }
0x2046   : > { %3843 = vmatmul.bf16.vlgmr.msra.gmra.mxu1 %v3770_v8 }
0x2047   : > { %v3866_v2 = vor.u32 1.1754944e-38, %v3865_v16  ;;  %vm3864_vm11 = vcmp.eq.f32.partialorder %v3863_v4, 8.507059e+37 }
0x204b   : > { %v5520_v34 = vpop.eup %5519 }
0x204c   : > { %v3855_v63 = vmul.f32 %v5520_v34, %v3853_v26  ;;  %vm3860_vm9 = vweird.f32 %v5520_v34 }
0x204d   : > { %vm3861_vm14 = vmor %vm3859_vm10, %vm3860_vm9 }
0x204e   : > { %v3856_v30 = vsub.f32 1.0, %v3855_v63  ;;  %vm7498_vm9 = vmmov %vm7490_vm1 }
0x2050   : > { %v3857_v46 = vmul.f32 %v5520_v34, %v3856_v30 }
0x2052   : > { %v3858_v6 = vadd.f32 %v5520_v34, %v3857_v46 }
0x2054   : > { %v3862_v1 = vsel %vm3861_vm14, %v5520_v34, %v3858_v6 }
0x2055   : > { %v3867_v44 = vsel %vm3864_vm11, %v3866_v2, %v3862_v1 }
0x20c3   : > { %v3844_v13 = vpop.f32.mrf.mxu1 }
0x20c4   : > { %v3869_v22 = vmul.f32 %v3867_v44, %v3844_v13 }
0x20c6   : > { %v3873_v38 = vpack.c.bf16 %v3869_v22, %v3869_v22 }
0x20c8   : > { %3946 = vmatmul.bf16.vlgmr.msra.gmra.mxu2 %v3873_v38 }
0x20cb   : > { %v3846_v35 = vpop.f32.mrf.mxu1 }
0x214b   : > { %v3947_v36 = vpop.f32.mrf.mxu2 }
0x214c   : > { %v3951_v15 = vadd.f32 %v3947_v36, %v3872_v32 }
0x214e   : > { %5521 = vtanh.f32 %v3951_v15  ;;  %v4914_v41 = vmul.f32 -1.442695, %v3951_v15 }
0x2150   : > { %5523 = vpow2.f32 %v4914_v41 }
0x2153   : > { %v3949_v47 = vpop.f32.mrf.mxu2 }
0x2154   : > { %v5522_v12 = vpop.eup %5521 }
0x2155   : > { %3974 = vrot.lane.b32.xlu0 %v5522_v12, %s7448_s2 }
0x2156   : > { %v5524_v33 = vpop.eup %5523 }
0x2157   : > { %v3955_v54 = vadd.f32 1.0, %v5524_v33 }
0x2159   : > { %5525 = vrcp.f32 %v3955_v54  ;;  %v3967_v3 = vand.u32 2147483648, %v3955_v54  ;;  %vm3961_vm0 = vweird.f32 %v3955_v54  ;;  %v3965_v29 = vand.u32 2147483647, %v3955_v54 }
0x215b   : > { %v3968_v61 = vor.u32 1.1754944e-38, %v3967_v3  ;;  %vm3966_vm15 = vcmp.eq.f32.partialorder %v3965_v29, 8.507059e+37 }
0x215d   : > { %1046 = vrot.lane.b32.xlu0 %v1045_v20, %s7439_s3 }
0x215f   : > { %v5526_v5 = vpop.eup %5525 }
0x2160   : > { %v3957_v42 = vmul.f32 %v5526_v5, %v3955_v54  ;;  %vm3962_vm12 = vweird.f32 %v5526_v5 }
0x2161   : > { %vm3963_vm13 = vmor %vm3961_vm0, %vm3962_vm12 }
0x2162   : > { %v3958_v0 = vsub.f32 1.0, %v3957_v42 }
0x2164   : > { %v3959_v7 = vmul.f32 %v5526_v5, %v3958_v0 }
0x2165   : > { %2027 = vrot.lane.b32.xlu0 %v2026_v23, %s7439_s3 }
0x2166   : > { %v3960_v56 = vadd.f32 %v5526_v5, %v3959_v7 }
0x2168   : > { %v3964_v14 = vsel %vm3963_vm13, %v5526_v5, %v3960_v56 }
0x2169   : > { %v3969_v24 = vsel %vm3966_vm15, %v3968_v61, %v3964_v14 }
0x216a   : > { %v3972_v37 = vmul.f32 %v3969_v24, %v7131_v19 }
0x216d   : > { %3500 = vrot.lane.b32.xlu0 %v3499_v53, %s7439_s3 }
0x21c7   : > { %v3975_v21 = vpop.permute.xlu0 %3974 }
0x21c8   : > { %v3977_v49 = vmul.f32 %v3975_v21, %v3969_v24 }
0x21ca   : > { %3979 = vrot.lane.b32.xlu2 %v3977_v49, %s7439_s3 }
0x21cf   : > { %v1047_v40 = vpop.permute.xlu0 %1046 }
0x21d0   : > { %1050 = vst.msk [vmem:[%s7314_s11] sm:$0x1] %vm7490_vm1, %v1047_v40 }
0x21d2   : > { %1536 = vrot.lane.b32.xlu2 %v1535_v9, %s7439_s3 }
0x21d7   : > { %v2028_v48 = vpop.permute.xlu0 %2027  ;;  %v4037_v17 = vld [vmem:[%s7314_s11] sm:$0x1] (%p5708_p5) }
0x21d8   : > { %4531 = vst.msk [vmem:[%s7314_s11 + $0x2] sm:$0x1] %vm7491_vm2, %v2028_v48 }
0x21da   : > { %3009 = vrot.lane.b32.xlu2 %v3008_v43, %s7439_s3 }
0x21df   : > { %v3501_v18 = vpop.permute.xlu0 %3500  ;;  %v4041_v45 = vld [vmem:[%s7314_s11 + $0x2] sm:$0x1] (%p5708_p5) }
0x21e0   : > { %4819 = vst.msk [vmem:[%s7314_s11 + $0x5] sm:$0x1] %vm7492_vm3, %v3501_v18 }
0x21e7   : > { %v4047_v26 = vld [vmem:[%s7314_s11 + $0x5] sm:$0x1] (%p5708_p5) }
0x2224   : > { %v3980_v28 = vpop.permute.xlu2 %3979 }
0x2225   : > { %v3982_v59 = vadd.f32 %v3980_v28, %v3972_v37 }
0x2227   : > { %5527 = vtanh.f32 %v3982_v59  ;;  %v4000_v39 = vperm.slane %v3982_v59, 0 }
0x2229   : > { %4001 = vrot.lane.b32.xlu2 %v4000_v39, %s5611_s12 }
0x222c   : > { %v1537_v52 = vpop.permute.xlu2 %1536 }
0x222d   : > { %v5528_v55 = vpop.eup %5527  ;;  %4435 = vst.msk [vmem:[%s7314_s11 + $0x1] sm:$0x1] %vm7493_vm4, %v1537_v52 }
0x222e   : > { %3985 = vrot.lane.b32.xlu1 %v5528_v55, %s7448_s2  ;;  %s7499_s2 = sand.u32 1, %s5591_s14  }
0x222f   : > { %s7342_s1 = scalar_lea.sflag [#allocation7], %s7499_s2 }
0x2234   : > { %v3010_v58 = vpop.permute.xlu2 %3009  ;;  %v4039_v11 = vld [vmem:[%s7314_s11 + $0x1] sm:$0x1] (%p5708_p5) }
0x2235   : > { %4723 = vst.msk [vmem:[%s7314_s11 + $0x4] sm:$0x1] %vm7494_vm5, %v3010_v58 }
0x2236   : > { %2518 = vrot.lane.b32.xlu1 %v2517_v60, %s7439_s3 }
0x223c   : > { %v4045_v57 = vld [vmem:[%s7314_s11 + $0x4] sm:$0x1] (%p5708_p5) }
0x2283   : > { %v4002_v19 = vpop.permute.xlu2 %4001 }
0x2284   : > { %4004 = vst.msk [vmem:[#allocation3] sm:$0x1] %vm7495_vm6, %v4002_v19 }
0x22a0   : > { %v3986_v25 = vpop.permute.xlu1 %3985 }
0x22a1   : > { %v3988_v27 = vmul.f32 %v3986_v25, %v3969_v24 }
0x22a3   : > { %v3990_v10 = vperm.slane %v3988_v27, 0 }
0x22a5   : > { %3991 = vrot.lane.b32.xlu1 %v3990_v10, %s7439_s3  ;;  %s4020_s3 = scalar_lea.vmem (%p5708_p5), %s7406_s9, %s5599_s16 }
0x22a6   : > { %4038 = vst [vmem:[%s4020_s3] sm:$0x1] (%p5708_p5), %v4037_v17 }
0x22a7   : > { %4040 = vst [vmem:[%s4020_s3 + $0x2] sm:$0x1] (%p5708_p5), %v4039_v11 }
0x22a8   : > { %v2519_v50 = vpop.permute.xlu1 %2518  ;;  %4042 = vst [vmem:[%s4020_s3 + $0x4] sm:$0x1] (%p5708_p5), %v4041_v45 }
0x22a9   : > { %4627 = vst.msk [vmem:[%s7314_s11 + $0x3] sm:$0x1] %vm7496_vm7, %v2519_v50 }
0x22aa   : > { %4046 = vst [vmem:[%s4020_s3 + $0x8] sm:$0x1] (%p5708_p5), %v4045_v57 }
0x22ab   : > { %4048 = vst [vmem:[%s4020_s3 + $0xa] sm:$0x1] (%p5708_p5), %v4047_v26 }
0x22b0   : > { %v4043_v51 = vld [vmem:[%s7314_s11 + $0x3] sm:$0x1] (%p5708_p5) }
0x22b1   : > { %4044 = vst [vmem:[%s4020_s3 + $0x6] sm:$0x1] (%p5708_p5), %v4043_v51 }
0x2315   : > { %4016 = sbr.rel (!%p5708_p5) target bundleno = 8993 (0x2321), region = 98 }
0x2317   : > { %v3992_v8 = vpop.permute.xlu1 %3991 }
0x2318   : > { %4915 = vst.msk [vmem:[%s7314_s11 + $0x6] sm:$0x1] %vm7497_vm8, %v3992_v8 }
0x2319   : > { %3998 = vst.msk [vmem:[#allocation2] sm:$0x1] %vm7498_vm9, %v3992_v8 }
0x231f   : > { %v4049_v62 = vld [vmem:[%s7314_s11 + $0x6] sm:$0x1] }
0x2320   : > { %4050 = vst [vmem:[%s4020_s3 + $0xc] sm:$0x1] %v4049_v62 }
0x2321 PF: > { %s4086_s21 = scalar_lea.hbm %s7407_s10, %s5599_s16  ;;  %s4087_s20 = sshll.u32 %s6030_s29, 4  ;;  %s4088_s20 = int_to_ptr.vmem [resolvable:$true] %s4087_s20 }
0x2322   : > { %s4089_s27 = sshll.u32 %s4086_s21, 4  ;;  %s5549_s24 = scalar_lea.hbm %s7407_s10, 14  ;;  %s4090_s27 = int_to_ptr.hbm [resolvable:$true] %s4089_s27 }
0x2323   : > { %s5543_s28 = sshra.s32 %s4090_s27, 4  ;;  %s5544_s28 = int_to_ptr.hbm [resolvable:$true] %s5543_s28 }
0x2324   : > { %s5545_s0 = scalar_lea.hbm %s5544_s28, 7  ;;  %p5550_p4 = scmp.lt.s32.totalorder %s5544_s28, %s7407_s10 }
0x2325   : > { %p5546_p1 = scmp.ne.s32.totalorder %s5544_s28, %s5545_s0  ;;  %p5551_p6 = scmp.lt.s32.totalorder %s5549_s24, %s5545_s0 }
0x2327   : > { %p5547_p2 = pnand %p5546_p1, %p5708_p5  ;;  %p5552_p7 = por %p5551_p6, %p5550_p4 }
0x2329   : > { %p5548_p3 = pneg %p5547_p2 }
0x232b   : > { %p5553_p8 = pnand %p5552_p7, %p5548_p3 }
0x232d   : > { %5556 = shalt.err (!%p5553_p8)
}
0x232e   : > { %s5612_s16 = smov 16   ;;  %s5613_s29 = smov 1  }
0x232f   : > { %s7500_s2 = smov 32  }
0x2330   : > { %5350 = dma.vmem_to_hbm [thread:$0]  (%p5708_p5), %s4088_s20, 112, %s4090_s27, %s7342_s1, %s5612_s16, %s7500_s2, %s5613_s29  }
0x2331 PF: > { %s4111_s30 = sand.u32 1, %s5587_s13   ;;  %p5353_p11 = pnand %p4242_p10, %p5719_p9 }
0x2332   : > { %s4112_s22 = scalar_lea.sflag [#allocation7], %s4111_s30 }
0x2333   : > { %p5354_p12 = pneg %p5353_p11 }
0x2335   : > { %5582 = dma.done.wait (%p5354_p12), %s4112_s22, 112  }
0x2336   : > { %5584 = vsyncadd (%p5354_p12), %s4112_s22, 4294967184  ;;  %s24_s18 = sadd.s32 1, %s5607_s18   ;;  %s7501_s23 = sld [smem:[#allocation11_spill]] }
0x2337   : > { %p21_p13 = scmp.ge.s32.totalorder %s24_s18, 4   ;;  %s7502_s16 = sld [smem:[#allocation9_spill]] }
0x2338   : > { %s7503_s17 = sld [smem:[#allocation10_spill]]  ;;  %s7504_s13 = smov %s5591_s14 }
0x2339   : > { %s7505_s14 = smov %s5595_s15  ;;  %23 = sbr.rel (!%p21_p13) target bundleno = 10 (0xa), region = 210 }
0x233c   : > { %s7506_s15 = smov %s7501_s23 }
0x233e   :  { %4118 = vsyncpa [#allocation7], 1 }
0x233f   :  { %4120 = vsyncpa [#allocation7 + $0x1], 1 }

</bundles_post_ra>
